<compile_context>
chip_gen: v6e
topology: v6e:2x2x1
jax: 0.10.0
libtpu: 0.0.40
codegen_flags: <defaults>
</compile_context>

<pallas_src>
import math

import jax
import jax.numpy as jnp
from jax.experimental import pallas as pl
from jax.experimental.pallas import tpu as pltpu

# ---- small synthetic config (Bio_ClinicalBERT is bert-base; scaled down) ----
VOCAB = 128
HIDDEN = 32
N_HEADS = 4
HEAD_DIM = HIDDEN // N_HEADS
INTER = 64
N_LAYERS = 2
MAX_POS = 64
NUM_LABELS = 287            # from nn.Linear(768, 287)
NUM_LABELS_PAD = 384        # 3*128: lane-dense classifier store, sliced back to 287
LVEC_ROWS = 8               # bqkv, bo, ln1_g, ln1_b, b1, b2, ln2_g, ln2_b
LVEC_W = 128                # lane-padded width for coalesced per-layer vectors
ROWS_TARGET = 128           # target LHS rows per grid step (fills MXU sublanes)

# TODO(synk): before scaling to real BERT-base sizes (H=768, 12 layers) the
# all-weights-resident full-block specs must become a pipelined per-layer grid
# axis (grid=(B_blocks, N_LAYERS), x carried in VMEM scratch) — mandatory on
# v7x where physical VMEM is 64 MiB.  At HIDDEN=32 all weights fit easily.


# ---------------- single fused Pallas kernel (encoder + head) ----------------
def _make_kernel(bblk, seq):
    rows = bblk * seq
    scale = 1.0 / math.sqrt(HEAD_DIM)

    def kernel(x_ref, mask_ref, lvec_ref, mvec_ref,
               wqkv_ref, wo_ref, w1_ref, w2_ref, fcw_ref, o_ref):
        x = x_ref[...]                      # [rows, H] f32 (BBLK sequences packed)
        mask_add = mask_ref[...]            # [bblk, 1, S] f32 additive key mask

        def layernorm(v, g, b):             # single-pass: E[x], E[x^2] together
            mu = jnp.mean(v, axis=-1, keepdims=True)
            var = jnp.mean(v * v, axis=-1, keepdims=True) - mu * mu
            var = jnp.maximum(var, 0.0)
            return (v - mu) * jax.lax.rsqrt(var + 1e-12) * g + b

        def mm(a, w_bf16):                  # bf16 operands on the MXU, f32 acc
            return jnp.dot(a.astype(jnp.bfloat16), w_bf16,
                           preferred_element_type=jnp.float32)

        mvec = mvec_ref[...]                # [3, 384]: emb_ln_g / emb_ln_b / fc_b
        x = layernorm(x, mvec[0:1, :HIDDEN], mvec[1:2, :HIDDEN])

        for l in range(N_LAYERS):
            lv = lvec_ref[l]                # [8, 128] coalesced per-layer vectors
            bqkv = lv[0:1, :3 * HIDDEN]
            bo = lv[1:2, :HIDDEN]
            ln1g, ln1b = lv[2:3, :HIDDEN], lv[3:4, :HIDDEN]
            b1 = lv[4:5, :INTER]
            b2 = lv[5:6, :HIDDEN]
            ln2g, ln2b = lv[6:7, :HIDDEN], lv[7:8, :HIDDEN]

            # ---- fused QKV projection over all packed rows ----
            qkv = mm(x, wqkv_ref[l]) + bqkv                    # [rows, 3H] f32
            # fold 1/sqrt(dh) into q once; all attention dots take bf16 operands
            q = (qkv[:, 0:HIDDEN] * scale).astype(jnp.bfloat16)
            k = qkv[:, HIDDEN:2 * HIDDEN].astype(jnp.bfloat16)
            v = qkv[:, 2 * HIDDEN:3 * HIDDEN].astype(jnp.bfloat16)

            # ---- attention: short per-batch loop over [S,S] scores,
            #      heads lane-concatenated, ONE matmul against full Wo ----
            attn_rows = []
            for b in range(bblk):
                r0 = b * seq
                qb = q[r0:r0 + seq]                            # [S, H] bf16
                kb = k[r0:r0 + seq]
                vb = v[r0:r0 + seq]
                madd = mask_add[b]                             # [1, S] f32
                head_cols = []
                for h in range(N_HEADS):
                    lo = h * HEAD_DIM
                    qh = qb[:, lo:lo + HEAD_DIM]
                    kh = kb[:, lo:lo + HEAD_DIM]
                    vh = vb[:, lo:lo + HEAD_DIM]
                    # q @ k^T via contracting dims (no explicit transpose)
                    s = jax.lax.dot_general(
                        qh, kh, (((1,), (1,)), ((), ())),
                        preferred_element_type=jnp.float32)    # [S, S] f32
                    s = s + madd
                    s = s - jnp.max(s, axis=-1, keepdims=True)
                    p = jnp.exp(s)
                    p = p * pl.reciprocal(jnp.sum(p, axis=-1, keepdims=True),
                                          approx=True)
                    ah = jnp.dot(p.astype(jnp.bfloat16), vh,
                                 preferred_element_type=jnp.float32)   # [S, dh]
                    head_cols.append(ah)
                attn_rows.append(jnp.concatenate(head_cols, axis=-1))  # [S, H]
            attn = jnp.concatenate(attn_rows, axis=0)                  # [rows, H]
            attn = mm(attn, wo_ref[l]) + bo         # single [rows,H]@[H,H] bf16 dot

            # residual add fused with layernorm
            x = layernorm(x + attn, ln1g, ln1b)

            # ---- FFN: gelu(x@w1+b1)@w2+b2, residual + layernorm ----
            hmid = mm(x, w1_ref[l]) + b1                       # [rows, INTER] f32
            hmid = 0.5 * hmid * (1.0 + jnp.tanh(
                0.7978845608028654 * (hmid + 0.044715 * hmid * hmid * hmid)))
            y = mm(hmid, w2_ref[l]) + b2
            x = layernorm(x + y, ln2g, ln2b)

        # classifier: fc + ReLU (dropout = identity at inference), lane-dense 384
        logits = jnp.maximum(mm(x, fcw_ref[...]) + mvec[2:3, :], 0.0)
        o_ref[...] = logits                                    # [rows, 384]

    return kernel


# ---------------- parameters (deterministic, synthetic) ----------------
def init_params(key):
    def normal(k, shape):
        return 0.02 * jax.random.normal(k, shape, jnp.float32)

    keys = iter(jax.random.split(key, 8 + 16 * N_LAYERS))
    p = {
        "word_emb": normal(next(keys), (VOCAB, HIDDEN)),
        "pos_emb": normal(next(keys), (MAX_POS, HIDDEN)),
        "type_emb": normal(next(keys), (2, HIDDEN)),
        "emb_ln_g": jnp.ones((HIDDEN,), jnp.float32),
        "emb_ln_b": jnp.zeros((HIDDEN,), jnp.float32),
        "fc_w": normal(next(keys), (HIDDEN, NUM_LABELS)),
        "fc_b": jnp.zeros((NUM_LABELS,), jnp.float32),
        "layers": [],
    }
    for _ in range(N_LAYERS):
        p["layers"].append(dict(
            wq=normal(next(keys), (HIDDEN, HIDDEN)), bq=jnp.zeros((HIDDEN,), jnp.float32),
            wk=normal(next(keys), (HIDDEN, HIDDEN)), bk=jnp.zeros((HIDDEN,), jnp.float32),
            wv=normal(next(keys), (HIDDEN, HIDDEN)), bv=jnp.zeros((HIDDEN,), jnp.float32),
            wo=normal(next(keys), (HIDDEN, HIDDEN)), bo=jnp.zeros((HIDDEN,), jnp.float32),
            ln1_g=jnp.ones((HIDDEN,), jnp.float32), ln1_b=jnp.zeros((HIDDEN,), jnp.float32),
            w1=normal(next(keys), (HIDDEN, INTER)), b1=jnp.zeros((INTER,), jnp.float32),
            w2=normal(next(keys), (INTER, HIDDEN)), b2=jnp.zeros((HIDDEN,), jnp.float32),
            ln2_g=jnp.ones((HIDDEN,), jnp.float32), ln2_b=jnp.zeros((HIDDEN,), jnp.float32),
        ))
    return p


# ---------------- one-time weight packing (outside the jitted forward) ----------------
def prepare_params(params):
    layers = params["layers"]

    def stack(fn):
        return jnp.stack([fn(l) for l in layers], axis=0)

    wqkv = stack(lambda l: jnp.concatenate([l["wq"], l["wk"], l["wv"]], axis=1)
                 ).astype(jnp.bfloat16)                               # [L, H, 3H]
    wo = stack(lambda l: l["wo"]).astype(jnp.bfloat16)                # [L, H, H]
    w1 = stack(lambda l: l["w1"]).astype(jnp.bfloat16)                # [L, H, INTER]
    w2 = stack(lambda l: l["w2"]).astype(jnp.bfloat16)                # [L, INTER, H]

    # coalesce all tiny per-layer vectors into one [L, 8, 128] array
    lvec = jnp.zeros((N_LAYERS, LVEC_ROWS, LVEC_W), jnp.float32)
    for i, l in enumerate(layers):
        lvec = lvec.at[i, 0, :3 * HIDDEN].set(
            jnp.concatenate([l["bq"], l["bk"], l["bv"]]))
        lvec = lvec.at[i, 1, :HIDDEN].set(l["bo"])
        lvec = lvec.at[i, 2, :HIDDEN].set(l["ln1_g"])
        lvec = lvec.at[i, 3, :HIDDEN].set(l["ln1_b"])
        lvec = lvec.at[i, 4, :INTER].set(l["b1"])
        lvec = lvec.at[i, 5, :HIDDEN].set(l["b2"])
        lvec = lvec.at[i, 6, :HIDDEN].set(l["ln2_g"])
        lvec = lvec.at[i, 7, :HIDDEN].set(l["ln2_b"])

    # emb-LN gamma/beta + fc bias coalesced into one [3, 384] array
    mvec = jnp.zeros((3, NUM_LABELS_PAD), jnp.float32)
    mvec = mvec.at[0, :HIDDEN].set(params["emb_ln_g"])
    mvec = mvec.at[1, :HIDDEN].set(params["emb_ln_b"])
    mvec = mvec.at[2, :NUM_LABELS].set(params["fc_b"])

    # classifier weight padded to lane-dense 384 outputs, bf16
    fcw = jnp.zeros((HIDDEN, NUM_LABELS_PAD), jnp.float32
                    ).at[:, :NUM_LABELS].set(params["fc_w"]).astype(jnp.bfloat16)

    return dict(word_emb=params["word_emb"], pos_emb=params["pos_emb"],
                type_emb=params["type_emb"],
                wqkv=wqkv, wo=wo, w1=w1, w2=w2, lvec=lvec, mvec=mvec, fcw=fcw)


# ---------------- forward: JAX glue (gather, padding) + one pallas_call ----------------
def bert_forward(packed, ids, mask):
    B, S = ids.shape

    # embedding gather + sum in JAX glue (cheap, data-dependent indexing)
    # TODO(synk): token_type id is always 0 in this synthetic stand-in.
    x = (packed["word_emb"][ids]
         + packed["pos_emb"][:S][None, :, :]
         + packed["type_emb"][0][None, None, :]).astype(jnp.float32)   # [B, S, H]
    mask_add = ((1.0 - mask.astype(jnp.float32)) * -1e9).reshape(B, 1, S)

    # pack multiple sequences per grid step to fill MXU rows
    bblk = max(1, min(B, max(1, ROWS_TARGET // S)))
    nblk = pl.cdiv(B, bblk)
    b_pad = nblk * bblk
    if b_pad != B:
        x = jnp.pad(x, ((0, b_pad - B), (0, 0), (0, 0)))
        mask_add = jnp.pad(mask_add, ((0, b_pad - B), (0, 0), (0, 0)))

    x_flat = x.reshape(b_pad * S, HIDDEN)      # rows -> sublanes, hidden -> lanes

    def full_spec(shape):
        return pl.BlockSpec(shape, lambda b: (0,) * len(shape))

    out = pl.pallas_call(
        _make_kernel(bblk, S),
        out_shape=jax.ShapeDtypeStruct((b_pad * S, NUM_LABELS_PAD), jnp.float32),
        grid=(nblk,),
        in_specs=[
            pl.BlockSpec((bblk * S, HIDDEN), lambda b: (b, 0)),        # packed rows
            pl.BlockSpec((bblk, 1, S), lambda b: (b, 0, 0)),           # additive mask
            full_spec((N_LAYERS, LVEC_ROWS, LVEC_W)),                  # per-layer vecs
            full_spec((3, NUM_LABELS_PAD)),                            # emb LN + fc_b
            full_spec((N_LAYERS, HIDDEN, 3 * HIDDEN)),                 # wqkv (bf16)
            full_spec((N_LAYERS, HIDDEN, HIDDEN)),                     # wo   (bf16)
            full_spec((N_LAYERS, HIDDEN, INTER)),                      # w1   (bf16)
            full_spec((N_LAYERS, INTER, HIDDEN)),                      # w2   (bf16)
            full_spec((HIDDEN, NUM_LABELS_PAD)),                       # fcw  (bf16)
        ],
        out_specs=pl.BlockSpec((bblk * S, NUM_LABELS_PAD), lambda b: (b, 0)),
        compiler_params=pltpu.CompilerParams(
            dimension_semantics=("parallel",)),
    )(x_flat, mask_add,
      packed["lvec"], packed["mvec"],
      packed["wqkv"], packed["wo"], packed["w1"], packed["w2"], packed["fcw"])

    # un-flatten, drop batch padding, slice lane-dense 384 back to 287 labels
    # TODO(synk): train-mode stochastic dropout not implemented (inference semantics).
    out = out.reshape(b_pad, S, NUM_LABELS_PAD)
    return out[:B, :, :NUM_LABELS]


if __name__ == "__main__":
    key = jax.random.PRNGKey(0)
    pkey, ikey = jax.random.split(key)
    params = init_params(pkey)
    packed = prepare_params(params)        # one-time packing, outside jit

    B, S = 2, 8
    ids = jax.random.randint(ikey, (B, S), 0, VOCAB, dtype=jnp.int32)
    mask = jnp.ones((B, S), jnp.int32).at[1, 6:].set(0)   # pad last 2 tokens of row 1

    out = jax.jit(bert_forward)(packed, ids, mask)
    out = jax.block_until_ready(out)
    assert out.shape == (B, S, NUM_LABELS)
    assert bool(jnp.all(out >= 0.0))                      # ReLU output
    print("KERNEL_OK")
</pallas_src>

<mosaic_0001>
module attributes {stable_mosaic.version = 11 : i64} {
  func.func @kernel(%arg0: i32, %arg1: memref<16x32xf32, #tpu.memory_space<vmem>>, %arg2: memref<2x1x8xf32, #tpu.memory_space<vmem>>, %arg3: memref<2x8x128xf32, #tpu.memory_space<vmem>>, %arg4: memref<3x384xf32, #tpu.memory_space<vmem>>, %arg5: memref<2x32x96xbf16, #tpu.memory_space<vmem>>, %arg6: memref<2x32x32xbf16, #tpu.memory_space<vmem>>, %arg7: memref<2x32x64xbf16, #tpu.memory_space<vmem>>, %arg8: memref<2x64x32xbf16, #tpu.memory_space<vmem>>, %arg9: memref<32x384xbf16, #tpu.memory_space<vmem>>, %arg10: memref<16x384xf32, #tpu.memory_space<vmem>>) attributes {dimension_semantics = [#tpu.dimension_semantics<parallel>], iteration_bounds = array<i64: 1>, scalar_prefetch = 0 : i64, scratch_operands = 0 : i64, tpu.core_type = #tpu.core_type<tc>, window_params = [{transform_indices = @transform_0, window_bounds = array<i64: 16, 32>}, {transform_indices = @transform_1, window_bounds = array<i64: 2, 1, 8>}, {pipeline_mode = #tpu.pipeline_mode<synchronous>, transform_indices = @transform_2, window_bounds = array<i64: 2, 8, 128>}, {pipeline_mode = #tpu.pipeline_mode<synchronous>, transform_indices = @transform_3, window_bounds = array<i64: 3, 384>}, {pipeline_mode = #tpu.pipeline_mode<synchronous>, transform_indices = @transform_4, window_bounds = array<i64: 2, 32, 96>}, {pipeline_mode = #tpu.pipeline_mode<synchronous>, transform_indices = @transform_5, window_bounds = array<i64: 2, 32, 32>}, {pipeline_mode = #tpu.pipeline_mode<synchronous>, transform_indices = @transform_6, window_bounds = array<i64: 2, 32, 64>}, {pipeline_mode = #tpu.pipeline_mode<synchronous>, transform_indices = @transform_7, window_bounds = array<i64: 2, 64, 32>}, {pipeline_mode = #tpu.pipeline_mode<synchronous>, transform_indices = @transform_8, window_bounds = array<i64: 32, 384>}, {transform_indices = @transform_9, window_bounds = array<i64: 16, 384>}]} {
    %c0 = arith.constant 0 : index
    %c0_0 = arith.constant 0 : index
    %0 = vector.load %arg1[%c0, %c0_0] : memref<16x32xf32, #tpu.memory_space<vmem>>, vector<16x32xf32>
    %c0_1 = arith.constant 0 : index
    %c0_2 = arith.constant 0 : index
    %c0_3 = arith.constant 0 : index
    %1 = vector.load %arg2[%c0_1, %c0_2, %c0_3] : memref<2x1x8xf32, #tpu.memory_space<vmem>>, vector<2x1x8xf32>
    %c0_4 = arith.constant 0 : index
    %c0_5 = arith.constant 0 : index
    %2 = vector.load %arg4[%c0_4, %c0_5] : memref<3x384xf32, #tpu.memory_space<vmem>>, vector<3x384xf32>
    %3 = vector.extract_strided_slice %2 {offsets = [0, 0], sizes = [1, 32], strides = [1, 1]} : vector<3x384xf32> to vector<1x32xf32>
    %4 = vector.extract_strided_slice %2 {offsets = [1, 0], sizes = [1, 32], strides = [1, 1]} : vector<3x384xf32> to vector<1x32xf32>
    %cst = arith.constant dense<0.000000e+00> : vector<16xf32>
    %5 = vector.multi_reduction <add>, %0, %cst [1] : vector<16x32xf32> to vector<16xf32>
    %6 = vector.shape_cast %5 : vector<16xf32> to vector<16x1xf32>
    %cst_6 = arith.constant 3.200000e+01 : f32
    %7 = vector.broadcast %cst_6 : f32 to vector<16x1xf32>
    %8 = arith.divf %6, %7 : vector<16x1xf32>
    %9 = arith.mulf %0, %0 : vector<16x32xf32>
    %cst_7 = arith.constant dense<0.000000e+00> : vector<16xf32>
    %10 = vector.multi_reduction <add>, %9, %cst_7 [1] : vector<16x32xf32> to vector<16xf32>
    %11 = vector.shape_cast %10 : vector<16xf32> to vector<16x1xf32>
    %cst_8 = arith.constant 3.200000e+01 : f32
    %12 = vector.broadcast %cst_8 : f32 to vector<16x1xf32>
    %13 = arith.divf %11, %12 : vector<16x1xf32>
    %14 = arith.mulf %8, %8 : vector<16x1xf32>
    %15 = arith.subf %13, %14 : vector<16x1xf32>
    %cst_9 = arith.constant 0.000000e+00 : f32
    %16 = vector.broadcast %cst_9 : f32 to vector<16x1xf32>
    %17 = arith.maximumf %15, %16 : vector<16x1xf32>
    %18 = vector.broadcast %8 : vector<16x1xf32> to vector<16x32xf32>
    %19 = arith.subf %0, %18 : vector<16x32xf32>
    %cst_10 = arith.constant 9.99999996E-13 : f32
    %20 = vector.broadcast %cst_10 : f32 to vector<16x1xf32>
    %21 = arith.addf %17, %20 : vector<16x1xf32>
    %22 = math.rsqrt %21 : vector<16x1xf32>
    %23 = vector.broadcast %22 : vector<16x1xf32> to vector<16x32xf32>
    %24 = arith.mulf %19, %23 : vector<16x32xf32>
    %25 = vector.broadcast %3 : vector<1x32xf32> to vector<16x32xf32>
    %26 = arith.mulf %24, %25 : vector<16x32xf32>
    %27 = vector.broadcast %4 : vector<1x32xf32> to vector<16x32xf32>
    %28 = arith.addf %26, %27 : vector<16x32xf32>
    %c0_11 = arith.constant 0 : index
    %c0_12 = arith.constant 0 : index
    %c0_13 = arith.constant 0 : index
    %29 = vector.load %arg3[%c0_11, %c0_12, %c0_13] : memref<2x8x128xf32, #tpu.memory_space<vmem>>, vector<1x8x128xf32>
    %30 = vector.shape_cast %29 : vector<1x8x128xf32> to vector<8x128xf32>
    %31 = vector.extract_strided_slice %30 {offsets = [0, 0], sizes = [1, 96], strides = [1, 1]} : vector<8x128xf32> to vector<1x96xf32>
    %32 = vector.extract_strided_slice %30 {offsets = [1, 0], sizes = [1, 32], strides = [1, 1]} : vector<8x128xf32> to vector<1x32xf32>
    %33 = vector.extract_strided_slice %30 {offsets = [2, 0], sizes = [1, 32], strides = [1, 1]} : vector<8x128xf32> to vector<1x32xf32>
    %34 = vector.extract_strided_slice %30 {offsets = [3, 0], sizes = [1, 32], strides = [1, 1]} : vector<8x128xf32> to vector<1x32xf32>
    %35 = vector.extract_strided_slice %30 {offsets = [4, 0], sizes = [1, 64], strides = [1, 1]} : vector<8x128xf32> to vector<1x64xf32>
    %36 = vector.extract_strided_slice %30 {offsets = [5, 0], sizes = [1, 32], strides = [1, 1]} : vector<8x128xf32> to vector<1x32xf32>
    %37 = vector.extract_strided_slice %30 {offsets = [6, 0], sizes = [1, 32], strides = [1, 1]} : vector<8x128xf32> to vector<1x32xf32>
    %38 = vector.extract_strided_slice %30 {offsets = [7, 0], sizes = [1, 32], strides = [1, 1]} : vector<8x128xf32> to vector<1x32xf32>
    %c0_14 = arith.constant 0 : index
    %c0_15 = arith.constant 0 : index
    %c0_16 = arith.constant 0 : index
    %39 = vector.load %arg5[%c0_14, %c0_15, %c0_16] : memref<2x32x96xbf16, #tpu.memory_space<vmem>>, vector<1x32x96xbf16>
    %40 = vector.shape_cast %39 : vector<1x32x96xbf16> to vector<32x96xbf16>
    %41 = arith.truncf %28 : vector<16x32xf32> to vector<16x32xbf16>
    %cst_17 = arith.constant dense<0.000000e+00> : vector<16x96xf32>
    %42 = tpu.matmul %41, %40, %cst_17 {dimension_numbers = #tpu.dot_dimension_numbers<[1], [0], [0], [1], [0, 0, 1, 1], [], []>} : vector<16x32xbf16>, vector<32x96xbf16>, vector<16x96xf32> -> vector<16x96xf32>
    %43 = vector.broadcast %31 : vector<1x96xf32> to vector<16x96xf32>
    %44 = arith.addf %42, %43 : vector<16x96xf32>
    %45 = vector.extract_strided_slice %44 {offsets = [0, 0], sizes = [16, 32], strides = [1, 1]} : vector<16x96xf32> to vector<16x32xf32>
    %cst_18 = arith.constant 0.353553385 : f32
    %46 = vector.broadcast %cst_18 : f32 to vector<16x32xf32>
    %47 = arith.mulf %45, %46 : vector<16x32xf32>
    %48 = arith.truncf %47 : vector<16x32xf32> to vector<16x32xbf16>
    %49 = vector.extract_strided_slice %44 {offsets = [0, 32], sizes = [16, 32], strides = [1, 1]} : vector<16x96xf32> to vector<16x32xf32>
    %50 = arith.truncf %49 : vector<16x32xf32> to vector<16x32xbf16>
    %51 = vector.extract_strided_slice %44 {offsets = [0, 64], sizes = [16, 32], strides = [1, 1]} : vector<16x96xf32> to vector<16x32xf32>
    %52 = arith.truncf %51 : vector<16x32xf32> to vector<16x32xbf16>
    %53 = vector.extract_strided_slice %48 {offsets = [0, 0], sizes = [8, 32], strides = [1, 1]} : vector<16x32xbf16> to vector<8x32xbf16>
    %54 = vector.extract_strided_slice %50 {offsets = [0, 0], sizes = [8, 32], strides = [1, 1]} : vector<16x32xbf16> to vector<8x32xbf16>
    %55 = vector.extract_strided_slice %52 {offsets = [0, 0], sizes = [8, 32], strides = [1, 1]} : vector<16x32xbf16> to vector<8x32xbf16>
    %56 = vector.extract_strided_slice %1 {offsets = [0, 0, 0], sizes = [1, 1, 8], strides = [1, 1, 1]} : vector<2x1x8xf32> to vector<1x1x8xf32>
    %57 = vector.shape_cast %56 : vector<1x1x8xf32> to vector<1x8xf32>
    %58 = vector.extract_strided_slice %53 {offsets = [0, 0], sizes = [8, 8], strides = [1, 1]} : vector<8x32xbf16> to vector<8x8xbf16>
    %59 = vector.extract_strided_slice %54 {offsets = [0, 0], sizes = [8, 8], strides = [1, 1]} : vector<8x32xbf16> to vector<8x8xbf16>
    %60 = vector.extract_strided_slice %55 {offsets = [0, 0], sizes = [8, 8], strides = [1, 1]} : vector<8x32xbf16> to vector<8x8xbf16>
    %cst_19 = arith.constant dense<0.000000e+00> : vector<8x8xf32>
    %61 = tpu.matmul %58, %59, %cst_19 {dimension_numbers = #tpu.dot_dimension_numbers<[1], [1], [0], [0], [0, 0, 1, 0], [], []>} : vector<8x8xbf16>, vector<8x8xbf16>, vector<8x8xf32> -> vector<8x8xf32>
    %62 = vector.broadcast %57 : vector<1x8xf32> to vector<8x8xf32>
    %63 = arith.addf %61, %62 : vector<8x8xf32>
    %cst_20 = arith.constant dense<0xFF800000> : vector<8xf32>
    %64 = vector.multi_reduction <maximumf>, %63, %cst_20 [1] : vector<8x8xf32> to vector<8xf32>
    %65 = vector.shape_cast %64 : vector<8xf32> to vector<8x1xf32>
    %66 = vector.broadcast %65 : vector<8x1xf32> to vector<8x8xf32>
    %67 = arith.subf %63, %66 : vector<8x8xf32>
    %68 = math.exp %67 : vector<8x8xf32>
    %cst_21 = arith.constant dense<0.000000e+00> : vector<8xf32>
    %69 = vector.multi_reduction <add>, %68, %cst_21 [1] : vector<8x8xf32> to vector<8xf32>
    %70 = vector.shape_cast %69 : vector<8xf32> to vector<8x1xf32>
    %71 = tpu.reciprocal %70 {approx = true} : vector<8x1xf32> -> vector<8x1xf32>
    %72 = vector.broadcast %71 : vector<8x1xf32> to vector<8x8xf32>
    %73 = arith.mulf %68, %72 : vector<8x8xf32>
    %74 = arith.truncf %73 : vector<8x8xf32> to vector<8x8xbf16>
    %cst_22 = arith.constant dense<0.000000e+00> : vector<8x8xf32>
    %75 = tpu.matmul %74, %60, %cst_22 {dimension_numbers = #tpu.dot_dimension_numbers<[1], [0], [0], [1], [0, 0, 1, 1], [], []>} : vector<8x8xbf16>, vector<8x8xbf16>, vector<8x8xf32> -> vector<8x8xf32>
    %76 = vector.extract_strided_slice %53 {offsets = [0, 8], sizes = [8, 8], strides = [1, 1]} : vector<8x32xbf16> to vector<8x8xbf16>
    %77 = vector.extract_strided_slice %54 {offsets = [0, 8], sizes = [8, 8], strides = [1, 1]} : vector<8x32xbf16> to vector<8x8xbf16>
    %78 = vector.extract_strided_slice %55 {offsets = [0, 8], sizes = [8, 8], strides = [1, 1]} : vector<8x32xbf16> to vector<8x8xbf16>
    %cst_23 = arith.constant dense<0.000000e+00> : vector<8x8xf32>
    %79 = tpu.matmul %76, %77, %cst_23 {dimension_numbers = #tpu.dot_dimension_numbers<[1], [1], [0], [0], [0, 0, 1, 0], [], []>} : vector<8x8xbf16>, vector<8x8xbf16>, vector<8x8xf32> -> vector<8x8xf32>
    %80 = vector.broadcast %57 : vector<1x8xf32> to vector<8x8xf32>
    %81 = arith.addf %79, %80 : vector<8x8xf32>
    %cst_24 = arith.constant dense<0xFF800000> : vector<8xf32>
    %82 = vector.multi_reduction <maximumf>, %81, %cst_24 [1] : vector<8x8xf32> to vector<8xf32>
    %83 = vector.shape_cast %82 : vector<8xf32> to vector<8x1xf32>
    %84 = vector.broadcast %83 : vector<8x1xf32> to vector<8x8xf32>
    %85 = arith.subf %81, %84 : vector<8x8xf32>
    %86 = math.exp %85 : vector<8x8xf32>
    %cst_25 = arith.constant dense<0.000000e+00> : vector<8xf32>
    %87 = vector.multi_reduction <add>, %86, %cst_25 [1] : vector<8x8xf32> to vector<8xf32>
    %88 = vector.shape_cast %87 : vector<8xf32> to vector<8x1xf32>
    %89 = tpu.reciprocal %88 {approx = true} : vector<8x1xf32> -> vector<8x1xf32>
    %90 = vector.broadcast %89 : vector<8x1xf32> to vector<8x8xf32>
    %91 = arith.mulf %86, %90 : vector<8x8xf32>
    %92 = arith.truncf %91 : vector<8x8xf32> to vector<8x8xbf16>
    %cst_26 = arith.constant dense<0.000000e+00> : vector<8x8xf32>
    %93 = tpu.matmul %92, %78, %cst_26 {dimension_numbers = #tpu.dot_dimension_numbers<[1], [0], [0], [1], [0, 0, 1, 1], [], []>} : vector<8x8xbf16>, vector<8x8xbf16>, vector<8x8xf32> -> vector<8x8xf32>
    %94 = vector.extract_strided_slice %53 {offsets = [0, 16], sizes = [8, 8], strides = [1, 1]} : vector<8x32xbf16> to vector<8x8xbf16>
    %95 = vector.extract_strided_slice %54 {offsets = [0, 16], sizes = [8, 8], strides = [1, 1]} : vector<8x32xbf16> to vector<8x8xbf16>
    %96 = vector.extract_strided_slice %55 {offsets = [0, 16], sizes = [8, 8], strides = [1, 1]} : vector<8x32xbf16> to vector<8x8xbf16>
    %cst_27 = arith.constant dense<0.000000e+00> : vector<8x8xf32>
    %97 = tpu.matmul %94, %95, %cst_27 {dimension_numbers = #tpu.dot_dimension_numbers<[1], [1], [0], [0], [0, 0, 1, 0], [], []>} : vector<8x8xbf16>, vector<8x8xbf16>, vector<8x8xf32> -> vector<8x8xf32>
    %98 = vector.broadcast %57 : vector<1x8xf32> to vector<8x8xf32>
    %99 = arith.addf %97, %98 : vector<8x8xf32>
    %cst_28 = arith.constant dense<0xFF800000> : vector<8xf32>
    %100 = vector.multi_reduction <maximumf>, %99, %cst_28 [1] : vector<8x8xf32> to vector<8xf32>
    %101 = vector.shape_cast %100 : vector<8xf32> to vector<8x1xf32>
    %102 = vector.broadcast %101 : vector<8x1xf32> to vector<8x8xf32>
    %103 = arith.subf %99, %102 : vector<8x8xf32>
    %104 = math.exp %103 : vector<8x8xf32>
    %cst_29 = arith.constant dense<0.000000e+00> : vector<8xf32>
    %105 = vector.multi_reduction <add>, %104, %cst_29 [1] : vector<8x8xf32> to vector<8xf32>
    %106 = vector.shape_cast %105 : vector<8xf32> to vector<8x1xf32>
    %107 = tpu.reciprocal %106 {approx = true} : vector<8x1xf32> -> vector<8x1xf32>
    %108 = vector.broadcast %107 : vector<8x1xf32> to vector<8x8xf32>
    %109 = arith.mulf %104, %108 : vector<8x8xf32>
    %110 = arith.truncf %109 : vector<8x8xf32> to vector<8x8xbf16>
    %cst_30 = arith.constant dense<0.000000e+00> : vector<8x8xf32>
    %111 = tpu.matmul %110, %96, %cst_30 {dimension_numbers = #tpu.dot_dimension_numbers<[1], [0], [0], [1], [0, 0, 1, 1], [], []>} : vector<8x8xbf16>, vector<8x8xbf16>, vector<8x8xf32> -> vector<8x8xf32>
    %112 = vector.extract_strided_slice %53 {offsets = [0, 24], sizes = [8, 8], strides = [1, 1]} : vector<8x32xbf16> to vector<8x8xbf16>
    %113 = vector.extract_strided_slice %54 {offsets = [0, 24], sizes = [8, 8], strides = [1, 1]} : vector<8x32xbf16> to vector<8x8xbf16>
    %114 = vector.extract_strided_slice %55 {offsets = [0, 24], sizes = [8, 8], strides = [1, 1]} : vector<8x32xbf16> to vector<8x8xbf16>
    %cst_31 = arith.constant dense<0.000000e+00> : vector<8x8xf32>
    %115 = tpu.matmul %112, %113, %cst_31 {dimension_numbers = #tpu.dot_dimension_numbers<[1], [1], [0], [0], [0, 0, 1, 0], [], []>} : vector<8x8xbf16>, vector<8x8xbf16>, vector<8x8xf32> -> vector<8x8xf32>
    %116 = vector.broadcast %57 : vector<1x8xf32> to vector<8x8xf32>
    %117 = arith.addf %115, %116 : vector<8x8xf32>
    %cst_32 = arith.constant dense<0xFF800000> : vector<8xf32>
    %118 = vector.multi_reduction <maximumf>, %117, %cst_32 [1] : vector<8x8xf32> to vector<8xf32>
    %119 = vector.shape_cast %118 : vector<8xf32> to vector<8x1xf32>
    %120 = vector.broadcast %119 : vector<8x1xf32> to vector<8x8xf32>
    %121 = arith.subf %117, %120 : vector<8x8xf32>
    %122 = math.exp %121 : vector<8x8xf32>
    %cst_33 = arith.constant dense<0.000000e+00> : vector<8xf32>
    %123 = vector.multi_reduction <add>, %122, %cst_33 [1] : vector<8x8xf32> to vector<8xf32>
    %124 = vector.shape_cast %123 : vector<8xf32> to vector<8x1xf32>
    %125 = tpu.reciprocal %124 {approx = true} : vector<8x1xf32> -> vector<8x1xf32>
    %126 = vector.broadcast %125 : vector<8x1xf32> to vector<8x8xf32>
    %127 = arith.mulf %122, %126 : vector<8x8xf32>
    %128 = arith.truncf %127 : vector<8x8xf32> to vector<8x8xbf16>
    %cst_34 = arith.constant dense<0.000000e+00> : vector<8x8xf32>
    %129 = tpu.matmul %128, %114, %cst_34 {dimension_numbers = #tpu.dot_dimension_numbers<[1], [0], [0], [1], [0, 0, 1, 1], [], []>} : vector<8x8xbf16>, vector<8x8xbf16>, vector<8x8xf32> -> vector<8x8xf32>
    %130 = tpu.concatenate %75, %93, %111, %129 in 1 : vector<8x8xf32>, vector<8x8xf32>, vector<8x8xf32>, vector<8x8xf32> -> vector<8x32xf32>
    %131 = vector.extract_strided_slice %48 {offsets = [8, 0], sizes = [8, 32], strides = [1, 1]} : vector<16x32xbf16> to vector<8x32xbf16>
    %132 = vector.extract_strided_slice %50 {offsets = [8, 0], sizes = [8, 32], strides = [1, 1]} : vector<16x32xbf16> to vector<8x32xbf16>
    %133 = vector.extract_strided_slice %52 {offsets = [8, 0], sizes = [8, 32], strides = [1, 1]} : vector<16x32xbf16> to vector<8x32xbf16>
    %134 = vector.extract_strided_slice %1 {offsets = [1, 0, 0], sizes = [1, 1, 8], strides = [1, 1, 1]} : vector<2x1x8xf32> to vector<1x1x8xf32>
    %135 = vector.shape_cast %134 : vector<1x1x8xf32> to vector<1x8xf32>
    %136 = vector.extract_strided_slice %131 {offsets = [0, 0], sizes = [8, 8], strides = [1, 1]} : vector<8x32xbf16> to vector<8x8xbf16>
    %137 = vector.extract_strided_slice %132 {offsets = [0, 0], sizes = [8, 8], strides = [1, 1]} : vector<8x32xbf16> to vector<8x8xbf16>
    %138 = vector.extract_strided_slice %133 {offsets = [0, 0], sizes = [8, 8], strides = [1, 1]} : vector<8x32xbf16> to vector<8x8xbf16>
    %cst_35 = arith.constant dense<0.000000e+00> : vector<8x8xf32>
    %139 = tpu.matmul %136, %137, %cst_35 {dimension_numbers = #tpu.dot_dimension_numbers<[1], [1], [0], [0], [0, 0, 1, 0], [], []>} : vector<8x8xbf16>, vector<8x8xbf16>, vector<8x8xf32> -> vector<8x8xf32>
    %140 = vector.broadcast %135 : vector<1x8xf32> to vector<8x8xf32>
    %141 = arith.addf %139, %140 : vector<8x8xf32>
    %cst_36 = arith.constant dense<0xFF800000> : vector<8xf32>
    %142 = vector.multi_reduction <maximumf>, %141, %cst_36 [1] : vector<8x8xf32> to vector<8xf32>
    %143 = vector.shape_cast %142 : vector<8xf32> to vector<8x1xf32>
    %144 = vector.broadcast %143 : vector<8x1xf32> to vector<8x8xf32>
    %145 = arith.subf %141, %144 : vector<8x8xf32>
    %146 = math.exp %145 : vector<8x8xf32>
    %cst_37 = arith.constant dense<0.000000e+00> : vector<8xf32>
    %147 = vector.multi_reduction <add>, %146, %cst_37 [1] : vector<8x8xf32> to vector<8xf32>
    %148 = vector.shape_cast %147 : vector<8xf32> to vector<8x1xf32>
    %149 = tpu.reciprocal %148 {approx = true} : vector<8x1xf32> -> vector<8x1xf32>
    %150 = vector.broadcast %149 : vector<8x1xf32> to vector<8x8xf32>
    %151 = arith.mulf %146, %150 : vector<8x8xf32>
    %152 = arith.truncf %151 : vector<8x8xf32> to vector<8x8xbf16>
    %cst_38 = arith.constant dense<0.000000e+00> : vector<8x8xf32>
    %153 = tpu.matmul %152, %138, %cst_38 {dimension_numbers = #tpu.dot_dimension_numbers<[1], [0], [0], [1], [0, 0, 1, 1], [], []>} : vector<8x8xbf16>, vector<8x8xbf16>, vector<8x8xf32> -> vector<8x8xf32>
    %154 = vector.extract_strided_slice %131 {offsets = [0, 8], sizes = [8, 8], strides = [1, 1]} : vector<8x32xbf16> to vector<8x8xbf16>
    %155 = vector.extract_strided_slice %132 {offsets = [0, 8], sizes = [8, 8], strides = [1, 1]} : vector<8x32xbf16> to vector<8x8xbf16>
    %156 = vector.extract_strided_slice %133 {offsets = [0, 8], sizes = [8, 8], strides = [1, 1]} : vector<8x32xbf16> to vector<8x8xbf16>
    %cst_39 = arith.constant dense<0.000000e+00> : vector<8x8xf32>
    %157 = tpu.matmul %154, %155, %cst_39 {dimension_numbers = #tpu.dot_dimension_numbers<[1], [1], [0], [0], [0, 0, 1, 0], [], []>} : vector<8x8xbf16>, vector<8x8xbf16>, vector<8x8xf32> -> vector<8x8xf32>
    %158 = vector.broadcast %135 : vector<1x8xf32> to vector<8x8xf32>
    %159 = arith.addf %157, %158 : vector<8x8xf32>
    %cst_40 = arith.constant dense<0xFF800000> : vector<8xf32>
    %160 = vector.multi_reduction <maximumf>, %159, %cst_40 [1] : vector<8x8xf32> to vector<8xf32>
    %161 = vector.shape_cast %160 : vector<8xf32> to vector<8x1xf32>
    %162 = vector.broadcast %161 : vector<8x1xf32> to vector<8x8xf32>
    %163 = arith.subf %159, %162 : vector<8x8xf32>
    %164 = math.exp %163 : vector<8x8xf32>
    %cst_41 = arith.constant dense<0.000000e+00> : vector<8xf32>
    %165 = vector.multi_reduction <add>, %164, %cst_41 [1] : vector<8x8xf32> to vector<8xf32>
    %166 = vector.shape_cast %165 : vector<8xf32> to vector<8x1xf32>
    %167 = tpu.reciprocal %166 {approx = true} : vector<8x1xf32> -> vector<8x1xf32>
    %168 = vector.broadcast %167 : vector<8x1xf32> to vector<8x8xf32>
    %169 = arith.mulf %164, %168 : vector<8x8xf32>
    %170 = arith.truncf %169 : vector<8x8xf32> to vector<8x8xbf16>
    %cst_42 = arith.constant dense<0.000000e+00> : vector<8x8xf32>
    %171 = tpu.matmul %170, %156, %cst_42 {dimension_numbers = #tpu.dot_dimension_numbers<[1], [0], [0], [1], [0, 0, 1, 1], [], []>} : vector<8x8xbf16>, vector<8x8xbf16>, vector<8x8xf32> -> vector<8x8xf32>
    %172 = vector.extract_strided_slice %131 {offsets = [0, 16], sizes = [8, 8], strides = [1, 1]} : vector<8x32xbf16> to vector<8x8xbf16>
    %173 = vector.extract_strided_slice %132 {offsets = [0, 16], sizes = [8, 8], strides = [1, 1]} : vector<8x32xbf16> to vector<8x8xbf16>
    %174 = vector.extract_strided_slice %133 {offsets = [0, 16], sizes = [8, 8], strides = [1, 1]} : vector<8x32xbf16> to vector<8x8xbf16>
    %cst_43 = arith.constant dense<0.000000e+00> : vector<8x8xf32>
    %175 = tpu.matmul %172, %173, %cst_43 {dimension_numbers = #tpu.dot_dimension_numbers<[1], [1], [0], [0], [0, 0, 1, 0], [], []>} : vector<8x8xbf16>, vector<8x8xbf16>, vector<8x8xf32> -> vector<8x8xf32>
    %176 = vector.broadcast %135 : vector<1x8xf32> to vector<8x8xf32>
    %177 = arith.addf %175, %176 : vector<8x8xf32>
    %cst_44 = arith.constant dense<0xFF800000> : vector<8xf32>
    %178 = vector.multi_reduction <maximumf>, %177, %cst_44 [1] : vector<8x8xf32> to vector<8xf32>
    %179 = vector.shape_cast %178 : vector<8xf32> to vector<8x1xf32>
    %180 = vector.broadcast %179 : vector<8x1xf32> to vector<8x8xf32>
    %181 = arith.subf %177, %180 : vector<8x8xf32>
    %182 = math.exp %181 : vector<8x8xf32>
    %cst_45 = arith.constant dense<0.000000e+00> : vector<8xf32>
    %183 = vector.multi_reduction <add>, %182, %cst_45 [1] : vector<8x8xf32> to vector<8xf32>
    %184 = vector.shape_cast %183 : vector<8xf32> to vector<8x1xf32>
    %185 = tpu.reciprocal %184 {approx = true} : vector<8x1xf32> -> vector<8x1xf32>
    %186 = vector.broadcast %185 : vector<8x1xf32> to vector<8x8xf32>
    %187 = arith.mulf %182, %186 : vector<8x8xf32>
    %188 = arith.truncf %187 : vector<8x8xf32> to vector<8x8xbf16>
    %cst_46 = arith.constant dense<0.000000e+00> : vector<8x8xf32>
    %189 = tpu.matmul %188, %174, %cst_46 {dimension_numbers = #tpu.dot_dimension_numbers<[1], [0], [0], [1], [0, 0, 1, 1], [], []>} : vector<8x8xbf16>, vector<8x8xbf16>, vector<8x8xf32> -> vector<8x8xf32>
    %190 = vector.extract_strided_slice %131 {offsets = [0, 24], sizes = [8, 8], strides = [1, 1]} : vector<8x32xbf16> to vector<8x8xbf16>
    %191 = vector.extract_strided_slice %132 {offsets = [0, 24], sizes = [8, 8], strides = [1, 1]} : vector<8x32xbf16> to vector<8x8xbf16>
    %192 = vector.extract_strided_slice %133 {offsets = [0, 24], sizes = [8, 8], strides = [1, 1]} : vector<8x32xbf16> to vector<8x8xbf16>
    %cst_47 = arith.constant dense<0.000000e+00> : vector<8x8xf32>
    %193 = tpu.matmul %190, %191, %cst_47 {dimension_numbers = #tpu.dot_dimension_numbers<[1], [1], [0], [0], [0, 0, 1, 0], [], []>} : vector<8x8xbf16>, vector<8x8xbf16>, vector<8x8xf32> -> vector<8x8xf32>
    %194 = vector.broadcast %135 : vector<1x8xf32> to vector<8x8xf32>
    %195 = arith.addf %193, %194 : vector<8x8xf32>
    %cst_48 = arith.constant dense<0xFF800000> : vector<8xf32>
    %196 = vector.multi_reduction <maximumf>, %195, %cst_48 [1] : vector<8x8xf32> to vector<8xf32>
    %197 = vector.shape_cast %196 : vector<8xf32> to vector<8x1xf32>
    %198 = vector.broadcast %197 : vector<8x1xf32> to vector<8x8xf32>
    %199 = arith.subf %195, %198 : vector<8x8xf32>
    %200 = math.exp %199 : vector<8x8xf32>
    %cst_49 = arith.constant dense<0.000000e+00> : vector<8xf32>
    %201 = vector.multi_reduction <add>, %200, %cst_49 [1] : vector<8x8xf32> to vector<8xf32>
    %202 = vector.shape_cast %201 : vector<8xf32> to vector<8x1xf32>
    %203 = tpu.reciprocal %202 {approx = true} : vector<8x1xf32> -> vector<8x1xf32>
    %204 = vector.broadcast %203 : vector<8x1xf32> to vector<8x8xf32>
    %205 = arith.mulf %200, %204 : vector<8x8xf32>
    %206 = arith.truncf %205 : vector<8x8xf32> to vector<8x8xbf16>
    %cst_50 = arith.constant dense<0.000000e+00> : vector<8x8xf32>
    %207 = tpu.matmul %206, %192, %cst_50 {dimension_numbers = #tpu.dot_dimension_numbers<[1], [0], [0], [1], [0, 0, 1, 1], [], []>} : vector<8x8xbf16>, vector<8x8xbf16>, vector<8x8xf32> -> vector<8x8xf32>
    %208 = tpu.concatenate %153, %171, %189, %207 in 1 : vector<8x8xf32>, vector<8x8xf32>, vector<8x8xf32>, vector<8x8xf32> -> vector<8x32xf32>
    %209 = tpu.concatenate %130, %208 in 0 : vector<8x32xf32>, vector<8x32xf32> -> vector<16x32xf32>
    %c0_51 = arith.constant 0 : index
    %c0_52 = arith.constant 0 : index
    %c0_53 = arith.constant 0 : index
    %210 = vector.load %arg6[%c0_51, %c0_52, %c0_53] : memref<2x32x32xbf16, #tpu.memory_space<vmem>>, vector<1x32x32xbf16>
    %211 = vector.shape_cast %210 : vector<1x32x32xbf16> to vector<32x32xbf16>
    %212 = arith.truncf %209 : vector<16x32xf32> to vector<16x32xbf16>
    %cst_54 = arith.constant dense<0.000000e+00> : vector<16x32xf32>
    %213 = tpu.matmul %212, %211, %cst_54 {dimension_numbers = #tpu.dot_dimension_numbers<[1], [0], [0], [1], [0, 0, 1, 1], [], []>} : vector<16x32xbf16>, vector<32x32xbf16>, vector<16x32xf32> -> vector<16x32xf32>
    %214 = vector.broadcast %32 : vector<1x32xf32> to vector<16x32xf32>
    %215 = arith.addf %213, %214 : vector<16x32xf32>
    %216 = arith.addf %28, %215 : vector<16x32xf32>
    %cst_55 = arith.constant dense<0.000000e+00> : vector<16xf32>
    %217 = vector.multi_reduction <add>, %216, %cst_55 [1] : vector<16x32xf32> to vector<16xf32>
    %218 = vector.shape_cast %217 : vector<16xf32> to vector<16x1xf32>
    %cst_56 = arith.constant 3.200000e+01 : f32
    %219 = vector.broadcast %cst_56 : f32 to vector<16x1xf32>
    %220 = arith.divf %218, %219 : vector<16x1xf32>
    %221 = arith.mulf %216, %216 : vector<16x32xf32>
    %cst_57 = arith.constant dense<0.000000e+00> : vector<16xf32>
    %222 = vector.multi_reduction <add>, %221, %cst_57 [1] : vector<16x32xf32> to vector<16xf32>
    %223 = vector.shape_cast %222 : vector<16xf32> to vector<16x1xf32>
    %cst_58 = arith.constant 3.200000e+01 : f32
    %224 = vector.broadcast %cst_58 : f32 to vector<16x1xf32>
    %225 = arith.divf %223, %224 : vector<16x1xf32>
    %226 = arith.mulf %220, %220 : vector<16x1xf32>
    %227 = arith.subf %225, %226 : vector<16x1xf32>
    %cst_59 = arith.constant 0.000000e+00 : f32
    %228 = vector.broadcast %cst_59 : f32 to vector<16x1xf32>
    %229 = arith.maximumf %227, %228 : vector<16x1xf32>
    %230 = vector.broadcast %220 : vector<16x1xf32> to vector<16x32xf32>
    %231 = arith.subf %216, %230 : vector<16x32xf32>
    %cst_60 = arith.constant 9.99999996E-13 : f32
    %232 = vector.broadcast %cst_60 : f32 to vector<16x1xf32>
    %233 = arith.addf %229, %232 : vector<16x1xf32>
    %234 = math.rsqrt %233 : vector<16x1xf32>
    %235 = vector.broadcast %234 : vector<16x1xf32> to vector<16x32xf32>
    %236 = arith.mulf %231, %235 : vector<16x32xf32>
    %237 = vector.broadcast %33 : vector<1x32xf32> to vector<16x32xf32>
    %238 = arith.mulf %236, %237 : vector<16x32xf32>
    %239 = vector.broadcast %34 : vector<1x32xf32> to vector<16x32xf32>
    %240 = arith.addf %238, %239 : vector<16x32xf32>
    %c0_61 = arith.constant 0 : index
    %c0_62 = arith.constant 0 : index
    %c0_63 = arith.constant 0 : index
    %241 = vector.load %arg7[%c0_61, %c0_62, %c0_63] : memref<2x32x64xbf16, #tpu.memory_space<vmem>>, vector<1x32x64xbf16>
    %242 = vector.shape_cast %241 : vector<1x32x64xbf16> to vector<32x64xbf16>
    %243 = arith.truncf %240 : vector<16x32xf32> to vector<16x32xbf16>
    %cst_64 = arith.constant dense<0.000000e+00> : vector<16x64xf32>
    %244 = tpu.matmul %243, %242, %cst_64 {dimension_numbers = #tpu.dot_dimension_numbers<[1], [0], [0], [1], [0, 0, 1, 1], [], []>} : vector<16x32xbf16>, vector<32x64xbf16>, vector<16x64xf32> -> vector<16x64xf32>
    %245 = vector.broadcast %35 : vector<1x64xf32> to vector<16x64xf32>
    %246 = arith.addf %244, %245 : vector<16x64xf32>
    %cst_65 = arith.constant 5.000000e-01 : f32
    %247 = vector.broadcast %cst_65 : f32 to vector<16x64xf32>
    %248 = arith.mulf %247, %246 : vector<16x64xf32>
    %cst_66 = arith.constant 4.471500e-02 : f32
    %249 = vector.broadcast %cst_66 : f32 to vector<16x64xf32>
    %250 = arith.mulf %249, %246 : vector<16x64xf32>
    %251 = arith.mulf %250, %246 : vector<16x64xf32>
    %252 = arith.mulf %251, %246 : vector<16x64xf32>
    %253 = arith.addf %246, %252 : vector<16x64xf32>
    %cst_67 = arith.constant 0.797884583 : f32
    %254 = vector.broadcast %cst_67 : f32 to vector<16x64xf32>
    %255 = arith.mulf %254, %253 : vector<16x64xf32>
    %256 = math.tanh %255 : vector<16x64xf32>
    %cst_68 = arith.constant 1.000000e+00 : f32
    %257 = vector.broadcast %cst_68 : f32 to vector<16x64xf32>
    %258 = arith.addf %257, %256 : vector<16x64xf32>
    %259 = arith.mulf %248, %258 : vector<16x64xf32>
    %c0_69 = arith.constant 0 : index
    %c0_70 = arith.constant 0 : index
    %c0_71 = arith.constant 0 : index
    %260 = vector.load %arg8[%c0_69, %c0_70, %c0_71] : memref<2x64x32xbf16, #tpu.memory_space<vmem>>, vector<1x64x32xbf16>
    %261 = vector.shape_cast %260 : vector<1x64x32xbf16> to vector<64x32xbf16>
    %262 = arith.truncf %259 : vector<16x64xf32> to vector<16x64xbf16>
    %cst_72 = arith.constant dense<0.000000e+00> : vector<16x32xf32>
    %263 = tpu.matmul %262, %261, %cst_72 {dimension_numbers = #tpu.dot_dimension_numbers<[1], [0], [0], [1], [0, 0, 1, 1], [], []>} : vector<16x64xbf16>, vector<64x32xbf16>, vector<16x32xf32> -> vector<16x32xf32>
    %264 = vector.broadcast %36 : vector<1x32xf32> to vector<16x32xf32>
    %265 = arith.addf %263, %264 : vector<16x32xf32>
    %266 = arith.addf %240, %265 : vector<16x32xf32>
    %cst_73 = arith.constant dense<0.000000e+00> : vector<16xf32>
    %267 = vector.multi_reduction <add>, %266, %cst_73 [1] : vector<16x32xf32> to vector<16xf32>
    %268 = vector.shape_cast %267 : vector<16xf32> to vector<16x1xf32>
    %cst_74 = arith.constant 3.200000e+01 : f32
    %269 = vector.broadcast %cst_74 : f32 to vector<16x1xf32>
    %270 = arith.divf %268, %269 : vector<16x1xf32>
    %271 = arith.mulf %266, %266 : vector<16x32xf32>
    %cst_75 = arith.constant dense<0.000000e+00> : vector<16xf32>
    %272 = vector.multi_reduction <add>, %271, %cst_75 [1] : vector<16x32xf32> to vector<16xf32>
    %273 = vector.shape_cast %272 : vector<16xf32> to vector<16x1xf32>
    %cst_76 = arith.constant 3.200000e+01 : f32
    %274 = vector.broadcast %cst_76 : f32 to vector<16x1xf32>
    %275 = arith.divf %273, %274 : vector<16x1xf32>
    %276 = arith.mulf %270, %270 : vector<16x1xf32>
    %277 = arith.subf %275, %276 : vector<16x1xf32>
    %cst_77 = arith.constant 0.000000e+00 : f32
    %278 = vector.broadcast %cst_77 : f32 to vector<16x1xf32>
    %279 = arith.maximumf %277, %278 : vector<16x1xf32>
    %280 = vector.broadcast %270 : vector<16x1xf32> to vector<16x32xf32>
    %281 = arith.subf %266, %280 : vector<16x32xf32>
    %cst_78 = arith.constant 9.99999996E-13 : f32
    %282 = vector.broadcast %cst_78 : f32 to vector<16x1xf32>
    %283 = arith.addf %279, %282 : vector<16x1xf32>
    %284 = math.rsqrt %283 : vector<16x1xf32>
    %285 = vector.broadcast %284 : vector<16x1xf32> to vector<16x32xf32>
    %286 = arith.mulf %281, %285 : vector<16x32xf32>
    %287 = vector.broadcast %37 : vector<1x32xf32> to vector<16x32xf32>
    %288 = arith.mulf %286, %287 : vector<16x32xf32>
    %289 = vector.broadcast %38 : vector<1x32xf32> to vector<16x32xf32>
    %290 = arith.addf %288, %289 : vector<16x32xf32>
    %c1 = arith.constant 1 : index
    %c0_79 = arith.constant 0 : index
    %c0_80 = arith.constant 0 : index
    %291 = vector.load %arg3[%c1, %c0_79, %c0_80] : memref<2x8x128xf32, #tpu.memory_space<vmem>>, vector<1x8x128xf32>
    %292 = vector.shape_cast %291 : vector<1x8x128xf32> to vector<8x128xf32>
    %293 = vector.extract_strided_slice %292 {offsets = [0, 0], sizes = [1, 96], strides = [1, 1]} : vector<8x128xf32> to vector<1x96xf32>
    %294 = vector.extract_strided_slice %292 {offsets = [1, 0], sizes = [1, 32], strides = [1, 1]} : vector<8x128xf32> to vector<1x32xf32>
    %295 = vector.extract_strided_slice %292 {offsets = [2, 0], sizes = [1, 32], strides = [1, 1]} : vector<8x128xf32> to vector<1x32xf32>
    %296 = vector.extract_strided_slice %292 {offsets = [3, 0], sizes = [1, 32], strides = [1, 1]} : vector<8x128xf32> to vector<1x32xf32>
    %297 = vector.extract_strided_slice %292 {offsets = [4, 0], sizes = [1, 64], strides = [1, 1]} : vector<8x128xf32> to vector<1x64xf32>
    %298 = vector.extract_strided_slice %292 {offsets = [5, 0], sizes = [1, 32], strides = [1, 1]} : vector<8x128xf32> to vector<1x32xf32>
    %299 = vector.extract_strided_slice %292 {offsets = [6, 0], sizes = [1, 32], strides = [1, 1]} : vector<8x128xf32> to vector<1x32xf32>
    %300 = vector.extract_strided_slice %292 {offsets = [7, 0], sizes = [1, 32], strides = [1, 1]} : vector<8x128xf32> to vector<1x32xf32>
    %c1_81 = arith.constant 1 : index
    %c0_82 = arith.constant 0 : index
    %c0_83 = arith.constant 0 : index
    %301 = vector.load %arg5[%c1_81, %c0_82, %c0_83] : memref<2x32x96xbf16, #tpu.memory_space<vmem>>, vector<1x32x96xbf16>
    %302 = vector.shape_cast %301 : vector<1x32x96xbf16> to vector<32x96xbf16>
    %303 = arith.truncf %290 : vector<16x32xf32> to vector<16x32xbf16>
    %cst_84 = arith.constant dense<0.000000e+00> : vector<16x96xf32>
    %304 = tpu.matmul %303, %302, %cst_84 {dimension_numbers = #tpu.dot_dimension_numbers<[1], [0], [0], [1], [0, 0, 1, 1], [], []>} : vector<16x32xbf16>, vector<32x96xbf16>, vector<16x96xf32> -> vector<16x96xf32>
    %305 = vector.broadcast %293 : vector<1x96xf32> to vector<16x96xf32>
    %306 = arith.addf %304, %305 : vector<16x96xf32>
    %307 = vector.extract_strided_slice %306 {offsets = [0, 0], sizes = [16, 32], strides = [1, 1]} : vector<16x96xf32> to vector<16x32xf32>
    %cst_85 = arith.constant 0.353553385 : f32
    %308 = vector.broadcast %cst_85 : f32 to vector<16x32xf32>
    %309 = arith.mulf %307, %308 : vector<16x32xf32>
    %310 = arith.truncf %309 : vector<16x32xf32> to vector<16x32xbf16>
    %311 = vector.extract_strided_slice %306 {offsets = [0, 32], sizes = [16, 32], strides = [1, 1]} : vector<16x96xf32> to vector<16x32xf32>
    %312 = arith.truncf %311 : vector<16x32xf32> to vector<16x32xbf16>
    %313 = vector.extract_strided_slice %306 {offsets = [0, 64], sizes = [16, 32], strides = [1, 1]} : vector<16x96xf32> to vector<16x32xf32>
    %314 = arith.truncf %313 : vector<16x32xf32> to vector<16x32xbf16>
    %315 = vector.extract_strided_slice %310 {offsets = [0, 0], sizes = [8, 32], strides = [1, 1]} : vector<16x32xbf16> to vector<8x32xbf16>
    %316 = vector.extract_strided_slice %312 {offsets = [0, 0], sizes = [8, 32], strides = [1, 1]} : vector<16x32xbf16> to vector<8x32xbf16>
    %317 = vector.extract_strided_slice %314 {offsets = [0, 0], sizes = [8, 32], strides = [1, 1]} : vector<16x32xbf16> to vector<8x32xbf16>
    %318 = vector.extract_strided_slice %1 {offsets = [0, 0, 0], sizes = [1, 1, 8], strides = [1, 1, 1]} : vector<2x1x8xf32> to vector<1x1x8xf32>
    %319 = vector.shape_cast %318 : vector<1x1x8xf32> to vector<1x8xf32>
    %320 = vector.extract_strided_slice %315 {offsets = [0, 0], sizes = [8, 8], strides = [1, 1]} : vector<8x32xbf16> to vector<8x8xbf16>
    %321 = vector.extract_strided_slice %316 {offsets = [0, 0], sizes = [8, 8], strides = [1, 1]} : vector<8x32xbf16> to vector<8x8xbf16>
    %322 = vector.extract_strided_slice %317 {offsets = [0, 0], sizes = [8, 8], strides = [1, 1]} : vector<8x32xbf16> to vector<8x8xbf16>
    %cst_86 = arith.constant dense<0.000000e+00> : vector<8x8xf32>
    %323 = tpu.matmul %320, %321, %cst_86 {dimension_numbers = #tpu.dot_dimension_numbers<[1], [1], [0], [0], [0, 0, 1, 0], [], []>} : vector<8x8xbf16>, vector<8x8xbf16>, vector<8x8xf32> -> vector<8x8xf32>
    %324 = vector.broadcast %319 : vector<1x8xf32> to vector<8x8xf32>
    %325 = arith.addf %323, %324 : vector<8x8xf32>
    %cst_87 = arith.constant dense<0xFF800000> : vector<8xf32>
    %326 = vector.multi_reduction <maximumf>, %325, %cst_87 [1] : vector<8x8xf32> to vector<8xf32>
    %327 = vector.shape_cast %326 : vector<8xf32> to vector<8x1xf32>
    %328 = vector.broadcast %327 : vector<8x1xf32> to vector<8x8xf32>
    %329 = arith.subf %325, %328 : vector<8x8xf32>
    %330 = math.exp %329 : vector<8x8xf32>
    %cst_88 = arith.constant dense<0.000000e+00> : vector<8xf32>
    %331 = vector.multi_reduction <add>, %330, %cst_88 [1] : vector<8x8xf32> to vector<8xf32>
    %332 = vector.shape_cast %331 : vector<8xf32> to vector<8x1xf32>
    %333 = tpu.reciprocal %332 {approx = true} : vector<8x1xf32> -> vector<8x1xf32>
    %334 = vector.broadcast %333 : vector<8x1xf32> to vector<8x8xf32>
    %335 = arith.mulf %330, %334 : vector<8x8xf32>
    %336 = arith.truncf %335 : vector<8x8xf32> to vector<8x8xbf16>
    %cst_89 = arith.constant dense<0.000000e+00> : vector<8x8xf32>
    %337 = tpu.matmul %336, %322, %cst_89 {dimension_numbers = #tpu.dot_dimension_numbers<[1], [0], [0], [1], [0, 0, 1, 1], [], []>} : vector<8x8xbf16>, vector<8x8xbf16>, vector<8x8xf32> -> vector<8x8xf32>
    %338 = vector.extract_strided_slice %315 {offsets = [0, 8], sizes = [8, 8], strides = [1, 1]} : vector<8x32xbf16> to vector<8x8xbf16>
    %339 = vector.extract_strided_slice %316 {offsets = [0, 8], sizes = [8, 8], strides = [1, 1]} : vector<8x32xbf16> to vector<8x8xbf16>
    %340 = vector.extract_strided_slice %317 {offsets = [0, 8], sizes = [8, 8], strides = [1, 1]} : vector<8x32xbf16> to vector<8x8xbf16>
    %cst_90 = arith.constant dense<0.000000e+00> : vector<8x8xf32>
    %341 = tpu.matmul %338, %339, %cst_90 {dimension_numbers = #tpu.dot_dimension_numbers<[1], [1], [0], [0], [0, 0, 1, 0], [], []>} : vector<8x8xbf16>, vector<8x8xbf16>, vector<8x8xf32> -> vector<8x8xf32>
    %342 = vector.broadcast %319 : vector<1x8xf32> to vector<8x8xf32>
    %343 = arith.addf %341, %342 : vector<8x8xf32>
    %cst_91 = arith.constant dense<0xFF800000> : vector<8xf32>
    %344 = vector.multi_reduction <maximumf>, %343, %cst_91 [1] : vector<8x8xf32> to vector<8xf32>
    %345 = vector.shape_cast %344 : vector<8xf32> to vector<8x1xf32>
    %346 = vector.broadcast %345 : vector<8x1xf32> to vector<8x8xf32>
    %347 = arith.subf %343, %346 : vector<8x8xf32>
    %348 = math.exp %347 : vector<8x8xf32>
    %cst_92 = arith.constant dense<0.000000e+00> : vector<8xf32>
    %349 = vector.multi_reduction <add>, %348, %cst_92 [1] : vector<8x8xf32> to vector<8xf32>
    %350 = vector.shape_cast %349 : vector<8xf32> to vector<8x1xf32>
    %351 = tpu.reciprocal %350 {approx = true} : vector<8x1xf32> -> vector<8x1xf32>
    %352 = vector.broadcast %351 : vector<8x1xf32> to vector<8x8xf32>
    %353 = arith.mulf %348, %352 : vector<8x8xf32>
    %354 = arith.truncf %353 : vector<8x8xf32> to vector<8x8xbf16>
    %cst_93 = arith.constant dense<0.000000e+00> : vector<8x8xf32>
    %355 = tpu.matmul %354, %340, %cst_93 {dimension_numbers = #tpu.dot_dimension_numbers<[1], [0], [0], [1], [0, 0, 1, 1], [], []>} : vector<8x8xbf16>, vector<8x8xbf16>, vector<8x8xf32> -> vector<8x8xf32>
    %356 = vector.extract_strided_slice %315 {offsets = [0, 16], sizes = [8, 8], strides = [1, 1]} : vector<8x32xbf16> to vector<8x8xbf16>
    %357 = vector.extract_strided_slice %316 {offsets = [0, 16], sizes = [8, 8], strides = [1, 1]} : vector<8x32xbf16> to vector<8x8xbf16>
    %358 = vector.extract_strided_slice %317 {offsets = [0, 16], sizes = [8, 8], strides = [1, 1]} : vector<8x32xbf16> to vector<8x8xbf16>
    %cst_94 = arith.constant dense<0.000000e+00> : vector<8x8xf32>
    %359 = tpu.matmul %356, %357, %cst_94 {dimension_numbers = #tpu.dot_dimension_numbers<[1], [1], [0], [0], [0, 0, 1, 0], [], []>} : vector<8x8xbf16>, vector<8x8xbf16>, vector<8x8xf32> -> vector<8x8xf32>
    %360 = vector.broadcast %319 : vector<1x8xf32> to vector<8x8xf32>
    %361 = arith.addf %359, %360 : vector<8x8xf32>
    %cst_95 = arith.constant dense<0xFF800000> : vector<8xf32>
    %362 = vector.multi_reduction <maximumf>, %361, %cst_95 [1] : vector<8x8xf32> to vector<8xf32>
    %363 = vector.shape_cast %362 : vector<8xf32> to vector<8x1xf32>
    %364 = vector.broadcast %363 : vector<8x1xf32> to vector<8x8xf32>
    %365 = arith.subf %361, %364 : vector<8x8xf32>
    %366 = math.exp %365 : vector<8x8xf32>
    %cst_96 = arith.constant dense<0.000000e+00> : vector<8xf32>
    %367 = vector.multi_reduction <add>, %366, %cst_96 [1] : vector<8x8xf32> to vector<8xf32>
    %368 = vector.shape_cast %367 : vector<8xf32> to vector<8x1xf32>
    %369 = tpu.reciprocal %368 {approx = true} : vector<8x1xf32> -> vector<8x1xf32>
    %370 = vector.broadcast %369 : vector<8x1xf32> to vector<8x8xf32>
    %371 = arith.mulf %366, %370 : vector<8x8xf32>
    %372 = arith.truncf %371 : vector<8x8xf32> to vector<8x8xbf16>
    %cst_97 = arith.constant dense<0.000000e+00> : vector<8x8xf32>
    %373 = tpu.matmul %372, %358, %cst_97 {dimension_numbers = #tpu.dot_dimension_numbers<[1], [0], [0], [1], [0, 0, 1, 1], [], []>} : vector<8x8xbf16>, vector<8x8xbf16>, vector<8x8xf32> -> vector<8x8xf32>
    %374 = vector.extract_strided_slice %315 {offsets = [0, 24], sizes = [8, 8], strides = [1, 1]} : vector<8x32xbf16> to vector<8x8xbf16>
    %375 = vector.extract_strided_slice %316 {offsets = [0, 24], sizes = [8, 8], strides = [1, 1]} : vector<8x32xbf16> to vector<8x8xbf16>
    %376 = vector.extract_strided_slice %317 {offsets = [0, 24], sizes = [8, 8], strides = [1, 1]} : vector<8x32xbf16> to vector<8x8xbf16>
    %cst_98 = arith.constant dense<0.000000e+00> : vector<8x8xf32>
    %377 = tpu.matmul %374, %375, %cst_98 {dimension_numbers = #tpu.dot_dimension_numbers<[1], [1], [0], [0], [0, 0, 1, 0], [], []>} : vector<8x8xbf16>, vector<8x8xbf16>, vector<8x8xf32> -> vector<8x8xf32>
    %378 = vector.broadcast %319 : vector<1x8xf32> to vector<8x8xf32>
    %379 = arith.addf %377, %378 : vector<8x8xf32>
    %cst_99 = arith.constant dense<0xFF800000> : vector<8xf32>
    %380 = vector.multi_reduction <maximumf>, %379, %cst_99 [1] : vector<8x8xf32> to vector<8xf32>
    %381 = vector.shape_cast %380 : vector<8xf32> to vector<8x1xf32>
    %382 = vector.broadcast %381 : vector<8x1xf32> to vector<8x8xf32>
    %383 = arith.subf %379, %382 : vector<8x8xf32>
    %384 = math.exp %383 : vector<8x8xf32>
    %cst_100 = arith.constant dense<0.000000e+00> : vector<8xf32>
    %385 = vector.multi_reduction <add>, %384, %cst_100 [1] : vector<8x8xf32> to vector<8xf32>
    %386 = vector.shape_cast %385 : vector<8xf32> to vector<8x1xf32>
    %387 = tpu.reciprocal %386 {approx = true} : vector<8x1xf32> -> vector<8x1xf32>
    %388 = vector.broadcast %387 : vector<8x1xf32> to vector<8x8xf32>
    %389 = arith.mulf %384, %388 : vector<8x8xf32>
    %390 = arith.truncf %389 : vector<8x8xf32> to vector<8x8xbf16>
    %cst_101 = arith.constant dense<0.000000e+00> : vector<8x8xf32>
    %391 = tpu.matmul %390, %376, %cst_101 {dimension_numbers = #tpu.dot_dimension_numbers<[1], [0], [0], [1], [0, 0, 1, 1], [], []>} : vector<8x8xbf16>, vector<8x8xbf16>, vector<8x8xf32> -> vector<8x8xf32>
    %392 = tpu.concatenate %337, %355, %373, %391 in 1 : vector<8x8xf32>, vector<8x8xf32>, vector<8x8xf32>, vector<8x8xf32> -> vector<8x32xf32>
    %393 = vector.extract_strided_slice %310 {offsets = [8, 0], sizes = [8, 32], strides = [1, 1]} : vector<16x32xbf16> to vector<8x32xbf16>
    %394 = vector.extract_strided_slice %312 {offsets = [8, 0], sizes = [8, 32], strides = [1, 1]} : vector<16x32xbf16> to vector<8x32xbf16>
    %395 = vector.extract_strided_slice %314 {offsets = [8, 0], sizes = [8, 32], strides = [1, 1]} : vector<16x32xbf16> to vector<8x32xbf16>
    %396 = vector.extract_strided_slice %1 {offsets = [1, 0, 0], sizes = [1, 1, 8], strides = [1, 1, 1]} : vector<2x1x8xf32> to vector<1x1x8xf32>
    %397 = vector.shape_cast %396 : vector<1x1x8xf32> to vector<1x8xf32>
    %398 = vector.extract_strided_slice %393 {offsets = [0, 0], sizes = [8, 8], strides = [1, 1]} : vector<8x32xbf16> to vector<8x8xbf16>
    %399 = vector.extract_strided_slice %394 {offsets = [0, 0], sizes = [8, 8], strides = [1, 1]} : vector<8x32xbf16> to vector<8x8xbf16>
    %400 = vector.extract_strided_slice %395 {offsets = [0, 0], sizes = [8, 8], strides = [1, 1]} : vector<8x32xbf16> to vector<8x8xbf16>
    %cst_102 = arith.constant dense<0.000000e+00> : vector<8x8xf32>
    %401 = tpu.matmul %398, %399, %cst_102 {dimension_numbers = #tpu.dot_dimension_numbers<[1], [1], [0], [0], [0, 0, 1, 0], [], []>} : vector<8x8xbf16>, vector<8x8xbf16>, vector<8x8xf32> -> vector<8x8xf32>
    %402 = vector.broadcast %397 : vector<1x8xf32> to vector<8x8xf32>
    %403 = arith.addf %401, %402 : vector<8x8xf32>
    %cst_103 = arith.constant dense<0xFF800000> : vector<8xf32>
    %404 = vector.multi_reduction <maximumf>, %403, %cst_103 [1] : vector<8x8xf32> to vector<8xf32>
    %405 = vector.shape_cast %404 : vector<8xf32> to vector<8x1xf32>
    %406 = vector.broadcast %405 : vector<8x1xf32> to vector<8x8xf32>
    %407 = arith.subf %403, %406 : vector<8x8xf32>
    %408 = math.exp %407 : vector<8x8xf32>
    %cst_104 = arith.constant dense<0.000000e+00> : vector<8xf32>
    %409 = vector.multi_reduction <add>, %408, %cst_104 [1] : vector<8x8xf32> to vector<8xf32>
    %410 = vector.shape_cast %409 : vector<8xf32> to vector<8x1xf32>
    %411 = tpu.reciprocal %410 {approx = true} : vector<8x1xf32> -> vector<8x1xf32>
    %412 = vector.broadcast %411 : vector<8x1xf32> to vector<8x8xf32>
    %413 = arith.mulf %408, %412 : vector<8x8xf32>
    %414 = arith.truncf %413 : vector<8x8xf32> to vector<8x8xbf16>
    %cst_105 = arith.constant dense<0.000000e+00> : vector<8x8xf32>
    %415 = tpu.matmul %414, %400, %cst_105 {dimension_numbers = #tpu.dot_dimension_numbers<[1], [0], [0], [1], [0, 0, 1, 1], [], []>} : vector<8x8xbf16>, vector<8x8xbf16>, vector<8x8xf32> -> vector<8x8xf32>
    %416 = vector.extract_strided_slice %393 {offsets = [0, 8], sizes = [8, 8], strides = [1, 1]} : vector<8x32xbf16> to vector<8x8xbf16>
    %417 = vector.extract_strided_slice %394 {offsets = [0, 8], sizes = [8, 8], strides = [1, 1]} : vector<8x32xbf16> to vector<8x8xbf16>
    %418 = vector.extract_strided_slice %395 {offsets = [0, 8], sizes = [8, 8], strides = [1, 1]} : vector<8x32xbf16> to vector<8x8xbf16>
    %cst_106 = arith.constant dense<0.000000e+00> : vector<8x8xf32>
    %419 = tpu.matmul %416, %417, %cst_106 {dimension_numbers = #tpu.dot_dimension_numbers<[1], [1], [0], [0], [0, 0, 1, 0], [], []>} : vector<8x8xbf16>, vector<8x8xbf16>, vector<8x8xf32> -> vector<8x8xf32>
    %420 = vector.broadcast %397 : vector<1x8xf32> to vector<8x8xf32>
    %421 = arith.addf %419, %420 : vector<8x8xf32>
    %cst_107 = arith.constant dense<0xFF800000> : vector<8xf32>
    %422 = vector.multi_reduction <maximumf>, %421, %cst_107 [1] : vector<8x8xf32> to vector<8xf32>
    %423 = vector.shape_cast %422 : vector<8xf32> to vector<8x1xf32>
    %424 = vector.broadcast %423 : vector<8x1xf32> to vector<8x8xf32>
    %425 = arith.subf %421, %424 : vector<8x8xf32>
    %426 = math.exp %425 : vector<8x8xf32>
    %cst_108 = arith.constant dense<0.000000e+00> : vector<8xf32>
    %427 = vector.multi_reduction <add>, %426, %cst_108 [1] : vector<8x8xf32> to vector<8xf32>
    %428 = vector.shape_cast %427 : vector<8xf32> to vector<8x1xf32>
    %429 = tpu.reciprocal %428 {approx = true} : vector<8x1xf32> -> vector<8x1xf32>
    %430 = vector.broadcast %429 : vector<8x1xf32> to vector<8x8xf32>
    %431 = arith.mulf %426, %430 : vector<8x8xf32>
    %432 = arith.truncf %431 : vector<8x8xf32> to vector<8x8xbf16>
    %cst_109 = arith.constant dense<0.000000e+00> : vector<8x8xf32>
    %433 = tpu.matmul %432, %418, %cst_109 {dimension_numbers = #tpu.dot_dimension_numbers<[1], [0], [0], [1], [0, 0, 1, 1], [], []>} : vector<8x8xbf16>, vector<8x8xbf16>, vector<8x8xf32> -> vector<8x8xf32>
    %434 = vector.extract_strided_slice %393 {offsets = [0, 16], sizes = [8, 8], strides = [1, 1]} : vector<8x32xbf16> to vector<8x8xbf16>
    %435 = vector.extract_strided_slice %394 {offsets = [0, 16], sizes = [8, 8], strides = [1, 1]} : vector<8x32xbf16> to vector<8x8xbf16>
    %436 = vector.extract_strided_slice %395 {offsets = [0, 16], sizes = [8, 8], strides = [1, 1]} : vector<8x32xbf16> to vector<8x8xbf16>
    %cst_110 = arith.constant dense<0.000000e+00> : vector<8x8xf32>
    %437 = tpu.matmul %434, %435, %cst_110 {dimension_numbers = #tpu.dot_dimension_numbers<[1], [1], [0], [0], [0, 0, 1, 0], [], []>} : vector<8x8xbf16>, vector<8x8xbf16>, vector<8x8xf32> -> vector<8x8xf32>
    %438 = vector.broadcast %397 : vector<1x8xf32> to vector<8x8xf32>
    %439 = arith.addf %437, %438 : vector<8x8xf32>
    %cst_111 = arith.constant dense<0xFF800000> : vector<8xf32>
    %440 = vector.multi_reduction <maximumf>, %439, %cst_111 [1] : vector<8x8xf32> to vector<8xf32>
    %441 = vector.shape_cast %440 : vector<8xf32> to vector<8x1xf32>
    %442 = vector.broadcast %441 : vector<8x1xf32> to vector<8x8xf32>
    %443 = arith.subf %439, %442 : vector<8x8xf32>
    %444 = math.exp %443 : vector<8x8xf32>
    %cst_112 = arith.constant dense<0.000000e+00> : vector<8xf32>
    %445 = vector.multi_reduction <add>, %444, %cst_112 [1] : vector<8x8xf32> to vector<8xf32>
    %446 = vector.shape_cast %445 : vector<8xf32> to vector<8x1xf32>
    %447 = tpu.reciprocal %446 {approx = true} : vector<8x1xf32> -> vector<8x1xf32>
    %448 = vector.broadcast %447 : vector<8x1xf32> to vector<8x8xf32>
    %449 = arith.mulf %444, %448 : vector<8x8xf32>
    %450 = arith.truncf %449 : vector<8x8xf32> to vector<8x8xbf16>
    %cst_113 = arith.constant dense<0.000000e+00> : vector<8x8xf32>
    %451 = tpu.matmul %450, %436, %cst_113 {dimension_numbers = #tpu.dot_dimension_numbers<[1], [0], [0], [1], [0, 0, 1, 1], [], []>} : vector<8x8xbf16>, vector<8x8xbf16>, vector<8x8xf32> -> vector<8x8xf32>
    %452 = vector.extract_strided_slice %393 {offsets = [0, 24], sizes = [8, 8], strides = [1, 1]} : vector<8x32xbf16> to vector<8x8xbf16>
    %453 = vector.extract_strided_slice %394 {offsets = [0, 24], sizes = [8, 8], strides = [1, 1]} : vector<8x32xbf16> to vector<8x8xbf16>
    %454 = vector.extract_strided_slice %395 {offsets = [0, 24], sizes = [8, 8], strides = [1, 1]} : vector<8x32xbf16> to vector<8x8xbf16>
    %cst_114 = arith.constant dense<0.000000e+00> : vector<8x8xf32>
    %455 = tpu.matmul %452, %453, %cst_114 {dimension_numbers = #tpu.dot_dimension_numbers<[1], [1], [0], [0], [0, 0, 1, 0], [], []>} : vector<8x8xbf16>, vector<8x8xbf16>, vector<8x8xf32> -> vector<8x8xf32>
    %456 = vector.broadcast %397 : vector<1x8xf32> to vector<8x8xf32>
    %457 = arith.addf %455, %456 : vector<8x8xf32>
    %cst_115 = arith.constant dense<0xFF800000> : vector<8xf32>
    %458 = vector.multi_reduction <maximumf>, %457, %cst_115 [1] : vector<8x8xf32> to vector<8xf32>
    %459 = vector.shape_cast %458 : vector<8xf32> to vector<8x1xf32>
    %460 = vector.broadcast %459 : vector<8x1xf32> to vector<8x8xf32>
    %461 = arith.subf %457, %460 : vector<8x8xf32>
    %462 = math.exp %461 : vector<8x8xf32>
    %cst_116 = arith.constant dense<0.000000e+00> : vector<8xf32>
    %463 = vector.multi_reduction <add>, %462, %cst_116 [1] : vector<8x8xf32> to vector<8xf32>
    %464 = vector.shape_cast %463 : vector<8xf32> to vector<8x1xf32>
    %465 = tpu.reciprocal %464 {approx = true} : vector<8x1xf32> -> vector<8x1xf32>
    %466 = vector.broadcast %465 : vector<8x1xf32> to vector<8x8xf32>
    %467 = arith.mulf %462, %466 : vector<8x8xf32>
    %468 = arith.truncf %467 : vector<8x8xf32> to vector<8x8xbf16>
    %cst_117 = arith.constant dense<0.000000e+00> : vector<8x8xf32>
    %469 = tpu.matmul %468, %454, %cst_117 {dimension_numbers = #tpu.dot_dimension_numbers<[1], [0], [0], [1], [0, 0, 1, 1], [], []>} : vector<8x8xbf16>, vector<8x8xbf16>, vector<8x8xf32> -> vector<8x8xf32>
    %470 = tpu.concatenate %415, %433, %451, %469 in 1 : vector<8x8xf32>, vector<8x8xf32>, vector<8x8xf32>, vector<8x8xf32> -> vector<8x32xf32>
    %471 = tpu.concatenate %392, %470 in 0 : vector<8x32xf32>, vector<8x32xf32> -> vector<16x32xf32>
    %c1_118 = arith.constant 1 : index
    %c0_119 = arith.constant 0 : index
    %c0_120 = arith.constant 0 : index
    %472 = vector.load %arg6[%c1_118, %c0_119, %c0_120] : memref<2x32x32xbf16, #tpu.memory_space<vmem>>, vector<1x32x32xbf16>
    %473 = vector.shape_cast %472 : vector<1x32x32xbf16> to vector<32x32xbf16>
    %474 = arith.truncf %471 : vector<16x32xf32> to vector<16x32xbf16>
    %cst_121 = arith.constant dense<0.000000e+00> : vector<16x32xf32>
    %475 = tpu.matmul %474, %473, %cst_121 {dimension_numbers = #tpu.dot_dimension_numbers<[1], [0], [0], [1], [0, 0, 1, 1], [], []>} : vector<16x32xbf16>, vector<32x32xbf16>, vector<16x32xf32> -> vector<16x32xf32>
    %476 = vector.broadcast %294 : vector<1x32xf32> to vector<16x32xf32>
    %477 = arith.addf %475, %476 : vector<16x32xf32>
    %478 = arith.addf %290, %477 : vector<16x32xf32>
    %cst_122 = arith.constant dense<0.000000e+00> : vector<16xf32>
    %479 = vector.multi_reduction <add>, %478, %cst_122 [1] : vector<16x32xf32> to vector<16xf32>
    %480 = vector.shape_cast %479 : vector<16xf32> to vector<16x1xf32>
    %cst_123 = arith.constant 3.200000e+01 : f32
    %481 = vector.broadcast %cst_123 : f32 to vector<16x1xf32>
    %482 = arith.divf %480, %481 : vector<16x1xf32>
    %483 = arith.mulf %478, %478 : vector<16x32xf32>
    %cst_124 = arith.constant dense<0.000000e+00> : vector<16xf32>
    %484 = vector.multi_reduction <add>, %483, %cst_124 [1] : vector<16x32xf32> to vector<16xf32>
    %485 = vector.shape_cast %484 : vector<16xf32> to vector<16x1xf32>
    %cst_125 = arith.constant 3.200000e+01 : f32
    %486 = vector.broadcast %cst_125 : f32 to vector<16x1xf32>
    %487 = arith.divf %485, %486 : vector<16x1xf32>
    %488 = arith.mulf %482, %482 : vector<16x1xf32>
    %489 = arith.subf %487, %488 : vector<16x1xf32>
    %cst_126 = arith.constant 0.000000e+00 : f32
    %490 = vector.broadcast %cst_126 : f32 to vector<16x1xf32>
    %491 = arith.maximumf %489, %490 : vector<16x1xf32>
    %492 = vector.broadcast %482 : vector<16x1xf32> to vector<16x32xf32>
    %493 = arith.subf %478, %492 : vector<16x32xf32>
    %cst_127 = arith.constant 9.99999996E-13 : f32
    %494 = vector.broadcast %cst_127 : f32 to vector<16x1xf32>
    %495 = arith.addf %491, %494 : vector<16x1xf32>
    %496 = math.rsqrt %495 : vector<16x1xf32>
    %497 = vector.broadcast %496 : vector<16x1xf32> to vector<16x32xf32>
    %498 = arith.mulf %493, %497 : vector<16x32xf32>
    %499 = vector.broadcast %295 : vector<1x32xf32> to vector<16x32xf32>
    %500 = arith.mulf %498, %499 : vector<16x32xf32>
    %501 = vector.broadcast %296 : vector<1x32xf32> to vector<16x32xf32>
    %502 = arith.addf %500, %501 : vector<16x32xf32>
    %c1_128 = arith.constant 1 : index
    %c0_129 = arith.constant 0 : index
    %c0_130 = arith.constant 0 : index
    %503 = vector.load %arg7[%c1_128, %c0_129, %c0_130] : memref<2x32x64xbf16, #tpu.memory_space<vmem>>, vector<1x32x64xbf16>
    %504 = vector.shape_cast %503 : vector<1x32x64xbf16> to vector<32x64xbf16>
    %505 = arith.truncf %502 : vector<16x32xf32> to vector<16x32xbf16>
    %cst_131 = arith.constant dense<0.000000e+00> : vector<16x64xf32>
    %506 = tpu.matmul %505, %504, %cst_131 {dimension_numbers = #tpu.dot_dimension_numbers<[1], [0], [0], [1], [0, 0, 1, 1], [], []>} : vector<16x32xbf16>, vector<32x64xbf16>, vector<16x64xf32> -> vector<16x64xf32>
    %507 = vector.broadcast %297 : vector<1x64xf32> to vector<16x64xf32>
    %508 = arith.addf %506, %507 : vector<16x64xf32>
    %cst_132 = arith.constant 5.000000e-01 : f32
    %509 = vector.broadcast %cst_132 : f32 to vector<16x64xf32>
    %510 = arith.mulf %509, %508 : vector<16x64xf32>
    %cst_133 = arith.constant 4.471500e-02 : f32
    %511 = vector.broadcast %cst_133 : f32 to vector<16x64xf32>
    %512 = arith.mulf %511, %508 : vector<16x64xf32>
    %513 = arith.mulf %512, %508 : vector<16x64xf32>
    %514 = arith.mulf %513, %508 : vector<16x64xf32>
    %515 = arith.addf %508, %514 : vector<16x64xf32>
    %cst_134 = arith.constant 0.797884583 : f32
    %516 = vector.broadcast %cst_134 : f32 to vector<16x64xf32>
    %517 = arith.mulf %516, %515 : vector<16x64xf32>
    %518 = math.tanh %517 : vector<16x64xf32>
    %cst_135 = arith.constant 1.000000e+00 : f32
    %519 = vector.broadcast %cst_135 : f32 to vector<16x64xf32>
    %520 = arith.addf %519, %518 : vector<16x64xf32>
    %521 = arith.mulf %510, %520 : vector<16x64xf32>
    %c1_136 = arith.constant 1 : index
    %c0_137 = arith.constant 0 : index
    %c0_138 = arith.constant 0 : index
    %522 = vector.load %arg8[%c1_136, %c0_137, %c0_138] : memref<2x64x32xbf16, #tpu.memory_space<vmem>>, vector<1x64x32xbf16>
    %523 = vector.shape_cast %522 : vector<1x64x32xbf16> to vector<64x32xbf16>
    %524 = arith.truncf %521 : vector<16x64xf32> to vector<16x64xbf16>
    %cst_139 = arith.constant dense<0.000000e+00> : vector<16x32xf32>
    %525 = tpu.matmul %524, %523, %cst_139 {dimension_numbers = #tpu.dot_dimension_numbers<[1], [0], [0], [1], [0, 0, 1, 1], [], []>} : vector<16x64xbf16>, vector<64x32xbf16>, vector<16x32xf32> -> vector<16x32xf32>
    %526 = vector.broadcast %298 : vector<1x32xf32> to vector<16x32xf32>
    %527 = arith.addf %525, %526 : vector<16x32xf32>
    %528 = arith.addf %502, %527 : vector<16x32xf32>
    %cst_140 = arith.constant dense<0.000000e+00> : vector<16xf32>
    %529 = vector.multi_reduction <add>, %528, %cst_140 [1] : vector<16x32xf32> to vector<16xf32>
    %530 = vector.shape_cast %529 : vector<16xf32> to vector<16x1xf32>
    %cst_141 = arith.constant 3.200000e+01 : f32
    %531 = vector.broadcast %cst_141 : f32 to vector<16x1xf32>
    %532 = arith.divf %530, %531 : vector<16x1xf32>
    %533 = arith.mulf %528, %528 : vector<16x32xf32>
    %cst_142 = arith.constant dense<0.000000e+00> : vector<16xf32>
    %534 = vector.multi_reduction <add>, %533, %cst_142 [1] : vector<16x32xf32> to vector<16xf32>
    %535 = vector.shape_cast %534 : vector<16xf32> to vector<16x1xf32>
    %cst_143 = arith.constant 3.200000e+01 : f32
    %536 = vector.broadcast %cst_143 : f32 to vector<16x1xf32>
    %537 = arith.divf %535, %536 : vector<16x1xf32>
    %538 = arith.mulf %532, %532 : vector<16x1xf32>
    %539 = arith.subf %537, %538 : vector<16x1xf32>
    %cst_144 = arith.constant 0.000000e+00 : f32
    %540 = vector.broadcast %cst_144 : f32 to vector<16x1xf32>
    %541 = arith.maximumf %539, %540 : vector<16x1xf32>
    %542 = vector.broadcast %532 : vector<16x1xf32> to vector<16x32xf32>
    %543 = arith.subf %528, %542 : vector<16x32xf32>
    %cst_145 = arith.constant 9.99999996E-13 : f32
    %544 = vector.broadcast %cst_145 : f32 to vector<16x1xf32>
    %545 = arith.addf %541, %544 : vector<16x1xf32>
    %546 = math.rsqrt %545 : vector<16x1xf32>
    %547 = vector.broadcast %546 : vector<16x1xf32> to vector<16x32xf32>
    %548 = arith.mulf %543, %547 : vector<16x32xf32>
    %549 = vector.broadcast %299 : vector<1x32xf32> to vector<16x32xf32>
    %550 = arith.mulf %548, %549 : vector<16x32xf32>
    %551 = vector.broadcast %300 : vector<1x32xf32> to vector<16x32xf32>
    %552 = arith.addf %550, %551 : vector<16x32xf32>
    %c0_146 = arith.constant 0 : index
    %c0_147 = arith.constant 0 : index
    %553 = vector.load %arg9[%c0_146, %c0_147] : memref<32x384xbf16, #tpu.memory_space<vmem>>, vector<32x384xbf16>
    %554 = arith.truncf %552 : vector<16x32xf32> to vector<16x32xbf16>
    %cst_148 = arith.constant dense<0.000000e+00> : vector<16x384xf32>
    %555 = tpu.matmul %554, %553, %cst_148 {dimension_numbers = #tpu.dot_dimension_numbers<[1], [0], [0], [1], [0, 0, 1, 1], [], []>} : vector<16x32xbf16>, vector<32x384xbf16>, vector<16x384xf32> -> vector<16x384xf32>
    %556 = vector.extract_strided_slice %2 {offsets = [2, 0], sizes = [1, 384], strides = [1, 1]} : vector<3x384xf32> to vector<1x384xf32>
    %557 = vector.broadcast %556 : vector<1x384xf32> to vector<16x384xf32>
    %558 = arith.addf %555, %557 : vector<16x384xf32>
    %cst_149 = arith.constant 0.000000e+00 : f32
    %559 = vector.broadcast %cst_149 : f32 to vector<16x384xf32>
    %560 = arith.maximumf %558, %559 : vector<16x384xf32>
    %c0_150 = arith.constant 0 : index
    %c0_151 = arith.constant 0 : index
    %561 = vector.load %arg10[%c0_150, %c0_151] : memref<16x384xf32, #tpu.memory_space<vmem>>, vector<16x384xf32>
    tpu.vector_store %arg10[%c0_150, %c0_151], %560 {strides = array<i32>} : memref<16x384xf32, #tpu.memory_space<vmem>>, vector<16x384xf32>,
    return
  }
  func.func @transform_0(%arg0: i32) -> (i32, i32) {
    %c0_i32 = arith.constant 0 : i32
    %c0_i32_0 = arith.constant 0 : i32
    return %arg0, %c0_i32 : i32, i32
  }
  func.func @transform_1(%arg0: i32) -> (i32, i32, i32) {
    %c0_i32 = arith.constant 0 : i32
    %c0_i32_0 = arith.constant 0 : i32
    %c0_i32_1 = arith.constant 0 : i32
    return %arg0, %c0_i32, %c0_i32_0 : i32, i32, i32
  }
  func.func @transform_2(%arg0: i32) -> (i32, i32, i32) {
    %c0_i32 = arith.constant 0 : i32
    %c0_i32_0 = arith.constant 0 : i32
    %c0_i32_1 = arith.constant 0 : i32
    %c0_i32_2 = arith.constant 0 : i32
    return %c0_i32, %c0_i32_0, %c0_i32_1 : i32, i32, i32
  }
  func.func @transform_3(%arg0: i32) -> (i32, i32) {
    %c0_i32 = arith.constant 0 : i32
    %c0_i32_0 = arith.constant 0 : i32
    %c0_i32_1 = arith.constant 0 : i32
    return %c0_i32, %c0_i32_0 : i32, i32
  }
  func.func @transform_4(%arg0: i32) -> (i32, i32, i32) {
    %c0_i32 = arith.constant 0 : i32
    %c0_i32_0 = arith.constant 0 : i32
    %c0_i32_1 = arith.constant 0 : i32
    %c0_i32_2 = arith.constant 0 : i32
    return %c0_i32, %c0_i32_0, %c0_i32_1 : i32, i32, i32
  }
  func.func @transform_5(%arg0: i32) -> (i32, i32, i32) {
    %c0_i32 = arith.constant 0 : i32
    %c0_i32_0 = arith.constant 0 : i32
    %c0_i32_1 = arith.constant 0 : i32
    %c0_i32_2 = arith.constant 0 : i32
    return %c0_i32, %c0_i32_0, %c0_i32_1 : i32, i32, i32
  }
  func.func @transform_6(%arg0: i32) -> (i32, i32, i32) {
    %c0_i32 = arith.constant 0 : i32
    %c0_i32_0 = arith.constant 0 : i32
    %c0_i32_1 = arith.constant 0 : i32
    %c0_i32_2 = arith.constant 0 : i32
    return %c0_i32, %c0_i32_0, %c0_i32_1 : i32, i32, i32
  }
  func.func @transform_7(%arg0: i32) -> (i32, i32, i32) {
    %c0_i32 = arith.constant 0 : i32
    %c0_i32_0 = arith.constant 0 : i32
    %c0_i32_1 = arith.constant 0 : i32
    %c0_i32_2 = arith.constant 0 : i32
    return %c0_i32, %c0_i32_0, %c0_i32_1 : i32, i32, i32
  }
  func.func @transform_8(%arg0: i32) -> (i32, i32) {
    %c0_i32 = arith.constant 0 : i32
    %c0_i32_0 = arith.constant 0 : i32
    %c0_i32_1 = arith.constant 0 : i32
    return %c0_i32, %c0_i32_0 : i32, i32
  }
  func.func @transform_9(%arg0: i32) -> (i32, i32) {
    %c0_i32 = arith.constant 0 : i32
    %c0_i32_0 = arith.constant 0 : i32
    return %arg0, %c0_i32 : i32, i32
  }
}

</mosaic_0001>

<bundles_post_ra>
// kernel: bert_forward.1
= control target key start
LH: loop header
LB: loop body
LE: loop exit
PB: predicated region body
PF: predicated region fallthrough
CT: control target
= control target key end

     0   :  { %vm40_vm0 = vcmask 261120   ;;  %s4257_s0 = inlined_call_operand.vmem [shape: f32[16,32], index: 0, kind: input, shape index: {}]   ;;  %s4258_s1 = inlined_call_operand.vmem [shape: f32[2,1,8], index: 1, kind: input, shape index: {}]   ;;  %s4259_s2 = inlined_call_operand.vmem [shape: f32[2,8,128], index: 2, kind: input, shape index: {}]   ;;  %s4260_s3 = inlined_call_operand.vmem [shape: f32[3,384], index: 3, kind: input, shape index: {}]   ;;  %s4261_s4 = inlined_call_operand.vmem [shape: bf16[2,32,96], index: 4, kind: input, shape index: {}]   ;;  %s4262_s5 = inlined_call_operand.vmem [shape: bf16[2,32,32], index: 5, kind: input, shape index: {}]   ;;  %s4263_s6 = inlined_call_operand.vmem [shape: bf16[2,32,64], index: 6, kind: input, shape index: {}]   ;;  %s4264_s7 = inlined_call_operand.vmem [shape: bf16[2,64,32], index: 7, kind: input, shape index: {}]   ;;  %s4265_s8 = inlined_call_operand.vmem [shape: bf16[32,384], index: 8, kind: input, shape index: {}]   ;;  %s4266_s9 = inlined_call_operand.hbm [shape: f32[16,384], index: 9, kind: output, shape index: {}]  }
   0x1   :  { %v34_v0 = vld [vmem:[%s4257_s0] sm:$0xff]  ;;  %v35_v1 = vld [vmem:[%s4257_s0 + $0x8] sm:$0xff] }
   0x2   :  { %v41_v2 = vsel %vm40_vm0, %v34_v0, 0.0  ;;  %v50_v3 = vmul.f32 %v34_v0, %v34_v0  ;;  %v44_v4 = vsel %vm40_vm0, %v35_v1, 0.0  ;;  %v51_v5 = vmul.f32 %v35_v1, %v35_v1 }
   0x3   :  { %42 = vadd.xlane.f32.xlu0 %v41_v2 }
   0x4   :  { %v52_v6 = vsel %vm40_vm0, %v50_v3, 0.0  ;;  %v55_v7 = vsel %vm40_vm0, %v51_v5, 0.0 }
   0x5   :  { %53 = vadd.xlane.f32.xlu1 %v52_v6 }
   0x7   :  { %45 = vadd.xlane.f32.xlu0 %v44_v4 }
   0x9   :  { %56 = vadd.xlane.f32.xlu1 %v55_v7 }
   0xa   :  { %14 = vsyncpa [#allocation3], 0  ;;  %v3402_v8 = vld [vmem:[%s4261_s4 + $0x8] sm:$0xff]   ;;  %v3548_v9 = vmov 0.0   ;;  %vm3549_vm1 = vmmov 0   ;;  %v3403_v10 = vld [vmem:[%s4261_s4] sm:$0xff]   ;;  %v74_v27 = vlaneseq }
   0xb   :  { %3081 = vmatprep.subr.bf16.mxu0 %v3548_v9  ;;  %3085 = vmatprep.mubr.msk.bf16.mxu0 %vm3549_vm1, %v3548_v9  ;;  %v38_v30 = vld [vmem:[%s4260_s3] sm:$0x77]  ;;  %s3550_s20 = smov 88   ;;  %s3551_s21 = smov 96   ;;  %vm165_vm2 = vcmask 64512   ;;  %vm229_vm3 = vcmask 1043456  }
   0xc   :  { %3082 = vmatpush3.bf16.msra.mxu0 %v3402_v8  ;;  %3089 = vmatprep.subr.bf16.mxu1 %v3548_v9  ;;  %v3641_v28 = vshrl.u32 %v74_v27, 7  ;;  %v3666_v45 = vld [vmem:[%s4259_s2] sm:$0xff]  ;;  %s3552_s22 = smov 112   ;;  %s3553_s23 = smov 120   ;;  %vm617_vm4 = vcmask 130048   ;;  %vm619_vm5 = vcmask 195584  }
   0xd   :  { %3083 = vmatprep.subr.bf16.mxu0 %v3548_v9  ;;  %3091 = vmatprep.mubr.msk.bf16.mxu1 %vm3549_vm1, %v3548_v9  ;;  %s3554_s24 = smov 104   ;;  %s3555_s25 = smov 80   ;;  %vm1313_vm6 = vcmask 523264  }
   0xe   :  { %v3644_v29 = vsub.s32 0, %v3641_v28  ;;  %v3651_v35 = vsub.s32 1, %v3641_v28  ;;  %s3556_s26 = smov 72   ;;  %s3557_s29 = smov 64  }
   0xf   :  { %s3558_s30 = smov 56   ;;  %s3559_s12 = smov 48  }
  0x10   :  { %3084 = vmatpush3.bf16.msra.mxu0 %v3403_v10  ;;  %v77_v34 = vrot.slane %v38_v30, %v3644_v29  ;;  %v83_v40 = vrot.slane %v38_v30, %v3651_v35  ;;  %v95_v47 = vrot.slane %v3666_v45, %v3644_v29  ;;  %s3560_s13 = smov 40   ;;  %s3561_s14 = smov 8  }
  0x11   :  { %3095 = vmatprep.subr.bf16.mxu0 %v3548_v9  ;;  %s3562_s16 = smov 16   ;;  %s3563_s19 = smov 24  }
  0x8c   :  { %v43_v11 = vpop.xlane.xlu0 %42 }
  0x8d   :  { %v48_v12 = vmul.f32 0.03125, %v43_v11 }
  0x8e   :  { %v54_v13 = vpop.xlane.xlu1 %53 }
  0x8f   :  { %v60_v14 = vmul.f32 %v48_v12, %v48_v12  ;;  %v58_v15 = vmul.f32 0.03125, %v54_v13  ;;  %v66_v31 = vsub.f32 %v34_v0, %v48_v12 }
  0x90   :  { %v46_v16 = vpop.xlane.xlu0 %45 }
  0x91   :  { %v62_v17 = vsub.f32 %v58_v15, %v60_v14  ;;  %v49_v18 = vmul.f32 0.03125, %v46_v16 }
  0x92   :  { %v57_v19 = vpop.xlane.xlu1 %56 }
  0x93   :  { %v64_v20 = vmax.f32 %v62_v17, 0.0  ;;  %v61_v21 = vmul.f32 %v49_v18, %v49_v18  ;;  %v59_v22 = vmul.f32 0.03125, %v57_v19  ;;  %v67_v36 = vsub.f32 %v35_v1, %v49_v18  ;;  %v2898_v18 = vld [vmem:[%s4258_s1] ss:$0 sm:$0xff] }
  0x95   :  { %v68_v23 = vadd.f32 1e-12, %v64_v20  ;;  %v63_v24 = vsub.f32 %v59_v22, %v61_v21 }
  0x97   :  { %3430 = vrsqrt.f32 %v68_v23  ;;  %v65_v25 = vmax.f32 %v63_v24, 0.0 }
  0x99   :  { %v69_v26 = vadd.f32 1e-12, %v65_v25 }
  0x9b   :  { %3432 = vrsqrt.f32 %v69_v26 }
  0xa4   :  { %v3431_v32 = vpop.eup %3430 }
  0xa5   :  { %v72_v33 = vmul.f32 %v3431_v32, %v66_v31 }
  0xa7   :  { %v78_v39 = vmul.f32 %v77_v34, %v72_v33 }
  0xa8   :  { %v3433_v37 = vpop.eup %3432 }
  0xa9   :  { %v73_v38 = vmul.f32 %v3433_v37, %v67_v36  ;;  %v3654_v42 = vadd.f32 %v83_v40, %v78_v39 }
  0xab   :  { %v79_v41 = vmul.f32 %v77_v34, %v73_v38 }
  0xad   :  { %v3656_v43 = vadd.f32 %v83_v40, %v79_v41 }
  0xaf   :  { %v91_v44 = vpack.c.bf16 %v3656_v43, %v3654_v42 }
  0xb1   :  { %3086 = vmatmul.mubr.msk.bf16.vlgmr.msra.gmra.mxu0 %vm40_vm0, %v91_v44 }
  0xb2   :  { %3097 = vmatprep.mubr.msk.bf16.mxu0 %vm3549_vm1, %v3548_v9 }
 0x171   :  { %v145_v46 = vpop.f32.mrf.mxu0 }
 0x172   :  { %v146_v50 = vadd.f32 %v145_v46, %v95_v47 }
 0x173   :  { %v3087_v48 = vpop.f32.mrf.mxu0 }
 0x174   :  { %v152_v55 = vmul.f32 0.35355338, %v146_v50 }
 0x175   :  { %v148_v49 = vpop.f32.mrf.mxu0 }
 0x176   :  { %v149_v51 = vadd.f32 %v148_v49, %v95_v47 }
 0x177   :  { %v3088_v52 = vpop.f32.mrf.mxu0 }
 0x178   :  { %v153_v53 = vmul.f32 0.35355338, %v149_v51  ;;  %v3670_v54 = vpack.c.bf16 %v149_v51, %v146_v50 }
 0x17a   :  { %276 = vrot.lane.b32.xlu1 %v3670_v54, %s3550_s20  ;;  %163 = vrot.lane.b32.xlu0 %v3670_v54, %s3551_s21  ;;  %v154_v56 = vpack.c.bf16 %v153_v53, %v152_v55  ;;  %v3682_v57 = vrot.slane %v3670_v54, 4 }
 0x17c   :  { %v627_v58 = vrot.slane %v154_v56, 4 }
 0x17e   :  { %384 = vrot.lane.b32.xlu0 %v154_v56, %s3552_s22  ;;  %274 = vrot.lane.b32.xlu1 %v154_v56, %s3553_s23 }
 0x182   :  { %494 = vrot.lane.b32.xlu0 %v154_v56, %s3554_s24  ;;  %386 = vrot.lane.b32.xlu1 %v3670_v54, %s3555_s25 }
 0x186   :  { %739 = vrot.lane.b32.xlu0 %v3682_v57, %s3550_s20  ;;  %496 = vrot.lane.b32.xlu1 %v3670_v54, %s3556_s26 }
 0x18a   :  { %849 = vrot.lane.b32.xlu0 %v3682_v57, %s3555_s25  ;;  %629 = vrot.lane.b32.xlu1 %v3682_v57, %s3551_s21 }
 0x18e   :  { %959 = vrot.lane.b32.xlu0 %v3682_v57, %s3556_s26  ;;  %737 = vrot.lane.b32.xlu1 %v627_v58, %s3553_s23 }
 0x192   :  { %847 = vrot.lane.b32.xlu1 %v627_v58, %s3552_s22 }
 0x196   :  { %957 = vrot.lane.b32.xlu1 %v627_v58, %s3554_s24 }
 0x1ec   :  { %v164_v59 = vpop.permute.xlu0 %163  ;;  %v277_v61 = vpop.permute.xlu1 %276 }
 0x1ed   :  { %v170_v60 = vsel %vm165_vm2, %v164_v59, 0  ;;  %v282_v63 = vsel %vm165_vm2, %v277_v61, 0 }
 0x1ee   :  { %3090 = vmatpush3.bf16.xpose.msra.mxu1 %v170_v60 }
 0x1ef   :  { %3101 = vmatprep.subr.bf16.mxu1 %v3548_v9 }
 0x1f0   :  { %v275_v62 = vpop.permute.xlu1 %274  ;;  %v385_v3 = vpop.permute.xlu0 %384 }
 0x1f4   :  { %v387_v0 = vpop.permute.xlu1 %386  ;;  %v495_v6 = vpop.permute.xlu0 %494 }
 0x1f5   :  { %3092 = vmatmul.mubr.msk.bf16.vlgmr.msra.gmra.mxu1 %vm165_vm2, %v154_v56  ;;  %v392_v1 = vsel %vm165_vm2, %v387_v0, 0 }
 0x1f6   :  { %3102 = vmatpush3.bf16.xpose.msra.mxu1 %v282_v63  ;;  %3103 = vmatprep.mubr.msk.bf16.mxu1 %vm3549_vm1, %v3548_v9  ;;  %v2907_v63 = vld [vmem:[%s4258_s1 + $0x1] ss:$0 sm:$0xff] }
 0x1f7   :  { %3113 = vmatprep.subr.bf16.mxu1 %v3548_v9 }
 0x1f8   :  { %v497_v2 = vpop.permute.xlu1 %496  ;;  %v740_v8 = vpop.permute.xlu0 %739 }
 0x1f9   :  { %v502_v4 = vsel %vm165_vm2, %v497_v2, 0  ;;  %v745_v10 = vsel %vm165_vm2, %v740_v8, 0 }
 0x1fc   :  { %v630_v5 = vpop.permute.xlu1 %629  ;;  %v850_v11 = vpop.permute.xlu0 %849 }
 0x1fd   :  { %3104 = vmatmul.mubr.msk.bf16.vlgmr.msra.gmra.mxu1 %vm165_vm2, %v275_v62  ;;  %v635_v7 = vsel %vm165_vm2, %v630_v5, 0  ;;  %v855_v13 = vsel %vm165_vm2, %v850_v11, 0 }
 0x1fe   :  { %3114 = vmatpush3.bf16.xpose.msra.mxu1 %v392_v1  ;;  %3115 = vmatprep.mubr.msk.bf16.mxu1 %vm3549_vm1, %v3548_v9 }
 0x1ff   :  { %3125 = vmatprep.subr.bf16.mxu1 %v3548_v9 }
 0x200   :  { %v738_v12 = vpop.permute.xlu1 %737  ;;  %v960_v14 = vpop.permute.xlu0 %959 }
 0x201   :  { %v965_v16 = vsel %vm165_vm2, %v960_v14, 0 }
 0x204   :  { %v848_v15 = vpop.permute.xlu1 %847 }
 0x205   :  { %3116 = vmatmul.mubr.msk.bf16.vlgmr.msra.gmra.mxu1 %vm165_vm2, %v385_v3 }
 0x206   :  { %3126 = vmatpush3.bf16.xpose.msra.mxu1 %v502_v4  ;;  %3127 = vmatprep.mubr.msk.bf16.mxu1 %vm3549_vm1, %v3548_v9 }
 0x207   :  { %3137 = vmatprep.subr.bf16.mxu1 %v3548_v9 }
 0x208   :  { %v958_v17 = vpop.permute.xlu1 %957 }
 0x20d   :  { %3128 = vmatmul.mubr.msk.bf16.vlgmr.msra.gmra.mxu1 %vm165_vm2, %v495_v6 }
 0x20e   :  { %3138 = vmatpush3.bf16.xpose.msra.mxu1 %v635_v7  ;;  %3139 = vmatprep.mubr.msk.bf16.mxu1 %vm3549_vm1, %v3548_v9 }
 0x20f   :  { %3149 = vmatprep.subr.bf16.mxu1 %v3548_v9 }
 0x215   :  { %3140 = vmatmul.mubr.msk.bf16.vlgmr.msra.gmra.mxu1 %vm165_vm2, %v627_v58 }
 0x216   :  { %3150 = vmatpush3.bf16.xpose.msra.mxu1 %v745_v10  ;;  %3151 = vmatprep.mubr.msk.bf16.mxu1 %vm3549_vm1, %v3548_v9 }
 0x217   :  { %3161 = vmatprep.subr.bf16.mxu1 %v3548_v9 }
 0x21d   :  { %3152 = vmatmul.mubr.msk.bf16.vlgmr.msra.gmra.mxu1 %vm165_vm2, %v738_v12 }
 0x21e   :  { %3162 = vmatpush3.bf16.xpose.msra.mxu1 %v855_v13  ;;  %3163 = vmatprep.mubr.msk.bf16.mxu1 %vm3549_vm1, %v3548_v9 }
 0x21f   :  { %3173 = vmatprep.subr.bf16.mxu1 %v3548_v9 }
 0x225   :  { %3164 = vmatmul.mubr.msk.bf16.vlgmr.msra.gmra.mxu1 %vm165_vm2, %v848_v15 }
 0x226   :  { %3174 = vmatpush3.bf16.xpose.msra.mxu1 %v965_v16  ;;  %3175 = vmatprep.mubr.msk.bf16.mxu1 %vm3549_vm1, %v3548_v9 }
 0x227   :  { %3185 = vmatprep.subr.bf16.mxu1 %v3548_v9 }
 0x22d   :  { %3176 = vmatmul.mubr.msk.bf16.vlgmr.msra.gmra.mxu1 %vm165_vm2, %v958_v17 }
 0x22e   :  { %3189 = vmatprep.mubr.msk.bf16.mxu1 %vm3549_vm1, %v3548_v9 }
 0x2b5   :  { %v206_v19 = vpop.f32.mrf.mxu1 }
 0x2b6   :  { %v3740_v20 = vadd.f32 %v2898_v18, %v206_v19 }
 0x2b7   :  { %v3093_v21 = vpop.f32.mrf.mxu1 }
 0x2b8   :  { %v212_v22 = vsel %vm165_vm2, %v3740_v20, -inf }
 0x2b9   :  { %213 = vmax.xlane.f32.xlu0 %v212_v22  ;;  %v209_v23 = vpop.f32.mrf.mxu1 }
 0x2bb   :  { %v3094_v24 = vpop.f32.mrf.mxu1 }
 0x2bd   :  { %v318_v25 = vpop.f32.mrf.mxu1 }
 0x2be   :  { %v3744_v26 = vadd.f32 %v2898_v18, %v318_v25 }
 0x2bf   :  { %v3105_v27 = vpop.f32.mrf.mxu1 }
 0x2c0   :  { %v324_v30 = vsel %vm165_vm2, %v3744_v26, -inf }
 0x2c1   :  { %325 = vmax.xlane.f32.xlu1 %v324_v30  ;;  %v321_v31 = vpop.f32.mrf.mxu1 }
 0x2c3   :  { %v3106_v32 = vpop.f32.mrf.mxu1 }
 0x2c5   :  { %v428_v33 = vpop.f32.mrf.mxu1 }
 0x2c6   :  { %v429_v56 = vadd.f32 %v2898_v18, %v428_v33 }
 0x2c7   :  { %v3117_v34 = vpop.f32.mrf.mxu1 }
 0x2c8   :  { %v434_v62 = vsel %vm165_vm2, %v429_v56, -inf }
 0x2c9   :  { %v431_v36 = vpop.f32.mrf.mxu1 }
 0x2cb   :  { %v3118_v37 = vpop.f32.mrf.mxu1 }
 0x2cd   :  { %v538_v38 = vpop.f32.mrf.mxu1 }
 0x2ce   :  { %v539_v60 = vadd.f32 %v2898_v18, %v538_v38 }
 0x2cf   :  { %224 = vrot.lane.b32.xlu0 %v3670_v54, %s3557_s29  ;;  %v3129_v39 = vpop.f32.mrf.mxu1 }
 0x2d0   :  { %v544_v4 = vsel %vm165_vm2, %v539_v60, -inf }
 0x2d1   :  { %v541_v40 = vpop.f32.mrf.mxu1 }
 0x2d2   :  { %336 = vrot.lane.b32.xlu1 %v3670_v54, %s3558_s30 }
 0x2d3   :  { %v3130_v41 = vpop.f32.mrf.mxu1 }
 0x2d5   :  { %v671_v44 = vpop.f32.mrf.mxu1 }
 0x2d6   :  { %v672_v1 = vadd.f32 %v2907_v63, %v671_v44 }
 0x2d7   :  { %v3141_v46 = vpop.f32.mrf.mxu1 }
 0x2d8   :  { %v677_v8 = vsel %vm165_vm2, %v672_v1, -inf }
 0x2d9   :  { %v674_v47 = vpop.f32.mrf.mxu1 }
 0x2db   :  { %v3142_v48 = vpop.f32.mrf.mxu1 }
 0x2dd   :  { %v781_v49 = vpop.f32.mrf.mxu1 }
 0x2de   :  { %v782_v2 = vadd.f32 %v2907_v63, %v781_v49 }
 0x2df   :  { %v3153_v50 = vpop.f32.mrf.mxu1 }
 0x2e0   :  { %v787_v10 = vsel %vm165_vm2, %v782_v2, -inf }
 0x2e1   :  { %v784_v51 = vpop.f32.mrf.mxu1 }
 0x2e3   :  { %v3154_v52 = vpop.f32.mrf.mxu1 }
 0x2e5   :  { %v891_v53 = vpop.f32.mrf.mxu1 }
 0x2e6   :  { %v3757_v6 = vadd.f32 %v2907_v63, %v891_v53 }
 0x2e7   :  { %v3165_v55 = vpop.f32.mrf.mxu1 }
 0x2e8   :  { %v897_v11 = vsel %vm165_vm2, %v3757_v6, -inf }
 0x2e9   :  { %v894_v58 = vpop.f32.mrf.mxu1 }
 0x2eb   :  { %v3166_v59 = vpop.f32.mrf.mxu1 }
 0x2ed   :  { %v1001_v61 = vpop.f32.mrf.mxu1 }
 0x2ee   :  { %435 = vmax.xlane.f32.xlu0 %v434_v62  ;;  %v3759_v7 = vadd.f32 %v2907_v63, %v1001_v61 }
 0x2ef   :  { %v3177_v0 = vpop.f32.mrf.mxu1 }
 0x2f0   :  { %v1007_v12 = vsel %vm165_vm2, %v3759_v7, -inf }
 0x2f1   :  { %v1004_v3 = vpop.f32.mrf.mxu1 }
 0x2f2   :  { %545 = vmax.xlane.f32.xlu0 %v544_v4 }
 0x2f3   :  { %v3178_v5 = vpop.f32.mrf.mxu1 }
 0x2f6   :  { %678 = vmax.xlane.f32.xlu0 %v677_v8  ;;  %788 = vmax.xlane.f32.xlu1 %v787_v10 }
 0x2fa   :  { %898 = vmax.xlane.f32.xlu0 %v897_v11  ;;  %1008 = vmax.xlane.f32.xlu1 %v1007_v12 }
 0x310   :  { %446 = vrot.lane.b32.xlu0 %v3670_v54, %s3559_s12 }
 0x342   :  { %v214_v13 = vpop.xlane.xlu0 %213 }
 0x343   :  { %v215_v14 = vsub.f32 %v3740_v20, %v214_v13 }
 0x345   :  { %v216_v15 = vmul.f32 1.442695, %v215_v14 }
 0x346   :  { %v225_v16 = vpop.permute.xlu0 %224 }
 0x347   :  { %3434 = vpow2.f32 %v216_v15  ;;  %v231_v17 = vsel %vm229_vm3, %v225_v16, 0 }
 0x348   :  { %3096 = vmatpush3.bf16.msra.mxu0 %v231_v17 }
 0x349   :  { %3107 = vmatprep.subr.bf16.mxu0 %v3548_v9 }
 0x34a   :  { %v326_v18 = vpop.xlane.xlu1 %325 }
 0x34b   :  { %v327_v19 = vsub.f32 %v3744_v26, %v326_v18 }
 0x34d   :  { %v328_v21 = vmul.f32 1.442695, %v327_v19 }
 0x34e   :  { %v337_v31 = vpop.permute.xlu1 %336 }
 0x34f   :  { %3436 = vpow2.f32 %v328_v21  ;;  %v342_v5 = vsel %vm229_vm3, %v337_v31, 0 }
 0x354   :  { %v3435_v22 = vpop.eup %3434 }
 0x355   :  { %v218_v23 = vsel %vm165_vm2, %v3435_v22, 0.0 }
 0x356   :  { %219 = vadd.xlane.f32.xlu0 %v218_v23 }
 0x35c   :  { %v3774_v24 = vpop.eup %3436 }
 0x35d   :  { %v330_v20 = vsel %vm165_vm2, %v3774_v24, 0.0 }
 0x35e   :  { %331 = vadd.xlane.f32.xlu1 %v330_v20 }
 0x36f   :  { %689 = vrot.lane.b32.xlu1 %v3682_v57, %s3557_s29 }
 0x377   :  { %v436_v25 = vpop.xlane.xlu0 %435 }
 0x378   :  { %v437_v27 = vsub.f32 %v429_v56, %v436_v25 }
 0x37a   :  { %v438_v30 = vmul.f32 1.442695, %v437_v27 }
 0x37b   :  { %v546_v26 = vpop.xlane.xlu0 %545 }
 0x37c   :  { %3438 = vpow2.f32 %v438_v30  ;;  %v547_v32 = vsub.f32 %v539_v60, %v546_v26 }
 0x37e   :  { %v548_v33 = vmul.f32 1.442695, %v547_v32 }
 0x37f   :  { %v679_v34 = vpop.xlane.xlu0 %678  ;;  %v789_v36 = vpop.xlane.xlu1 %788 }
 0x380   :  { %v680_v37 = vsub.f32 %v672_v1, %v679_v34  ;;  %3440 = vpow2.f32 %v548_v33  ;;  %v790_v39 = vsub.f32 %v782_v2, %v789_v36 }
 0x382   :  { %v681_v38 = vmul.f32 1.442695, %v680_v37  ;;  %v791_v40 = vmul.f32 1.442695, %v790_v39 }
 0x383   :  { %v899_v52 = vpop.xlane.xlu0 %898  ;;  %v1009_v56 = vpop.xlane.xlu1 %1008 }
 0x384   :  { %3442 = vpow2.f32 %v681_v38  ;;  %v900_v53 = vsub.f32 %v3757_v6, %v899_v52  ;;  %v1010_v58 = vsub.f32 %v3759_v7, %v1009_v56 }
 0x385   :  { %3444 = vpow2.f32 %v791_v40 }
 0x386   :  { %v901_v55 = vmul.f32 1.442695, %v900_v53  ;;  %v1011_v59 = vmul.f32 1.442695, %v1010_v58 }
 0x387   :  { %v447_v63 = vpop.permute.xlu0 %446 }
 0x388   :  { %3446 = vpow2.f32 %v901_v55 }
 0x389   :  { %v3439_v41 = vpop.eup %3438  ;;  %3448 = vpow2.f32 %v1011_v59 }
 0x38a   :  { %v440_v44 = vsel %vm165_vm2, %v3439_v41, 0.0 }
 0x38b   :  { %441 = vadd.xlane.f32.xlu0 %v440_v44 }
 0x38d   :  { %v3781_v46 = vpop.eup %3440 }
 0x38e   :  { %v550_v47 = vsel %vm165_vm2, %v3781_v46, 0.0 }
 0x391   :  { %v3785_v48 = vpop.eup %3442 }
 0x392   :  { %v683_v49 = vsel %vm165_vm2, %v3785_v48, 0.0  ;;  %v3789_v50 = vpop.eup %3444 }
 0x393   :  { %551 = vadd.xlane.f32.xlu1 %v550_v47  ;;  %v793_v51 = vsel %vm165_vm2, %v3789_v50, 0.0 }
 0x395   :  { %v3799_v60 = vpop.eup %3446 }
 0x396   :  { %v903_v61 = vsel %vm165_vm2, %v3799_v60, 0.0 }
 0x397   :  { %684 = vadd.xlane.f32.xlu1 %v683_v49 }
 0x39b   :  { %794 = vadd.xlane.f32.xlu1 %v793_v51 }
 0x3a1   :  { %556 = vrot.lane.b32.xlu0 %v3670_v54, %s3560_s13  ;;  %v3803_v54 = vpop.eup %3448 }
 0x3a2   :  { %v1013_v62 = vsel %vm165_vm2, %v3803_v54, 0.0 }
 0x3ac   :  { %799 = vrot.lane.b32.xlu1 %v3682_v57, %s3558_s30 }
 0x3c0   :  { %904 = vadd.xlane.f32.xlu0 %v903_v61 }
 0x3d0   :  { %1014 = vadd.xlane.f32.xlu1 %v1013_v62 }
 0x3d6   :  { %909 = vrot.lane.b32.xlu0 %v3682_v57, %s3559_s12 }
 0x3df   :  { %v220_v0 = vpop.xlane.xlu0 %219 }
 0x3e0   :  { %3450 = vrcp.f32 %v220_v0 }
 0x3e1   :  { %1019 = vrot.lane.b32.xlu1 %v3682_v57, %s3560_s13  ;;  %v452_v57 = vsel %vm229_vm3, %v447_v63, 0 }
 0x3e7   :  { %v332_v1 = vpop.xlane.xlu1 %331 }
 0x3e8   :  { %3452 = vrcp.f32 %v332_v1 }
 0x3eb   :  { %v690_v11 = vpop.permute.xlu1 %689 }
 0x3ec   :  { %v695_v20 = vsel %vm229_vm3, %v690_v11, 0 }
 0x3ed   :  { %v3451_v2 = vpop.eup %3450 }
 0x3ee   :  { %v222_v3 = vmul.f32 %v3451_v2, %v3435_v22 }
 0x3f0   :  { %v223_v4 = vpack.c.bf16 %v222_v3, %v222_v3 }
 0x3f2   :  { %3098 = vmatmul.mubr.msk.bf16.vlgmr.msra.gmra.mxu0 %vm165_vm2, %v223_v4 }
 0x3f3   :  { %3108 = vmatpush3.bf16.msra.mxu0 %v342_v5  ;;  %3109 = vmatprep.mubr.msk.bf16.mxu0 %vm3549_vm1, %v3548_v9 }
 0x3f4   :  { %3119 = vmatprep.subr.bf16.mxu0 %v3548_v9 }
 0x3f5   :  { %v3453_v6 = vpop.eup %3452 }
 0x3f6   :  { %v334_v7 = vmul.f32 %v3453_v6, %v3774_v24 }
 0x3f8   :  { %v335_v8 = vpack.c.bf16 %v334_v7, %v334_v7 }
 0x3fa   :  { %3110 = vmatmul.mubr.msk.bf16.vlgmr.msra.gmra.mxu0 %vm165_vm2, %v335_v8 }
 0x3fb   :  { %3120 = vmatpush3.bf16.msra.mxu0 %v452_v57  ;;  %3121 = vmatprep.mubr.msk.bf16.mxu0 %vm3549_vm1, %v3548_v9 }
 0x3fc   :  { %3131 = vmatprep.subr.bf16.mxu0 %v3548_v9 }
 0x414   :  { %v442_v10 = vpop.xlane.xlu0 %441 }
 0x415   :  { %3454 = vrcp.f32 %v442_v10 }
 0x418   :  { %v557_v16 = vpop.permute.xlu0 %556 }
 0x419   :  { %v562_v19 = vsel %vm229_vm3, %v557_v16, 0 }
 0x41c   :  { %v552_v12 = vpop.xlane.xlu1 %551 }
 0x41d   :  { %3456 = vrcp.f32 %v552_v12  ;;  %v3404_v12 = vld [vmem:[%s4262_s5 + $0x8] sm:$0xff]  }
 0x41e   :  { %3186 = vmatpush3.bf16.msra.mxu1 %v3404_v12 }
 0x41f   :  { %3187 = vmatprep.subr.bf16.mxu1 %v3548_v9 }
 0x420   :  { %v685_v13 = vpop.xlane.xlu1 %684 }
 0x421   :  { %3458 = vrcp.f32 %v685_v13 }
 0x422   :  { %v3455_v14 = vpop.eup %3454 }
 0x423   :  { %v444_v15 = vmul.f32 %v3455_v14, %v3439_v41 }
 0x424   :  { %v795_v18 = vpop.xlane.xlu1 %794 }
 0x425   :  { %v445_v17 = vpack.c.bf16 %v444_v15, %v444_v15  ;;  %3460 = vrcp.f32 %v795_v18  ;;  %v3405_v18 = vld [vmem:[%s4262_s5] sm:$0xff]  }
 0x426   :  { %3188 = vmatpush3.bf16.msra.mxu1 %v3405_v18 }
 0x427   :  { %3122 = vmatmul.mubr.msk.bf16.vlgmr.msra.gmra.mxu0 %vm165_vm2, %v445_v17  ;;  %3201 = vmatprep.subr.bf16.mxu1 %v3548_v9 }
 0x428   :  { %3132 = vmatpush3.bf16.msra.mxu0 %v562_v19  ;;  %3133 = vmatprep.mubr.msk.bf16.mxu0 %vm3549_vm1, %v3548_v9  ;;  %v800_v27 = vpop.permute.xlu1 %799 }
 0x429   :  { %3143 = vmatprep.subr.bf16.mxu0 %v3548_v9  ;;  %v805_v26 = vsel %vm229_vm3, %v800_v27, 0 }
 0x42a   :  { %v3457_v21 = vpop.eup %3456 }
 0x42b   :  { %v554_v22 = vmul.f32 %v3457_v21, %v3781_v46 }
 0x42d   :  { %v555_v23 = vpack.c.bf16 %v554_v22, %v554_v22 }
 0x42e   :  { %v3459_v24 = vpop.eup %3458 }
 0x42f   :  { %3134 = vmatmul.mubr.msk.bf16.vlgmr.msra.gmra.mxu0 %vm165_vm2, %v555_v23  ;;  %v687_v25 = vmul.f32 %v3459_v24, %v3785_v48 }
 0x430   :  { %3144 = vmatpush3.bf16.msra.mxu0 %v695_v20  ;;  %3145 = vmatprep.mubr.msk.bf16.mxu0 %vm3549_vm1, %v3548_v9 }
 0x431   :  { %3155 = vmatprep.subr.bf16.mxu0 %v3548_v9  ;;  %v688_v30 = vpack.c.bf16 %v687_v25, %v687_v25 }
 0x432   :  { %v3461_v31 = vpop.eup %3460 }
 0x433   :  { %v797_v32 = vmul.f32 %v3461_v31, %v3789_v50 }
 0x435   :  { %v798_v33 = vpack.c.bf16 %v797_v32, %v797_v32 }
 0x437   :  { %3146 = vmatmul.mubr.msk.bf16.vlgmr.msra.gmra.mxu0 %vm165_vm2, %v688_v30 }
 0x438   :  { %3156 = vmatpush3.bf16.msra.mxu0 %v805_v26  ;;  %3157 = vmatprep.mubr.msk.bf16.mxu0 %vm3549_vm1, %v3548_v9 }
 0x439   :  { %3167 = vmatprep.subr.bf16.mxu0 %v3548_v9 }
 0x43f   :  { %3158 = vmatmul.mubr.msk.bf16.vlgmr.msra.gmra.mxu0 %vm165_vm2, %v798_v33 }
 0x440   :  { %3169 = vmatprep.mubr.msk.bf16.mxu0 %vm3549_vm1, %v3548_v9 }
 0x449   :  { %v905_v34 = vpop.xlane.xlu0 %904 }
 0x44a   :  { %3462 = vrcp.f32 %v905_v34 }
 0x44d   :  { %v910_v36 = vpop.permute.xlu0 %909 }
 0x44e   :  { %v915_v37 = vsel %vm229_vm3, %v910_v36, 0 }
 0x44f   :  { %3168 = vmatpush3.bf16.msra.mxu0 %v915_v37 }
 0x450   :  { %3179 = vmatprep.subr.bf16.mxu0 %v3548_v9 }
 0x457   :  { %v3463_v38 = vpop.eup %3462 }
 0x458   :  { %v907_v39 = vmul.f32 %v3463_v38, %v3799_v60 }
 0x459   :  { %v1015_v40 = vpop.xlane.xlu1 %1014 }
 0x45a   :  { %3464 = vrcp.f32 %v1015_v40  ;;  %v908_v41 = vpack.c.bf16 %v907_v39, %v907_v39 }
 0x45c   :  { %3170 = vmatmul.mubr.msk.bf16.vlgmr.msra.gmra.mxu0 %vm165_vm2, %v908_v41 }
 0x45d   :  { %v1020_v44 = vpop.permute.xlu1 %1019  ;;  %3181 = vmatprep.mubr.msk.bf16.mxu0 %vm3549_vm1, %v3548_v9 }
 0x45e   :  { %v1025_v46 = vsel %vm229_vm3, %v1020_v44, 0 }
 0x45f   :  { %3180 = vmatpush3.bf16.msra.mxu0 %v1025_v46  ;;  %v1090_v46 = vrot.slane %v3666_v45, %v3651_v35 }
 0x460   :  { %3193 = vmatprep.subr.bf16.mxu0 %v3548_v9 }
 0x467   :  { %v3465_v47 = vpop.eup %3464 }
 0x468   :  { %v1017_v48 = vmul.f32 %v3465_v47, %v3803_v54 }
 0x46a   :  { %v1018_v49 = vpack.c.bf16 %v1017_v48, %v1017_v48 }
 0x46c   :  { %3182 = vmatmul.mubr.msk.bf16.vlgmr.msra.gmra.mxu0 %vm165_vm2, %v1018_v49 }
 0x46d   :  { %3197 = vmatprep.mubr.msk.bf16.mxu0 %vm3549_vm1, %v3548_v9 }
 0x4b2   :  { %v267_v50 = vpop.f32.mrf.mxu0 }
 0x4b4   :  { %v3099_v51 = vpop.f32.mrf.mxu0 }
 0x4b6   :  { %v270_v52 = vpop.f32.mrf.mxu0 }
 0x4b8   :  { %v3100_v53 = vpop.f32.mrf.mxu0 }
 0x4ba   :  { %v378_v55 = vpop.f32.mrf.mxu0 }
 0x4bc   :  { %v3111_v56 = vpop.f32.mrf.mxu0 }
 0x4be   :  { %v381_v58 = vpop.f32.mrf.mxu0 }
 0x4c0   :  { %v3112_v59 = vpop.f32.mrf.mxu0 }
 0x4e7   :  { %v488_v60 = vpop.f32.mrf.mxu0 }
 0x4e9   :  { %v3123_v61 = vpop.f32.mrf.mxu0 }
 0x4eb   :  { %v491_v62 = vpop.f32.mrf.mxu0 }
 0x4ed   :  { %v3124_v63 = vpop.f32.mrf.mxu0 }
 0x4ee   :  { %v3407_v63 = vld [vmem:[%s4263_s6] sm:$0xff]  }
 0x4ef   :  { %v598_v0 = vpop.f32.mrf.mxu0 }
 0x4f1   :  { %v3135_v54 = vpop.f32.mrf.mxu0 }
 0x4f3   :  { %v601_v1 = vpop.f32.mrf.mxu0 }
 0x4f5   :  { %v3136_v2 = vpop.f32.mrf.mxu0 }
 0x4f7   :  { %v731_v3 = vpop.f32.mrf.mxu0 }
 0x4f9   :  { %v3147_v4 = vpop.f32.mrf.mxu0 }
 0x4fb   :  { %v734_v5 = vpop.f32.mrf.mxu0 }
 0x4fd   :  { %v3148_v6 = vpop.f32.mrf.mxu0 }
 0x4ff   :  { %v841_v7 = vpop.f32.mrf.mxu0 }
 0x500   :  { %v3372_v8 = vpack.i.bf16 %v841_v7, %v378_v55 }
 0x501   :  { %v3159_v57 = vpop.f32.mrf.mxu0 }
 0x502   :  { %3373 = vrot.lane.b32.xlu0 %v3372_v8, %s3561_s14 }
 0x503   :  { %v844_v10 = vpop.f32.mrf.mxu0 }
 0x505   :  { %v3160_v11 = vpop.f32.mrf.mxu0 }
 0x51c   :  { %v951_v13 = vpop.f32.mrf.mxu0 }
 0x51d   :  { %v3377_v14 = vpack.i.bf16 %v951_v13, %v488_v60 }
 0x51e   :  { %v3171_v15 = vpop.f32.mrf.mxu0 }
 0x51f   :  { %3378 = vrot.lane.b32.xlu1 %v3377_v14, %s3562_s16  ;;  %v3892_v14 = vsub.s32 2, %v3641_v28 }
 0x520   :  { %v954_v16 = vpop.f32.mrf.mxu0 }
 0x521   :  { %v1184_v18 = vrot.slane %v3666_v45, %v3892_v14 }
 0x522   :  { %v3172_v17 = vpop.f32.mrf.mxu0 }
 0x52c   :  { %v1061_v19 = vpop.f32.mrf.mxu0 }
 0x52d   :  { %v3382_v21 = vpack.i.bf16 %v1061_v19, %v598_v0  ;;  %v1189_v19 = vsub.s32 3, %v3641_v28 }
 0x52e   :  { %v3183_v22 = vpop.f32.mrf.mxu0 }
 0x52f   :  { %3383 = vrot.lane.b32.xlu0 %v3382_v21, %s3563_s19 }
 0x530   :  { %v1064_v23 = vpop.f32.mrf.mxu0 }
 0x532   :  { %v3184_v24 = vpop.f32.mrf.mxu0 }
 0x574   :  { %v3374_v20 = vpop.permute.xlu0 %3373 }
 0x575   :  { %v3376_v27 = vunpack.i.h.bf16 %v3374_v20  ;;  %v3375_v30 = vunpack.i.l.bf16 %v3374_v20  ;;  %v1190_v20 = vrot.slane %v3666_v45, %v1189_v19 }
 0x577   :  { %v1079_v33 = vsel %vm165_vm2, %v731_v3, %v3376_v27  ;;  %v616_v34 = vsel %vm165_vm2, %v267_v50, %v3375_v30 }
 0x591   :  { %v3379_v25 = vpop.permute.xlu1 %3378 }
 0x592   :  { %v3381_v31 = vunpack.i.h.bf16 %v3379_v25  ;;  %v3380_v26 = vunpack.i.l.bf16 %v3379_v25 }
 0x594   :  { %v1080_v38 = vsel %vm617_vm4, %v1079_v33, %v3381_v31  ;;  %v618_v39 = vsel %vm617_vm4, %v616_v34, %v3380_v26  ;;  %v3408_v26 = vld [vmem:[%s4264_s7 + $0x18] sm:$0xff]   ;;  %v3410_v33 = vld [vmem:[%s4264_s7 + $0x8] sm:$0xff]   ;;  %v3411_v34 = vld [vmem:[%s4264_s7] sm:$0xff]  }
 0x5a1   :  { %v3384_v32 = vpop.permute.xlu0 %3383 }
 0x5a2   :  { %v3386_v36 = vunpack.i.h.bf16 %v3384_v32  ;;  %v3385_v37 = vunpack.i.l.bf16 %v3384_v32  ;;  %v3409_v32 = vld [vmem:[%s4264_s7 + $0x10] sm:$0xff]  }
 0x5a4   :  { %v1081_v40 = vsel %vm619_vm5, %v1080_v38, %v3386_v36  ;;  %v620_v41 = vsel %vm619_vm5, %v618_v39, %v3385_v37  ;;  %v1200_v36 = vsub.s32 4, %v3641_v28 }
 0x5a5   :  { %v1086_v44 = vpack.c.bf16 %v1081_v40, %v620_v41 }
 0x5a6   :  { %v1201_v37 = vrot.slane %v3666_v45, %v1200_v36 }
 0x5a7   :  { %3190 = vmatmul.mubr.msk.bf16.vlgmr.msra.gmra.mxu1 %vm40_vm0, %v1086_v44 }
 0x5a8   :  { %3209 = vmatprep.mubr.msk.bf16.mxu1 %vm3549_vm1, %v3548_v9  ;;  %3202 = vmatpush3.bf16.msra.mxu1 %v3408_v26 }
 0x5a9   :  { %3203 = vmatprep.subr.bf16.mxu1 %v3548_v9 }
 0x5ac   :  { %3204 = vmatpush3.bf16.msra.mxu1 %v3409_v32 }
 0x5ad   :  { %3205 = vmatprep.subr.bf16.mxu1 %v3548_v9 }
 0x5b0   :  { %3206 = vmatpush3.bf16.msra.mxu1 %v3410_v33 }
 0x5b1   :  { %3207 = vmatprep.subr.bf16.mxu1 %v3548_v9 }
 0x5b4   :  { %3208 = vmatpush3.bf16.msra.mxu1 %v3411_v34 }
 0x5b5   :  { %3227 = vmatprep.subr.bf16.mxu1 %v3548_v9 }
 0x667   :  { %v1140_v47 = vpop.f32.mrf.mxu1 }
 0x668   :  { %v1141_v48 = vadd.f32 %v1140_v47, %v1090_v46 }
 0x669   :  { %v3191_v49 = vpop.f32.mrf.mxu1 }
 0x66a   :  { %v1147_v50 = vadd.f32 %v1141_v48, %v3654_v42  ;;  %v3406_v42 = vld [vmem:[%s4263_s6 + $0x8] sm:$0xff]  }
 0x66b   :  { %v1143_v51 = vpop.f32.mrf.mxu1  ;;  %3194 = vmatpush3.bf16.msra.mxu0 %v3406_v42 }
 0x66c   :  { %v1144_v52 = vadd.f32 %v1143_v51, %v1090_v46  ;;  %v1149_v53 = vsel %vm40_vm0, %v1147_v50, 0.0  ;;  %v1157_v55 = vmul.f32 %v1147_v50, %v1147_v50  ;;  %3195 = vmatprep.subr.bf16.mxu0 %v3548_v9 }
 0x66d   :  { %1150 = vadd.xlane.f32.xlu1 %v1149_v53  ;;  %v3192_v56 = vpop.f32.mrf.mxu1 }
 0x66e   :  { %v1148_v58 = vadd.f32 %v1144_v52, %v3656_v43  ;;  %v1159_v59 = vsel %vm40_vm0, %v1157_v55, 0.0 }
 0x66f   :  { %1160 = vadd.xlane.f32.xlu0 %v1159_v59  ;;  %3196 = vmatpush3.bf16.msra.mxu0 %v3407_v63 }
 0x670   :  { %v1152_v60 = vsel %vm40_vm0, %v1148_v58, 0.0  ;;  %v1158_v61 = vmul.f32 %v1148_v58, %v1148_v58  ;;  %3213 = vmatprep.subr.bf16.mxu0 %v3548_v9 }
 0x672   :  { %v1162_v62 = vsel %vm40_vm0, %v1158_v61, 0.0 }
 0x673   :  { %1153 = vadd.xlane.f32.xlu0 %v1152_v60 }
 0x677   :  { %1163 = vadd.xlane.f32.xlu0 %v1162_v62 }
 0x6f6   :  { %v1151_v43 = vpop.xlane.xlu1 %1150 }
 0x6f7   :  { %v1155_v0 = vmul.f32 0.03125, %v1151_v43 }
 0x6f8   :  { %v1161_v54 = vpop.xlane.xlu0 %1160 }
 0x6f9   :  { %v1167_v1 = vmul.f32 %v1155_v0, %v1155_v0  ;;  %v1165_v2 = vmul.f32 0.03125, %v1161_v54  ;;  %v1173_v16 = vsub.f32 %v1147_v50, %v1155_v0 }
 0x6fb   :  { %v1169_v3 = vsub.f32 %v1165_v2, %v1167_v1  ;;  %v1287_v1 = vsub.s32 5, %v3641_v28 }
 0x6fc   :  { %v1154_v4 = vpop.xlane.xlu0 %1153 }
 0x6fd   :  { %v1171_v5 = vmax.f32 %v1169_v3, 0.0  ;;  %v1156_v6 = vmul.f32 0.03125, %v1154_v4  ;;  %v1288_v2 = vrot.slane %v3666_v45, %v1287_v1 }
 0x6ff   :  { %v1175_v7 = vadd.f32 1e-12, %v1171_v5  ;;  %v1168_v57 = vmul.f32 %v1156_v6, %v1156_v6  ;;  %v1174_v21 = vsub.f32 %v1148_v58, %v1156_v6 }
 0x700   :  { %v1164_v8 = vpop.xlane.xlu0 %1163 }
 0x701   :  { %v1166_v10 = vmul.f32 0.03125, %v1164_v8  ;;  %3466 = vrsqrt.f32 %v1175_v7 }
 0x703   :  { %v1170_v11 = vsub.f32 %v1166_v10, %v1168_v57 }
 0x705   :  { %v1172_v12 = vmax.f32 %v1170_v11, 0.0 }
 0x707   :  { %v1176_v13 = vadd.f32 1e-12, %v1172_v12 }
 0x709   :  { %3468 = vrsqrt.f32 %v1176_v13 }
 0x70e   :  { %v3467_v15 = vpop.eup %3466 }
 0x70f   :  { %v1179_v17 = vmul.f32 %v3467_v15, %v1173_v16 }
 0x711   :  { %v1185_v24 = vmul.f32 %v1184_v18, %v1179_v17  ;;  %v3412_v17 = vld [vmem:[%s4261_s4 + $0x18] sm:$0xff]  }
 0x713   :  { %v1191_v27 = vadd.f32 %v1190_v20, %v1185_v24 }
 0x716   :  { %v3469_v22 = vpop.eup %3468 }
 0x717   :  { %v1180_v23 = vmul.f32 %v3469_v22, %v1174_v21 }
 0x719   :  { %v1186_v25 = vmul.f32 %v1184_v18, %v1180_v23  ;;  %v3413_v18 = vld [vmem:[%s4261_s4 + $0x10] sm:$0xff]  }
 0x71b   :  { %v1192_v30 = vadd.f32 %v1190_v20, %v1186_v25 }
 0x71d   :  { %v1197_v31 = vpack.c.bf16 %v1192_v30, %v1191_v27 }
 0x71f   :  { %3198 = vmatmul.mubr.msk.bf16.vlgmr.msra.gmra.mxu0 %vm40_vm0, %v1197_v31 }
 0x720   :  { %3217 = vmatprep.mubr.msk.bf16.mxu0 %vm3549_vm1, %v3548_v9  ;;  %3214 = vmatpush3.bf16.msra.mxu0 %v3412_v17 }
 0x721   :  { %3215 = vmatprep.subr.bf16.mxu0 %v3548_v9 }
 0x724   :  { %3216 = vmatpush3.bf16.msra.mxu0 %v3413_v18 }
 0x725   :  { %3221 = vmatprep.subr.bf16.mxu0 %v3548_v9 }
 0x7df   :  { %v1251_v38 = vpop.f32.mrf.mxu0 }
 0x7e0   :  { %v1252_v39 = vadd.f32 %v1251_v38, %v1201_v37 }
 0x7e1   :  { %v3199_v40 = vpop.f32.mrf.mxu0 }
 0x7e2   :  { %v1260_v41 = vmul.f32 0.044715, %v1252_v39  ;;  %v1258_v62 = vmul.f32 0.5, %v1252_v39  ;;  %v3943_v40 = vsub.s32 6, %v3641_v28 }
 0x7e3   :  { %v1254_v44 = vpop.f32.mrf.mxu0 }
 0x7e4   :  { %v1262_v46 = vmul.f32 %v1260_v41, %v1252_v39  ;;  %v1255_v47 = vadd.f32 %v1254_v44, %v1201_v37 }
 0x7e5   :  { %v3200_v48 = vpop.f32.mrf.mxu0 }
 0x7e6   :  { %v1264_v49 = vmul.f32 %v1262_v46, %v1252_v39  ;;  %v1261_v50 = vmul.f32 0.044715, %v1255_v47  ;;  %v1259_v42 = vmul.f32 0.5, %v1255_v47 }
 0x7e8   :  { %v1266_v51 = vadd.f32 %v1264_v49, %v1252_v39  ;;  %v1263_v52 = vmul.f32 %v1261_v50, %v1255_v47  ;;  %v1400_v49 = vsub.s32 7, %v3641_v28  ;;  %v3525_v28 = vld [vmem:[%s4260_s3] sm:$0x77] }
 0x7ea   :  { %v1268_v53 = vmul.f32 0.7978846, %v1266_v51  ;;  %v1265_v55 = vmul.f32 %v1263_v52, %v1255_v47 }
 0x7ec   :  { %3470 = vtanh.f32 %v1268_v53  ;;  %v1267_v56 = vadd.f32 %v1265_v55, %v1255_v47  ;;  %v3522_v47 = vld [vmem:[%s4259_s2] sm:$0xff] }
 0x7ed   :  { %v1395_v48 = vrot.slane %v3522_v47, %v3943_v40  ;;  %v1401_v55 = vrot.slane %v3522_v47, %v1400_v49 }
 0x7ee   :  { %v1269_v58 = vmul.f32 0.7978846, %v1267_v56 }
 0x7f0   :  { %3472 = vtanh.f32 %v1269_v58 }
 0x7f9   :  { %v3471_v59 = vpop.eup %3470 }
 0x7fa   :  { %v1272_v60 = vadd.f32 1.0, %v3471_v59 }
 0x7fc   :  { %v1274_v43 = vmul.f32 %v1272_v60, %v1258_v62 }
 0x7fd   :  { %v3473_v61 = vpop.eup %3472 }
 0x7fe   :  { %v1273_v63 = vadd.f32 1.0, %v3473_v61  ;;  %v3964_v61 = vld [vmem:[%s4259_s2 + $0x8] sm:$0xff] }
 0x800   :  { %v1275_v0 = vmul.f32 %v1273_v63, %v1259_v42  ;;  %v1415_v42 = vrot.slane %v3964_v61, %v3644_v29 }
 0x802   :  { %v1284_v54 = vpack.c.bf16 %v1275_v0, %v1274_v43 }
 0x804   :  { %3210 = vmatmul.mubr.msk.bf16.vlgmr.msra.gmra.mxu1 %vm1313_vm6, %v1284_v54 }
 0x805   :  { %3229 = vmatprep.mubr.msk.bf16.mxu1 %vm3549_vm1, %v3548_v9 }
 0x8c4   :  { %v1351_v3 = vpop.f32.mrf.mxu1 }
 0x8c5   :  { %v1352_v4 = vadd.f32 %v1351_v3, %v1288_v2 }
 0x8c6   :  { %v3211_v5 = vpop.f32.mrf.mxu1 }
 0x8c7   :  { %v1358_v6 = vadd.f32 %v1352_v4, %v1191_v27 }
 0x8c8   :  { %v1354_v7 = vpop.f32.mrf.mxu1 }
 0x8c9   :  { %v1355_v8 = vadd.f32 %v1354_v7, %v1288_v2  ;;  %v1360_v57 = vsel %vm40_vm0, %v1358_v6, 0.0  ;;  %v1368_v10 = vmul.f32 %v1358_v6, %v1358_v6 }
 0x8ca   :  { %1361 = vadd.xlane.f32.xlu1 %v1360_v57  ;;  %v3212_v11 = vpop.f32.mrf.mxu1 }
 0x8cb   :  { %v1359_v12 = vadd.f32 %v1355_v8, %v1192_v30  ;;  %v1370_v13 = vsel %vm40_vm0, %v1368_v10, 0.0 }
 0x8cd   :  { %v1363_v15 = vsel %vm40_vm0, %v1359_v12, 0.0  ;;  %v1369_v16 = vmul.f32 %v1359_v12, %v1359_v12 }
 0x8ce   :  { %1371 = vadd.xlane.f32.xlu1 %v1370_v13  ;;  %1364 = vadd.xlane.f32.xlu0 %v1363_v15 }
 0x8cf   :  { %v1373_v45 = vsel %vm40_vm0, %v1369_v16, 0.0 }
 0x8d2   :  { %1374 = vadd.xlane.f32.xlu0 %v1373_v45 }
 0x953   :  { %v1362_v21 = vpop.xlane.xlu1 %1361 }
 0x954   :  { %v1366_v22 = vmul.f32 0.03125, %v1362_v21 }
 0x956   :  { %v1378_v20 = vmul.f32 %v1366_v22, %v1366_v22  ;;  %v1384_v41 = vsub.f32 %v1358_v6, %v1366_v22 }
 0x957   :  { %v1372_v23 = vpop.xlane.xlu1 %1371  ;;  %v1365_v24 = vpop.xlane.xlu0 %1364 }
 0x958   :  { %v1376_v25 = vmul.f32 0.03125, %v1372_v23  ;;  %v1367_v27 = vmul.f32 0.03125, %v1365_v24 }
 0x95a   :  { %v1380_v30 = vsub.f32 %v1376_v25, %v1378_v20  ;;  %v1379_v32 = vmul.f32 %v1367_v27, %v1367_v27  ;;  %v1385_v50 = vsub.f32 %v1359_v12, %v1367_v27 }
 0x95b   :  { %v1375_v31 = vpop.xlane.xlu0 %1374 }
 0x95c   :  { %v1382_v26 = vmax.f32 %v1380_v30, 0.0  ;;  %v1377_v33 = vmul.f32 0.03125, %v1375_v31 }
 0x95e   :  { %v1386_v34 = vadd.f32 1e-12, %v1382_v26  ;;  %v1381_v37 = vsub.f32 %v1377_v33, %v1379_v32 }
 0x960   :  { %3474 = vrsqrt.f32 %v1386_v34  ;;  %v1383_v38 = vmax.f32 %v1381_v37, 0.0  ;;  %v3523_v34 = vld [vmem:[%s4258_s1] ss:$0 sm:$0xff] }
 0x962   :  { %v1387_v39 = vadd.f32 1e-12, %v1383_v38 }
 0x964   :  { %3476 = vrsqrt.f32 %v1387_v39 }
 0x96d   :  { %v3475_v44 = vpop.eup %3474 }
 0x96e   :  { %v1390_v46 = vmul.f32 %v3475_v44, %v1384_v41 }
 0x970   :  { %v1396_v53 = vmul.f32 %v1395_v48, %v1390_v46 }
 0x971   :  { %v3477_v51 = vpop.eup %3476 }
 0x972   :  { %v1391_v52 = vmul.f32 %v3477_v51, %v1385_v50  ;;  %v3952_v58 = vadd.f32 %v1401_v55, %v1396_v53 }
 0x974   :  { %v1397_v56 = vmul.f32 %v1395_v48, %v1391_v52 }
 0x976   :  { %v3954_v59 = vadd.f32 %v1401_v55, %v1397_v56 }
 0x978   :  { %v1411_v60 = vpack.c.bf16 %v3954_v59, %v3952_v58 }
 0x97a   :  { %3218 = vmatmul.mubr.msk.bf16.vlgmr.msra.gmra.mxu0 %vm40_vm0, %v1411_v60 }
 0x97b   :  { %3223 = vmatprep.mubr.msk.bf16.mxu0 %vm3549_vm1, %v3548_v9 }
 0xa3a   :  { %v1465_v62 = vpop.f32.mrf.mxu0 }
 0xa3b   :  { %v1466_v0 = vadd.f32 %v1465_v62, %v1415_v42 }
 0xa3c   :  { %v3219_v63 = vpop.f32.mrf.mxu0 }
 0xa3d   :  { %v1472_v5 = vmul.f32 0.35355338, %v1466_v0 }
 0xa3e   :  { %v1468_v43 = vpop.f32.mrf.mxu0 }
 0xa3f   :  { %v1469_v54 = vadd.f32 %v1468_v43, %v1415_v42 }
 0xa40   :  { %v3220_v2 = vpop.f32.mrf.mxu0 }
 0xa41   :  { %v1473_v3 = vmul.f32 0.35355338, %v1469_v54  ;;  %v3968_v4 = vpack.c.bf16 %v1469_v54, %v1466_v0 }
 0xa43   :  { %1588 = vrot.lane.b32.xlu0 %v3968_v4, %s3550_s20  ;;  %1477 = vrot.lane.b32.xlu1 %v3968_v4, %s3551_s21  ;;  %v1474_v6 = vpack.c.bf16 %v1473_v3, %v1472_v5  ;;  %v3978_v29 = vrot.slane %v3968_v4, 4 }
 0xa45   :  { %v1931_v7 = vrot.slane %v1474_v6, 4 }
 0xa47   :  { %1808 = vrot.lane.b32.xlu0 %v3968_v4, %s3556_s26  ;;  %1586 = vrot.lane.b32.xlu1 %v1474_v6, %s3553_s23 }
 0xa4b   :  { %1933 = vrot.lane.b32.xlu0 %v3978_v29, %s3551_s21  ;;  %1698 = vrot.lane.b32.xlu1 %v3968_v4, %s3555_s25 }
 0xa4f   :  { %1696 = vrot.lane.b32.xlu1 %v1474_v6, %s3552_s22  ;;  %2041 = vrot.lane.b32.xlu0 %v1931_v7, %s3553_s23 }
 0xa53   :  { %1806 = vrot.lane.b32.xlu1 %v1474_v6, %s3554_s24  ;;  %2151 = vrot.lane.b32.xlu0 %v1931_v7, %s3552_s22 }
 0xa57   :  { %2043 = vrot.lane.b32.xlu1 %v3978_v29, %s3550_s20  ;;  %2261 = vrot.lane.b32.xlu0 %v1931_v7, %s3554_s24 }
 0xa5b   :  { %2153 = vrot.lane.b32.xlu1 %v3978_v29, %s3555_s25 }
 0xa5f   :  { %2263 = vrot.lane.b32.xlu1 %v3978_v29, %s3556_s26 }
 0xab5   :  { %v1478_v8 = vpop.permute.xlu1 %1477  ;;  %v1589_v10 = vpop.permute.xlu0 %1588 }
 0xab6   :  { %v1483_v57 = vsel %vm165_vm2, %v1478_v8, 0  ;;  %v1594_v12 = vsel %vm165_vm2, %v1589_v10, 0 }
 0xab7   :  { %3222 = vmatpush3.bf16.xpose.msra.mxu0 %v1483_v57 }
 0xab8   :  { %3233 = vmatprep.subr.bf16.mxu0 %v3548_v9 }
 0xab9   :  { %v1587_v11 = vpop.permute.xlu1 %1586  ;;  %v1809_v16 = vpop.permute.xlu0 %1808 }
 0xaba   :  { %v1814_v17 = vsel %vm165_vm2, %v1809_v16, 0 }
 0xabd   :  { %v1699_v13 = vpop.permute.xlu1 %1698  ;;  %v1934_v18 = vpop.permute.xlu0 %1933 }
 0xabe   :  { %3224 = vmatmul.mubr.msk.bf16.vlgmr.msra.gmra.mxu0 %vm165_vm2, %v1474_v6  ;;  %v1704_v15 = vsel %vm165_vm2, %v1699_v13, 0  ;;  %v1939_v22 = vsel %vm165_vm2, %v1934_v18, 0  ;;  %v3524_v6 = vld [vmem:[%s4258_s1 + $0x1] ss:$0 sm:$0xff] }
 0xabf   :  { %3234 = vmatpush3.bf16.xpose.msra.mxu0 %v1594_v12  ;;  %3235 = vmatprep.mubr.msk.bf16.mxu0 %vm3549_vm1, %v3548_v9 }
 0xac0   :  { %3245 = vmatprep.subr.bf16.mxu0 %v3548_v9 }
 0xac1   :  { %v1697_v45 = vpop.permute.xlu1 %1696  ;;  %v2042_v25 = vpop.permute.xlu0 %2041 }
 0xac5   :  { %v1807_v21 = vpop.permute.xlu1 %1806  ;;  %v2152_v31 = vpop.permute.xlu0 %2151 }
 0xac6   :  { %3236 = vmatmul.mubr.msk.bf16.vlgmr.msra.gmra.mxu0 %vm165_vm2, %v1587_v11 }
 0xac7   :  { %3246 = vmatpush3.bf16.xpose.msra.mxu0 %v1704_v15  ;;  %3247 = vmatprep.mubr.msk.bf16.mxu0 %vm3549_vm1, %v3548_v9 }
 0xac8   :  { %3257 = vmatprep.subr.bf16.mxu0 %v3548_v9 }
 0xac9   :  { %v2044_v23 = vpop.permute.xlu1 %2043  ;;  %v2262_v32 = vpop.permute.xlu0 %2261 }
 0xaca   :  { %v2049_v24 = vsel %vm165_vm2, %v2044_v23, 0 }
 0xacd   :  { %v2154_v20 = vpop.permute.xlu1 %2153 }
 0xace   :  { %3248 = vmatmul.mubr.msk.bf16.vlgmr.msra.gmra.mxu0 %vm165_vm2, %v1697_v45  ;;  %v2159_v27 = vsel %vm165_vm2, %v2154_v20, 0 }
 0xacf   :  { %3258 = vmatpush3.bf16.xpose.msra.mxu0 %v1814_v17  ;;  %3259 = vmatprep.mubr.msk.bf16.mxu0 %vm3549_vm1, %v3548_v9 }
 0xad0   :  { %3269 = vmatprep.subr.bf16.mxu0 %v3548_v9 }
 0xad1   :  { %v2264_v30 = vpop.permute.xlu1 %2263 }
 0xad2   :  { %v2269_v26 = vsel %vm165_vm2, %v2264_v30, 0 }
 0xad6   :  { %3260 = vmatmul.mubr.msk.bf16.vlgmr.msra.gmra.mxu0 %vm165_vm2, %v1807_v21 }
 0xad7   :  { %3270 = vmatpush3.bf16.xpose.msra.mxu0 %v1939_v22  ;;  %3271 = vmatprep.mubr.msk.bf16.mxu0 %vm3549_vm1, %v3548_v9 }
 0xad8   :  { %3281 = vmatprep.subr.bf16.mxu0 %v3548_v9 }
 0xade   :  { %3272 = vmatmul.mubr.msk.bf16.vlgmr.msra.gmra.mxu0 %vm165_vm2, %v1931_v7 }
 0xadf   :  { %3282 = vmatpush3.bf16.xpose.msra.mxu0 %v2049_v24  ;;  %3283 = vmatprep.mubr.msk.bf16.mxu0 %vm3549_vm1, %v3548_v9 }
 0xae0   :  { %3293 = vmatprep.subr.bf16.mxu0 %v3548_v9 }
 0xae6   :  { %3284 = vmatmul.mubr.msk.bf16.vlgmr.msra.gmra.mxu0 %vm165_vm2, %v2042_v25 }
 0xae7   :  { %3294 = vmatpush3.bf16.xpose.msra.mxu0 %v2159_v27  ;;  %3295 = vmatprep.mubr.msk.bf16.mxu0 %vm3549_vm1, %v3548_v9 }
 0xae8   :  { %3305 = vmatprep.subr.bf16.mxu0 %v3548_v9 }
 0xaee   :  { %3296 = vmatmul.mubr.msk.bf16.vlgmr.msra.gmra.mxu0 %vm165_vm2, %v2152_v31 }
 0xaef   :  { %3306 = vmatpush3.bf16.xpose.msra.mxu0 %v2269_v26  ;;  %3307 = vmatprep.mubr.msk.bf16.mxu0 %vm3549_vm1, %v3548_v9 }
 0xaf0   :  { %3317 = vmatprep.subr.bf16.mxu0 %v3548_v9 }
 0xaf6   :  { %3308 = vmatmul.mubr.msk.bf16.vlgmr.msra.gmra.mxu0 %vm165_vm2, %v2262_v32 }
 0xaf7   :  { %3321 = vmatprep.mubr.msk.bf16.mxu0 %vm3549_vm1, %v3548_v9 }
 0xb7e   :  { %v1519_v33 = vpop.f32.mrf.mxu0 }
 0xb7f   :  { %v1520_v37 = vadd.f32 %v3523_v34, %v1519_v33 }
 0xb80   :  { %v3225_v38 = vpop.f32.mrf.mxu0 }
 0xb81   :  { %v1525_v39 = vsel %vm165_vm2, %v1520_v37, -inf }
 0xb82   :  { %1526 = vmax.xlane.f32.xlu1 %v1525_v39  ;;  %v1522_v41 = vpop.f32.mrf.mxu0 }
 0xb84   :  { %v3226_v44 = vpop.f32.mrf.mxu0 }
 0xb86   :  { %v1630_v46 = vpop.f32.mrf.mxu0 }
 0xb87   :  { %v1631_v47 = vadd.f32 %v3523_v34, %v1630_v46 }
 0xb88   :  { %v3237_v48 = vpop.f32.mrf.mxu0 }
 0xb89   :  { %v1636_v50 = vsel %vm165_vm2, %v1631_v47, -inf }
 0xb8a   :  { %1637 = vmax.xlane.f32.xlu0 %v1636_v50  ;;  %v1633_v51 = vpop.f32.mrf.mxu0 }
 0xb8c   :  { %v3238_v52 = vpop.f32.mrf.mxu0 }
 0xb8e   :  { %v1740_v53 = vpop.f32.mrf.mxu0 }
 0xb8f   :  { %v1741_v55 = vadd.f32 %v3523_v34, %v1740_v53 }
 0xb90   :  { %v3249_v56 = vpop.f32.mrf.mxu0 }
 0xb91   :  { %v1746_v60 = vsel %vm165_vm2, %v1741_v55, -inf }
 0xb92   :  { %1747 = vmax.xlane.f32.xlu0 %v1746_v60  ;;  %v1743_v62 = vpop.f32.mrf.mxu0 }
 0xb94   :  { %v3250_v42 = vpop.f32.mrf.mxu0 }
 0xb96   :  { %v1850_v63 = vpop.f32.mrf.mxu0 }
 0xb97   :  { %v4041_v43 = vadd.f32 %v3523_v34, %v1850_v63 }
 0xb98   :  { %v3261_v0 = vpop.f32.mrf.mxu0 }
 0xb99   :  { %v1856_v54 = vsel %vm165_vm2, %v4041_v43, -inf }
 0xb9a   :  { %1857 = vmax.xlane.f32.xlu0 %v1856_v54  ;;  %v1853_v2 = vpop.f32.mrf.mxu0 }
 0xb9c   :  { %v3262_v3 = vpop.f32.mrf.mxu0 }
 0xb9e   :  { %v1975_v5 = vpop.f32.mrf.mxu0 }
 0xb9f   :  { %v4048_v7 = vadd.f32 %v3524_v6, %v1975_v5 }
 0xba0   :  { %v3273_v8 = vpop.f32.mrf.mxu0 }
 0xba1   :  { %v1981_v57 = vsel %vm165_vm2, %v4048_v7, -inf }
 0xba2   :  { %1982 = vmax.xlane.f32.xlu1 %v1981_v57  ;;  %v1978_v10 = vpop.f32.mrf.mxu0 }
 0xba4   :  { %v3274_v11 = vpop.f32.mrf.mxu0 }
 0xba6   :  { %v2085_v12 = vpop.f32.mrf.mxu0 }
 0xba7   :  { %v2086_v13 = vadd.f32 %v3524_v6, %v2085_v12 }
 0xba8   :  { %v3285_v15 = vpop.f32.mrf.mxu0 }
 0xba9   :  { %v2091_v16 = vsel %vm165_vm2, %v2086_v13, -inf }
 0xbaa   :  { %2092 = vmax.xlane.f32.xlu0 %v2091_v16  ;;  %v2088_v45 = vpop.f32.mrf.mxu0 }
 0xbac   :  { %v3286_v17 = vpop.f32.mrf.mxu0 }
 0xbae   :  { %v2195_v18 = vpop.f32.mrf.mxu0 }
 0xbaf   :  { %v2196_v21 = vadd.f32 %v3524_v6, %v2195_v18 }
 0xbb0   :  { %v3297_v22 = vpop.f32.mrf.mxu0 }
 0xbb1   :  { %v2201_v23 = vsel %vm165_vm2, %v2196_v21, -inf }
 0xbb2   :  { %2202 = vmax.xlane.f32.xlu1 %v2201_v23  ;;  %v2198_v24 = vpop.f32.mrf.mxu0 }
 0xbb4   :  { %v3298_v20 = vpop.f32.mrf.mxu0 }
 0xbb6   :  { %v2305_v25 = vpop.f32.mrf.mxu0 }
 0xbb7   :  { %v2306_v26 = vadd.f32 %v3524_v6, %v2305_v25 }
 0xbb8   :  { %v3309_v27 = vpop.f32.mrf.mxu0 }
 0xbb9   :  { %v2311_v32 = vsel %vm165_vm2, %v2306_v26, -inf }
 0xbba   :  { %v2308_v30 = vpop.f32.mrf.mxu0 }
 0xbbc   :  { %v3310_v31 = vpop.f32.mrf.mxu0 }
 0xbc0   :  { %1648 = vrot.lane.b32.xlu0 %v3968_v4, %s3558_s30 }
 0xbc3   :  { %1537 = vrot.lane.b32.xlu1 %v3968_v4, %s3557_s29 }
 0xbdf   :  { %2312 = vmax.xlane.f32.xlu0 %v2311_v32 }
 0xc0b   :  { %v1527_v33 = vpop.xlane.xlu1 %1526 }
 0xc0c   :  { %v1528_v34 = vsub.f32 %v1520_v37, %v1527_v33 }
 0xc0e   :  { %v1529_v38 = vmul.f32 1.442695, %v1528_v34 }
 0xc10   :  { %3478 = vpow2.f32 %v1529_v38 }
 0xc13   :  { %v1638_v39 = vpop.xlane.xlu0 %1637 }
 0xc14   :  { %v1639_v41 = vsub.f32 %v1631_v47, %v1638_v39 }
 0xc16   :  { %v1640_v44 = vmul.f32 1.442695, %v1639_v41 }
 0xc18   :  { %3480 = vpow2.f32 %v1640_v44 }
 0xc1b   :  { %v1748_v46 = vpop.xlane.xlu0 %1747 }
 0xc1c   :  { %v1749_v48 = vsub.f32 %v1741_v55, %v1748_v46 }
 0xc1d   :  { %v3479_v50 = vpop.eup %3478 }
 0xc1e   :  { %v1750_v51 = vmul.f32 1.442695, %v1749_v48  ;;  %v1531_v52 = vsel %vm165_vm2, %v3479_v50, 0.0 }
 0xc1f   :  { %1532 = vadd.xlane.f32.xlu1 %v1531_v52 }
 0xc20   :  { %3482 = vpow2.f32 %v1750_v51 }
 0xc23   :  { %v1858_v42 = vpop.xlane.xlu0 %1857 }
 0xc24   :  { %v1859_v0 = vsub.f32 %v4041_v43, %v1858_v42 }
 0xc25   :  { %v4060_v53 = vpop.eup %3480 }
 0xc26   :  { %v1642_v56 = vsel %vm165_vm2, %v4060_v53, 0.0  ;;  %v1860_v54 = vmul.f32 1.442695, %v1859_v0 }
 0xc27   :  { %1643 = vadd.xlane.f32.xlu0 %v1642_v56 }
 0xc28   :  { %3484 = vpow2.f32 %v1860_v54 }
 0xc2b   :  { %v1983_v60 = vpop.xlane.xlu1 %1982 }
 0xc2c   :  { %v1984_v2 = vsub.f32 %v4048_v7, %v1983_v60 }
 0xc2d   :  { %v4064_v37 = vpop.eup %3482 }
 0xc2e   :  { %v1752_v47 = vsel %vm165_vm2, %v4064_v37, 0.0  ;;  %v1985_v6 = vmul.f32 1.442695, %v1984_v2 }
 0xc2f   :  { %1753 = vadd.xlane.f32.xlu1 %v1752_v47 }
 0xc30   :  { %3486 = vpow2.f32 %v1985_v6 }
 0xc33   :  { %v2093_v3 = vpop.xlane.xlu0 %2092 }
 0xc34   :  { %v2094_v5 = vsub.f32 %v2086_v13, %v2093_v3 }
 0xc35   :  { %v3485_v11 = vpop.eup %3484 }
 0xc36   :  { %v2095_v57 = vmul.f32 1.442695, %v2094_v5 }
 0xc37   :  { %v1649_v45 = vpop.permute.xlu0 %1648 }
 0xc38   :  { %3488 = vpow2.f32 %v2095_v57 }
 0xc3b   :  { %v2203_v55 = vpop.xlane.xlu1 %2202 }
 0xc3c   :  { %v2204_v8 = vsub.f32 %v2196_v21, %v2203_v55 }
 0xc3d   :  { %1758 = vrot.lane.b32.xlu0 %v3968_v4, %s3559_s12  ;;  %v4077_v12 = vpop.eup %3486 }
 0xc3e   :  { %v2205_v10 = vmul.f32 1.442695, %v2204_v8  ;;  %v1987_v7 = vsel %vm165_vm2, %v4077_v12, 0.0 }
 0xc3f   :  { %v1538_v62 = vpop.permute.xlu1 %1537 }
 0xc40   :  { %v1543_v63 = vsel %vm229_vm3, %v1538_v62, 0  ;;  %1868 = vrot.lane.b32.xlu1 %v3968_v4, %s3560_s13  ;;  %3490 = vpow2.f32 %v2205_v10  ;;  %v1862_v4 = vsel %vm165_vm2, %v3485_v11, 0.0 }
 0xc41   :  { %3228 = vmatpush3.bf16.msra.mxu1 %v1543_v63 }
 0xc42   :  { %3239 = vmatprep.subr.bf16.mxu1 %v3548_v9 }
 0xc45   :  { %v4079_v43 = vpop.eup %3488 }
 0xc46   :  { %v2097_v15 = vsel %vm165_vm2, %v4079_v43, 0.0 }
 0xc4d   :  { %v4083_v13 = vpop.eup %3490 }
 0xc4e   :  { %v2207_v16 = vsel %vm165_vm2, %v4083_v13, 0.0 }
 0xc5c   :  { %1863 = vadd.xlane.f32.xlu0 %v1862_v4 }
 0xc60   :  { %1988 = vadd.xlane.f32.xlu0 %v1987_v7 }
 0xc64   :  { %2098 = vadd.xlane.f32.xlu1 %v2097_v15  ;;  %2208 = vadd.xlane.f32.xlu0 %v2207_v16 }
 0xc68   :  { %v2313_v17 = vpop.xlane.xlu0 %2312 }
 0xc69   :  { %v2314_v18 = vsub.f32 %v2306_v26, %v2313_v17  ;;  %v1654_v26 = vsel %vm229_vm3, %v1649_v45, 0 }
 0xc6b   :  { %v2315_v21 = vmul.f32 1.442695, %v2314_v18 }
 0xc6d   :  { %3492 = vpow2.f32 %v2315_v21 }
 0xc75   :  { %2103 = vrot.lane.b32.xlu1 %v3978_v29, %s3558_s30 }
 0xc79   :  { %2213 = vrot.lane.b32.xlu1 %v3978_v29, %s3559_s12 }
 0xc7a   :  { %v4093_v22 = vpop.eup %3492 }
 0xc7b   :  { %v2317_v23 = vsel %vm165_vm2, %v4093_v22, 0.0 }
 0xc7c   :  { %2318 = vadd.xlane.f32.xlu0 %v2317_v23 }
 0xc7d   :  { %2323 = vrot.lane.b32.xlu1 %v3978_v29, %s3560_s13 }
 0xc92   :  { %1993 = vrot.lane.b32.xlu0 %v3978_v29, %s3557_s29 }
 0xca8   :  { %v1533_v24 = vpop.xlane.xlu1 %1532 }
 0xca9   :  { %3494 = vrcp.f32 %v1533_v24 }
 0xcb0   :  { %v1644_v20 = vpop.xlane.xlu0 %1643 }
 0xcb1   :  { %3496 = vrcp.f32 %v1644_v20 }
 0xcb4   :  { %v1759_v33 = vpop.permute.xlu0 %1758 }
 0xcb5   :  { %v1764_v38 = vsel %vm229_vm3, %v1759_v33, 0 }
 0xcb6   :  { %v3495_v25 = vpop.eup %3494 }
 0xcb7   :  { %v1535_v27 = vmul.f32 %v3495_v25, %v3479_v50 }
 0xcb8   :  { %v1754_v30 = vpop.xlane.xlu1 %1753 }
 0xcb9   :  { %3498 = vrcp.f32 %v1754_v30  ;;  %v1536_v31 = vpack.c.bf16 %v1535_v27, %v1535_v27 }
 0xcbb   :  { %3230 = vmatmul.mubr.msk.bf16.vlgmr.msra.gmra.mxu1 %vm165_vm2, %v1536_v31 }
 0xcbc   :  { %3240 = vmatpush3.bf16.msra.mxu1 %v1654_v26  ;;  %3241 = vmatprep.mubr.msk.bf16.mxu1 %vm3549_vm1, %v3548_v9  ;;  %v1869_v44 = vpop.permute.xlu1 %1868 }
 0xcbd   :  { %3251 = vmatprep.subr.bf16.mxu1 %v3548_v9  ;;  %v1874_v48 = vsel %vm229_vm3, %v1869_v44, 0  ;;  %v3414_v44 = vld [vmem:[%s4262_s5 + $0x18] sm:$0xff]  }
 0xcbe   :  { %v3497_v29 = vpop.eup %3496  ;;  %3318 = vmatpush3.bf16.msra.mxu0 %v3414_v44 }
 0xcbf   :  { %v1646_v32 = vmul.f32 %v3497_v29, %v4060_v53  ;;  %3319 = vmatprep.subr.bf16.mxu0 %v3548_v9 }
 0xcc1   :  { %v1647_v34 = vpack.c.bf16 %v1646_v32, %v1646_v32 }
 0xcc3   :  { %3242 = vmatmul.mubr.msk.bf16.vlgmr.msra.gmra.mxu1 %vm165_vm2, %v1647_v34 }
 0xcc4   :  { %3252 = vmatpush3.bf16.msra.mxu1 %v1764_v38  ;;  %3253 = vmatprep.mubr.msk.bf16.mxu1 %vm3549_vm1, %v3548_v9 }
 0xcc5   :  { %3263 = vmatprep.subr.bf16.mxu1 %v3548_v9 }
 0xcc6   :  { %v3499_v39 = vpop.eup %3498 }
 0xcc7   :  { %v1756_v41 = vmul.f32 %v3499_v39, %v4064_v37 }
 0xcc9   :  { %v1757_v46 = vpack.c.bf16 %v1756_v41, %v1756_v41 }
 0xccb   :  { %3254 = vmatmul.mubr.msk.bf16.vlgmr.msra.gmra.mxu1 %vm165_vm2, %v1757_v46 }
 0xccc   :  { %3264 = vmatpush3.bf16.msra.mxu1 %v1874_v48  ;;  %3265 = vmatprep.mubr.msk.bf16.mxu1 %vm3549_vm1, %v3548_v9 }
 0xccd   :  { %3275 = vmatprep.subr.bf16.mxu1 %v3548_v9 }
 0xce5   :  { %v1864_v50 = vpop.xlane.xlu0 %1863 }
 0xce6   :  { %3500 = vrcp.f32 %v1864_v50 }
 0xce9   :  { %v1989_v53 = vpop.xlane.xlu0 %1988 }
 0xcea   :  { %3502 = vrcp.f32 %v1989_v53 }
 0xced   :  { %v2099_v37 = vpop.xlane.xlu1 %2098  ;;  %v2209_v47 = vpop.xlane.xlu0 %2208 }
 0xcee   :  { %3504 = vrcp.f32 %v2099_v37 }
 0xcef   :  { %3506 = vrcp.f32 %v2209_v47 }
 0xcf1   :  { %v2104_v0 = vpop.permute.xlu1 %2103 }
 0xcf2   :  { %v2109_v3 = vsel %vm229_vm3, %v2104_v0, 0 }
 0xcf3   :  { %v3501_v51 = vpop.eup %3500 }
 0xcf4   :  { %v1866_v52 = vmul.f32 %v3501_v51, %v3485_v11 }
 0xcf5   :  { %v2214_v6 = vpop.permute.xlu1 %2213 }
 0xcf6   :  { %v1867_v56 = vpack.c.bf16 %v1866_v52, %v1866_v52  ;;  %v2219_v10 = vsel %vm229_vm3, %v2214_v6, 0  ;;  %v3415_v52 = vld [vmem:[%s4262_s5 + $0x10] sm:$0xff]  }
 0xcf7   :  { %v3503_v60 = vpop.eup %3502  ;;  %3320 = vmatpush3.bf16.msra.mxu0 %v3415_v52 }
 0xcf8   :  { %3266 = vmatmul.mubr.msk.bf16.vlgmr.msra.gmra.mxu1 %vm165_vm2, %v1867_v56  ;;  %v1991_v62 = vmul.f32 %v3503_v60, %v4077_v12  ;;  %3333 = vmatprep.subr.bf16.mxu0 %v3548_v9 }
 0xcf9   :  { %3277 = vmatprep.mubr.msk.bf16.mxu1 %vm3549_vm1, %v3548_v9  ;;  %v2324_v4 = vpop.permute.xlu1 %2323 }
 0xcfa   :  { %v1992_v54 = vpack.c.bf16 %v1991_v62, %v1991_v62 }
 0xcfb   :  { %v3505_v2 = vpop.eup %3504 }
 0xcfc   :  { %v2101_v5 = vmul.f32 %v3505_v2, %v4079_v43  ;;  %v3507_v57 = vpop.eup %3506  ;;  %v2329_v43 = vsel %vm229_vm3, %v2324_v4, 0 }
 0xcfd   :  { %v2211_v11 = vmul.f32 %v3507_v57, %v4083_v13 }
 0xcfe   :  { %v2102_v8 = vpack.c.bf16 %v2101_v5, %v2101_v5 }
 0xcff   :  { %v2212_v12 = vpack.c.bf16 %v2211_v11, %v2211_v11 }
 0xd05   :  { %v2319_v55 = vpop.xlane.xlu0 %2318 }
 0xd06   :  { %3508 = vrcp.f32 %v2319_v55 }
 0xd09   :  { %v1994_v42 = vpop.permute.xlu0 %1993 }
 0xd0a   :  { %v1999_v63 = vsel %vm229_vm3, %v1994_v42, 0 }
 0xd0b   :  { %3276 = vmatpush3.bf16.msra.mxu1 %v1999_v63 }
 0xd0c   :  { %3287 = vmatprep.subr.bf16.mxu1 %v3548_v9 }
 0xd0e   :  { %3278 = vmatmul.mubr.msk.bf16.vlgmr.msra.gmra.mxu1 %vm165_vm2, %v1992_v54 }
 0xd0f   :  { %3288 = vmatpush3.bf16.msra.mxu1 %v2109_v3  ;;  %3289 = vmatprep.mubr.msk.bf16.mxu1 %vm3549_vm1, %v3548_v9 }
 0xd10   :  { %3299 = vmatprep.subr.bf16.mxu1 %v3548_v9 }
 0xd13   :  { %v3509_v7 = vpop.eup %3508 }
 0xd14   :  { %v2321_v15 = vmul.f32 %v3509_v7, %v4093_v22 }
 0xd16   :  { %3290 = vmatmul.mubr.msk.bf16.vlgmr.msra.gmra.mxu1 %vm165_vm2, %v2102_v8  ;;  %v2322_v16 = vpack.c.bf16 %v2321_v15, %v2321_v15 }
 0xd17   :  { %3300 = vmatpush3.bf16.msra.mxu1 %v2219_v10  ;;  %3301 = vmatprep.mubr.msk.bf16.mxu1 %vm3549_vm1, %v3548_v9 }
 0xd18   :  { %3311 = vmatprep.subr.bf16.mxu1 %v3548_v9 }
 0xd1e   :  { %3302 = vmatmul.mubr.msk.bf16.vlgmr.msra.gmra.mxu1 %vm165_vm2, %v2212_v12 }
 0xd1f   :  { %3312 = vmatpush3.bf16.msra.mxu1 %v2329_v43  ;;  %3313 = vmatprep.mubr.msk.bf16.mxu1 %vm3549_vm1, %v3548_v9 }
 0xd20   :  { %3325 = vmatprep.subr.bf16.mxu1 %v3548_v9 }
 0xd26   :  { %3314 = vmatmul.mubr.msk.bf16.vlgmr.msra.gmra.mxu1 %vm165_vm2, %v2322_v16 }
 0xd27   :  { %3329 = vmatprep.mubr.msk.bf16.mxu1 %vm3549_vm1, %v3548_v9 }
 0xd7b   :  { %v1579_v13 = vpop.f32.mrf.mxu1 }
 0xd7d   :  { %v3231_v45 = vpop.f32.mrf.mxu1 }
 0xd7f   :  { %v1582_v17 = vpop.f32.mrf.mxu1 }
 0xd80   :  { %v2395_v17 = vrot.slane %v3964_v61, %v3651_v35 }
 0xd81   :  { %v3232_v18 = vpop.f32.mrf.mxu1 }
 0xd83   :  { %v1690_v21 = vpop.f32.mrf.mxu1 }
 0xd85   :  { %v3243_v23 = vpop.f32.mrf.mxu1 }
 0xd87   :  { %v1693_v24 = vpop.f32.mrf.mxu1 }
 0xd89   :  { %v3244_v20 = vpop.f32.mrf.mxu1 }
 0xd8b   :  { %v1800_v25 = vpop.f32.mrf.mxu1 }
 0xd8d   :  { %v3255_v27 = vpop.f32.mrf.mxu1 }
 0xd8f   :  { %v1803_v30 = vpop.f32.mrf.mxu1 }
 0xd91   :  { %v3256_v22 = vpop.f32.mrf.mxu1 }
 0xdb8   :  { %v1910_v31 = vpop.f32.mrf.mxu1 }
 0xdba   :  { %v3267_v26 = vpop.f32.mrf.mxu1 }
 0xdbc   :  { %v1913_v29 = vpop.f32.mrf.mxu1 }
 0xdbe   :  { %v3268_v32 = vpop.f32.mrf.mxu1 }
 0xdbf   :  { %v3417_v32 = vld [vmem:[%s4263_s6 + $0x10] sm:$0xff]  }
 0xdce   :  { %v2035_v33 = vpop.f32.mrf.mxu1 }
 0xdd0   :  { %v3279_v34 = vpop.f32.mrf.mxu1 }
 0xdd2   :  { %v2038_v38 = vpop.f32.mrf.mxu1 }
 0xdd4   :  { %v3280_v39 = vpop.f32.mrf.mxu1 }
 0xdd6   :  { %v2145_v41 = vpop.f32.mrf.mxu1 }
 0xdd7   :  { %v3387_v46 = vpack.i.bf16 %v2145_v41, %v1690_v21 }
 0xdd8   :  { %v3291_v48 = vpop.f32.mrf.mxu1 }
 0xdd9   :  { %3388 = vrot.lane.b32.xlu1 %v3387_v46, %s3561_s14 }
 0xdda   :  { %v2148_v50 = vpop.f32.mrf.mxu1 }
 0xddc   :  { %v3292_v51 = vpop.f32.mrf.mxu1 }
 0xdde   :  { %v2255_v53 = vpop.f32.mrf.mxu1 }
 0xddf   :  { %v3392_v56 = vpack.i.bf16 %v2255_v53, %v1800_v25 }
 0xde0   :  { %v3303_v37 = vpop.f32.mrf.mxu1 }
 0xde1   :  { %3393 = vrot.lane.b32.xlu1 %v3392_v56, %s3562_s16 }
 0xde2   :  { %v2258_v47 = vpop.f32.mrf.mxu1 }
 0xde4   :  { %v3304_v60 = vpop.f32.mrf.mxu1 }
 0xde6   :  { %v2365_v55 = vpop.f32.mrf.mxu1 }
 0xde7   :  { %v3397_v62 = vpack.i.bf16 %v2365_v55, %v1910_v31 }
 0xde8   :  { %v3315_v42 = vpop.f32.mrf.mxu1 }
 0xde9   :  { %3398 = vrot.lane.b32.xlu1 %v3397_v62, %s3563_s19  ;;  %v2489_v42 = vrot.slane %v3964_v61, %v3892_v14 }
 0xdea   :  { %v2368_v63 = vpop.f32.mrf.mxu1 }
 0xdec   :  { %v3316_v0 = vpop.f32.mrf.mxu1 }
 0xe4b   :  { %v3389_v54 = vpop.permute.xlu1 %3388 }
 0xe4c   :  { %v3391_v3 = vunpack.i.h.bf16 %v3389_v54  ;;  %v3390_v5 = vunpack.i.l.bf16 %v3389_v54 }
 0xe4e   :  { %v2383_v10 = vsel %vm165_vm2, %v2035_v33, %v3391_v3  ;;  %v1928_v11 = vsel %vm165_vm2, %v1579_v13, %v3390_v5  ;;  %v2495_v3 = vrot.slane %v3964_v61, %v1189_v19  ;;  %v3420_v19 = vld [vmem:[%s4264_s7 + $0x28] sm:$0xff]  }
 0xe53   :  { %v3394_v2 = vpop.permute.xlu1 %3393 }
 0xe54   :  { %v3396_v6 = vunpack.i.h.bf16 %v3394_v2  ;;  %v3395_v8 = vunpack.i.l.bf16 %v3394_v2 }
 0xe56   :  { %v2384_v7 = vsel %vm617_vm4, %v2383_v10, %v3396_v6  ;;  %v1929_v43 = vsel %vm617_vm4, %v1928_v11, %v3395_v8  ;;  %v3418_v10 = vld [vmem:[%s4264_s7 + $0x38] sm:$0xff]   ;;  %v3419_v11 = vld [vmem:[%s4264_s7 + $0x30] sm:$0xff]  }
 0xe5b   :  { %v3399_v57 = vpop.permute.xlu1 %3398 }
 0xe5c   :  { %v3401_v4 = vunpack.i.h.bf16 %v3399_v57  ;;  %v3400_v12 = vunpack.i.l.bf16 %v3399_v57 }
 0xe5e   :  { %v2385_v15 = vsel %vm619_vm5, %v2384_v7, %v3401_v4  ;;  %v1930_v16 = vsel %vm619_vm5, %v1929_v43, %v3400_v12  ;;  %v3421_v4 = vld [vmem:[%s4264_s7 + $0x20] sm:$0xff]   ;;  %v2507_v12 = vrot.slane %v3964_v61, %v1200_v36 }
 0xe5f   :  { %v2391_v45 = vpack.c.bf16 %v2385_v15, %v1930_v16 }
 0xe61   :  { %3322 = vmatmul.mubr.msk.bf16.vlgmr.msra.gmra.mxu0 %vm40_vm0, %v2391_v45 }
 0xe62   :  { %3341 = vmatprep.mubr.msk.bf16.mxu0 %vm3549_vm1, %v3548_v9  ;;  %3334 = vmatpush3.bf16.msra.mxu0 %v3418_v10 }
 0xe63   :  { %3335 = vmatprep.subr.bf16.mxu0 %v3548_v9 }
 0xe66   :  { %3336 = vmatpush3.bf16.msra.mxu0 %v3419_v11 }
 0xe67   :  { %3337 = vmatprep.subr.bf16.mxu0 %v3548_v9 }
 0xe6a   :  { %3338 = vmatpush3.bf16.msra.mxu0 %v3420_v19 }
 0xe6b   :  { %3339 = vmatprep.subr.bf16.mxu0 %v3548_v9 }
 0xe6e   :  { %3340 = vmatpush3.bf16.msra.mxu0 %v3421_v4 }
 0xf21   :  { %v2445_v13 = vpop.f32.mrf.mxu0 }
 0xf22   :  { %v2446_v18 = vadd.f32 %v2445_v13, %v2395_v17 }
 0xf23   :  { %v3323_v21 = vpop.f32.mrf.mxu0 }
 0xf24   :  { %v2452_v23 = vadd.f32 %v2446_v18, %v3952_v58  ;;  %v3416_v58 = vld [vmem:[%s4263_s6 + $0x18] sm:$0xff]  }
 0xf25   :  { %v2448_v24 = vpop.f32.mrf.mxu0  ;;  %3326 = vmatpush3.bf16.msra.mxu1 %v3416_v58 }
 0xf26   :  { %v2449_v20 = vadd.f32 %v2448_v24, %v2395_v17  ;;  %v2454_v25 = vsel %vm40_vm0, %v2452_v23, 0.0  ;;  %v2462_v27 = vmul.f32 %v2452_v23, %v2452_v23  ;;  %3327 = vmatprep.subr.bf16.mxu1 %v3548_v9 }
 0xf27   :  { %2455 = vadd.xlane.f32.xlu0 %v2454_v25  ;;  %v3324_v30 = vpop.f32.mrf.mxu0 }
 0xf28   :  { %v2453_v22 = vadd.f32 %v2449_v20, %v3954_v59  ;;  %v2464_v31 = vsel %vm40_vm0, %v2462_v27, 0.0 }
 0xf29   :  { %3328 = vmatpush3.bf16.msra.mxu1 %v3417_v32 }
 0xf2a   :  { %v2457_v26 = vsel %vm40_vm0, %v2453_v22, 0.0  ;;  %v2463_v29 = vmul.f32 %v2453_v22, %v2453_v22 }
 0xf2b   :  { %2465 = vadd.xlane.f32.xlu0 %v2464_v31  ;;  %2458 = vadd.xlane.f32.xlu1 %v2457_v26 }
 0xf2c   :  { %v2467_v35 = vsel %vm40_vm0, %v2463_v29, 0.0 }
 0xf2f   :  { %2468 = vadd.xlane.f32.xlu0 %v2467_v35 }
 0xfb0   :  { %v2456_v59 = vpop.xlane.xlu0 %2455 }
 0xfb1   :  { %v2460_v33 = vmul.f32 0.03125, %v2456_v59 }
 0xfb3   :  { %v2472_v39 = vmul.f32 %v2460_v33, %v2460_v33  ;;  %v2478_v60 = vsub.f32 %v2452_v23, %v2460_v33 }
 0xfb4   :  { %v2466_v34 = vpop.xlane.xlu0 %2465  ;;  %v2459_v38 = vpop.xlane.xlu1 %2458 }
 0xfb5   :  { %v2470_v41 = vmul.f32 0.03125, %v2466_v34  ;;  %v2461_v44 = vmul.f32 0.03125, %v2459_v38  ;;  %v2595_v34 = vrot.slane %v3964_v61, %v1287_v1 }
 0xfb7   :  { %v2474_v46 = vsub.f32 %v2470_v41, %v2472_v39  ;;  %v2473_v51 = vmul.f32 %v2461_v44, %v2461_v44  ;;  %v2479_v63 = vsub.f32 %v2453_v22, %v2461_v44 }
 0xfb8   :  { %v2469_v48 = vpop.xlane.xlu0 %2468 }
 0xfb9   :  { %v2476_v50 = vmax.f32 %v2474_v46, 0.0  ;;  %v2471_v52 = vmul.f32 0.03125, %v2469_v48 }
 0xfbb   :  { %v2480_v53 = vadd.f32 1e-12, %v2476_v50  ;;  %v2475_v56 = vsub.f32 %v2471_v52, %v2473_v51 }
 0xfbd   :  { %3510 = vrsqrt.f32 %v2480_v53  ;;  %v2477_v37 = vmax.f32 %v2475_v56, 0.0 }
 0xfbf   :  { %v2481_v47 = vadd.f32 1e-12, %v2477_v37 }
 0xfc1   :  { %3512 = vrsqrt.f32 %v2481_v47 }
 0xfca   :  { %v3511_v55 = vpop.eup %3510 }
 0xfcb   :  { %v2484_v62 = vmul.f32 %v3511_v55, %v2478_v60  ;;  %v3424_v60 = vld [vmem:[%s4265_s8 + $0x1c] ss:$12 sps:$4 sm:$0xff]   ;;  %v3422_v55 = vld [vmem:[%s4265_s8 + $0x18] ss:$12 sps:$4 sm:$0xff]  }
 0xfcc   :  { %2795 = vmatprep.subr.bf16.mxu1 %v3424_v60 }
 0xfcd   :  { %v2490_v2 = vmul.f32 %v2489_v42, %v2484_v62  ;;  %v3427_v62 = vld [vmem:[%s4265_s8 + $0x4] ss:$12 sps:$4 sm:$0xff]  }
 0xfce   :  { %v3513_v0 = vpop.eup %3512 }
 0xfcf   :  { %v2485_v54 = vmul.f32 %v3513_v0, %v2479_v63  ;;  %v2496_v6 = vadd.f32 %v2495_v3, %v2490_v2  ;;  %v3564_v63 = vmov 0  }
 0xfd1   :  { %v2491_v5 = vmul.f32 %v2489_v42, %v2485_v54  ;;  %v3425_v42 = vld [vmem:[%s4265_s8] ss:$12 sps:$4 sm:$0xff]  }
 0xfd3   :  { %v2497_v8 = vadd.f32 %v2495_v3, %v2491_v5 }
 0xfd5   :  { %v2503_v57 = vpack.c.bf16 %v2497_v8, %v2496_v6 }
 0xfd7   :  { %3330 = vmatmul.mubr.msk.bf16.vlgmr.msra.gmra.mxu1 %vm40_vm0, %v2503_v57 }
 0xfd8   :  { %2796 = vmatpush1.bf16.msra.mxu1 %v3422_v55  ;;  %2815 = vmatprep.mubr.bf16.mxu1 %v3564_v63 }
 0xfd9   :  { %2797 = vmatprep.subr.bf16.mxu1 %v3427_v62 }
 0xfdc   :  { %2798 = vmatpush1.bf16.msra.mxu1 %v3425_v42 }
 0xfdd   :  { %3345 = vmatprep.subr.bf16.mxu1 %v3548_v9 }
0x1097   :  { %v2557_v7 = vpop.f32.mrf.mxu1 }
0x1098   :  { %v2558_v43 = vadd.f32 %v2557_v7, %v2507_v12 }
0x1099   :  { %v3331_v15 = vpop.f32.mrf.mxu1 }
0x109a   :  { %v2566_v16 = vmul.f32 0.044715, %v2558_v43  ;;  %v2564_v29 = vmul.f32 0.5, %v2558_v43 }
0x109b   :  { %v2560_v45 = vpop.f32.mrf.mxu1 }
0x109c   :  { %v2568_v17 = vmul.f32 %v2566_v16, %v2558_v43  ;;  %v2561_v13 = vadd.f32 %v2560_v45, %v2507_v12 }
0x109d   :  { %v3332_v18 = vpop.f32.mrf.mxu1 }
0x109e   :  { %v2570_v21 = vmul.f32 %v2568_v17, %v2558_v43  ;;  %v2567_v23 = vmul.f32 0.044715, %v2561_v13  ;;  %v2565_v35 = vmul.f32 0.5, %v2561_v13 }
0x10a0   :  { %v2572_v24 = vadd.f32 %v2570_v21, %v2558_v43  ;;  %v2569_v20 = vmul.f32 %v2567_v23, %v2561_v13 }
0x10a2   :  { %v2574_v25 = vmul.f32 0.7978846, %v2572_v24  ;;  %v2571_v27 = vmul.f32 %v2569_v20, %v2561_v13  ;;  %v2707_v20 = vrot.slane %v3964_v61, %v1400_v49  ;;  %v2724_v49 = vrot.slane %v3525_v28, %v3892_v14 }
0x10a4   :  { %3514 = vtanh.f32 %v2574_v25  ;;  %v2573_v30 = vadd.f32 %v2571_v27, %v2561_v13  ;;  %v2701_v13 = vrot.slane %v3964_v61, %v3943_v40  ;;  %v2728_v61 = vrot.slane %v3525_v28, %v3943_v40 }
0x10a6   :  { %v2575_v22 = vmul.f32 0.7978846, %v2573_v30 }
0x10a8   :  { %3516 = vtanh.f32 %v2575_v22  ;;  %v3428_v22 = vld [vmem:[%s4265_s8 + $0x20] ss:$12 sps:$4 sm:$0xff]  }
0x10b1   :  { %v3515_v31 = vpop.eup %3514 }
0x10b2   :  { %v2578_v36 = vadd.f32 1.0, %v3515_v31 }
0x10b4   :  { %v2580_v32 = vmul.f32 %v2578_v36, %v2564_v29  ;;  %v3429_v36 = vld [vmem:[%s4265_s8 + $0x8] ss:$12 sps:$4 sm:$0xff]  }
0x10b5   :  { %v3517_v26 = vpop.eup %3516  ;;  %v39_v29 = vld [vmem:[%s4260_s3 + $0x8] sm:$0x7]  ;;  %s3565_s3 = smov [#allocation2]  }
0x10b6   :  { %v2579_v58 = vadd.f32 1.0, %v3517_v26  ;;  %v2739_v26 = vrot.slane %v2724_v49, %v3892_v14  ;;  %s2884_s5 = sshll.u32 %s3565_s3, 4  ;;  %s2885_s5 = int_to_ptr.vmem [resolvable:$true] %s2884_s5 }
0x10b7   :  { %s3526_s26 = scalar_lea.vmem %s2885_s5, 768  ;;  %p3531_p1 = scmp.lt.s32.totalorder %s2885_s5, %s2885_s5 }
0x10b8   :  { %v2581_v59 = vmul.f32 %v2579_v58, %v2565_v35  ;;  %v2743_v35 = vrot.slane %v2728_v61, %v3892_v14  ;;  %p3527_p0 = scmp.ne.s32.totalorder %s2885_s5, %s3526_s26  ;;  %p3532_p2 = scmp.lt.s32.totalorder %s3526_s26, %s3526_s26 }
0x10ba   :  { %v2591_v33 = vpack.c.bf16 %v2581_v59, %v2580_v32  ;;  %v2732_v32 = vrot.slane %v39_v29, %v3892_v14  ;;  %p3533_p3 = por %p3532_p2, %p3531_p1 }
0x10bc   :  { %3342 = vmatmul.mubr.msk.bf16.vlgmr.msra.gmra.mxu0 %vm1313_vm6, %v2591_v33  ;;  %v2747_v40 = vrot.slane %v2732_v32, %v3892_v14  ;;  %p3534_p4 = pnand %p3533_p3, %p3527_p0 }
0x117c   :  { %v2657_v38 = vpop.f32.mrf.mxu0 }
0x117d   :  { %v2658_v39 = vadd.f32 %v2657_v38, %v2595_v34 }
0x117e   :  { %v3343_v41 = vpop.f32.mrf.mxu0 }
0x117f   :  { %v2664_v44 = vadd.f32 %v2658_v39, %v2496_v6 }
0x1180   :  { %v2660_v46 = vpop.f32.mrf.mxu0 }
0x1181   :  { %v2661_v48 = vadd.f32 %v2660_v46, %v2595_v34  ;;  %v2666_v50 = vsel %vm40_vm0, %v2664_v44, 0.0  ;;  %v2674_v51 = vmul.f32 %v2664_v44, %v2664_v44 }
0x1182   :  { %2667 = vadd.xlane.f32.xlu0 %v2666_v50  ;;  %v3344_v52 = vpop.f32.mrf.mxu0 }
0x1183   :  { %v2665_v53 = vadd.f32 %v2661_v48, %v2497_v8  ;;  %v2676_v56 = vsel %vm40_vm0, %v2674_v51, 0.0 }
0x1185   :  { %v2669_v37 = vsel %vm40_vm0, %v2665_v53, 0.0  ;;  %v2675_v47 = vmul.f32 %v2665_v53, %v2665_v53 }
0x1186   :  { %2677 = vadd.xlane.f32.xlu0 %v2676_v56  ;;  %2670 = vadd.xlane.f32.xlu1 %v2669_v37 }
0x1187   :  { %v2679_v1 = vsel %vm40_vm0, %v2675_v47, 0.0 }
0x118a   :  { %2680 = vadd.xlane.f32.xlu1 %v2679_v1 }
0x120b   :  { %v2668_v0 = vpop.xlane.xlu0 %2667 }
0x120c   :  { %v2672_v54 = vmul.f32 0.03125, %v2668_v0 }
0x120e   :  { %v2684_v5 = vmul.f32 %v2672_v54, %v2672_v54  ;;  %v2690_v16 = vsub.f32 %v2664_v44, %v2672_v54 }
0x120f   :  { %v2678_v2 = vpop.xlane.xlu0 %2677  ;;  %v2671_v3 = vpop.xlane.xlu1 %2670 }
0x1210   :  { %v2682_v6 = vmul.f32 0.03125, %v2678_v2  ;;  %v2673_v8 = vmul.f32 0.03125, %v2671_v3 }
0x1212   :  { %v2686_v57 = vsub.f32 %v2682_v6, %v2684_v5  ;;  %v2685_v19 = vmul.f32 %v2673_v8, %v2673_v8  ;;  %v2691_v18 = vsub.f32 %v2665_v53, %v2673_v8 }
0x1213   :  { %v2681_v10 = vpop.xlane.xlu1 %2680 }
0x1214   :  { %v2688_v11 = vmax.f32 %v2686_v57, 0.0  ;;  %v2683_v4 = vmul.f32 0.03125, %v2681_v10 }
0x1216   :  { %v2692_v12 = vadd.f32 1e-12, %v2688_v11  ;;  %v2687_v7 = vsub.f32 %v2683_v4, %v2685_v19 }
0x1218   :  { %3518 = vrsqrt.f32 %v2692_v12  ;;  %v2689_v43 = vmax.f32 %v2687_v7, 0.0 }
0x121a   :  { %v2693_v15 = vadd.f32 1e-12, %v2689_v43 }
0x121c   :  { %3520 = vrsqrt.f32 %v2693_v15 }
0x1225   :  { %v3519_v45 = vpop.eup %3518 }
0x1226   :  { %v2696_v17 = vmul.f32 %v3519_v45, %v2690_v16 }
0x1228   :  { %v2702_v24 = vmul.f32 %v2701_v13, %v2696_v17 }
0x1229   :  { %v3521_v21 = vpop.eup %3520 }
0x122a   :  { %v2697_v23 = vmul.f32 %v3521_v21, %v2691_v18  ;;  %v2708_v27 = vadd.f32 %v2707_v20, %v2702_v24 }
0x122c   :  { %v2703_v25 = vmul.f32 %v2701_v13, %v2697_v23 }
0x122e   :  { %v2709_v30 = vadd.f32 %v2707_v20, %v2703_v25 }
0x1230   :  { %v2718_v31 = vpack.c.bf16 %v2709_v30, %v2708_v27 }
0x1232   :  { %2984 = vmatmul.mubr.msk.bf16.vlgmr.msra.gmra.mxu1 %vm40_vm0, %v2718_v31 }
0x1233   :  { %3346 = vmatpush3.bf16.msra.mxu1 %v3428_v22  ;;  %3349 = vmatprep.mubr.msk.bf16.mxu1 %vm3549_vm1, %v3548_v9 }
0x1234   :  { %3347 = vmatprep.subr.bf16.mxu1 %v3548_v9 }
0x1237   :  { %3348 = vmatpush3.bf16.msra.mxu1 %v3429_v36 }
0x123a   :  { %3350 = vmatmul.mubr.msk.bf16.vlgmr.msra.gmra.mxu1 %vm40_vm0, %v2718_v31 }
0x12f2   :  { %v2817_v9 = vpop.f32.mrf.mxu1 }
0x12f3   :  { %v2818_v58 = vadd.f32 %v2817_v9, %v2739_v26 }
0x12f4   :  { %v2819_v59 = vpop.f32.mrf.mxu1 }
0x12f5   :  { %v2867_v33 = vmax.f32 %v2818_v58, 0.0  ;;  %v2820_v34 = vadd.f32 %v2819_v59, %v2743_v35 }
0x12f6   :  { %v2821_v38 = vpop.f32.mrf.mxu1 }
0x12f7   :  { %2873 = vst [vmem:[#allocation2] sm:$0xff] %v2867_v33  ;;  %v2868_v39 = vmax.f32 %v2820_v34, 0.0  ;;  %v2822_v41 = vadd.f32 %v2821_v38, %v2739_v26 }
0x12f8   :  { %v2823_v44 = vpop.f32.mrf.mxu1 }
0x12f9   :  { %2874 = vst [vmem:[#allocation2 + $0x8] sm:$0xff] %v2868_v39  ;;  %v2870_v46 = vmax.f32 %v2822_v41, 0.0  ;;  %v2824_v48 = vadd.f32 %v2823_v44, %v2743_v35 }
0x12fa   :  { %v2860_v50 = vpop.f32.mrf.mxu1 }
0x12fb   :  { %2876 = vst [vmem:[#allocation2 + $0x18] sm:$0xff] %v2870_v46  ;;  %v2871_v51 = vmax.f32 %v2824_v48, 0.0  ;;  %v2861_v52 = vadd.f32 %v2860_v50, %v2747_v40 }
0x12fc   :  { %v3351_v53 = vpop.f32.mrf.mxu1 }
0x12fd   :  { %2877 = vst [vmem:[#allocation2 + $0x20] sm:$0xff] %v2871_v51  ;;  %v2869_v56 = vmax.f32 %v2861_v52, 0.0 }
0x12fe   :  { %v2863_v37 = vpop.f32.mrf.mxu1 }
0x12ff   :  { %2875 = vst [vmem:[#allocation2 + $0x10] sm:$0xff] %v2869_v56  ;;  %v2864_v47 = vadd.f32 %v2863_v37, %v2747_v40 }
0x1300   :  { %v3352_v1 = vpop.f32.mrf.mxu1 }
0x1301   :  { %v2872_v60 = vmax.f32 %v2864_v47, 0.0 }
0x1303   :  { %2878 = vst [vmem:[#allocation2 + $0x28] sm:$0xff] %v2872_v60 }
0x1304   :  { %3537 = shalt.err (!%p3534_p4)
}
0x1305   :  { %s3566_s29 = smov 384  }
0x1306   :  { %2890 = dma.vmem_to_hbm [thread:$0]  %s2885_s5, 768, %s4266_s9, [#allocation3], %s3566_s29, %s3566_s29, %s3563_s19  }
0x1307   :  { %3546 = dma.done.wait [#allocation3], 768  }
0x1308   :  { %3547 = vsyncadd [#allocation3], 4294966528 }
0x1309   :  { %2894 = vsyncpa [#allocation3], 1 }

</bundles_post_ra>
